<compile_context>
chip_gen: v7x
topology: tpu7x:2x2x1
jax: 0.10.0
libtpu: 0.0.40
codegen_flags: <defaults>
</compile_context>

<pallas_src>
import functools

import jax
import jax.numpy as jnp
from jax.experimental import pallas as pl
from jax.experimental.pallas import tpu as pltpu


_ACC_BUDGET_ELEMS = 32 * 1024   # ~128 KiB f32 accumulator, counted with lane padding
_HALO_OFF = 8                   # left halo width in the padded scratch: keeps the
                                # interior store sublane-aligned; taps read cols 7/8/9


def _is_v5():
    try:
        return "v5" in jax.devices()[0].device_kind.lower()
    except Exception:
        return False


_V5 = _is_v5()


def _cout_tile(cout):
    """Cout slab width: 256 on v6e/v7x for wide layers (2x256 MXU), 128 on v5e."""
    if cout <= 128:
        return cout
    return min(cout, 128 if _V5 else 256)


def _strip_height(n, h, w, tc, pool):
    """Largest divisor of h keeping the (n*sh*w, tc) f32 accumulator in budget.

    The budget counts lane padding (max(tc, 128)) so Cout=64 layers do not burn
    the whole vreg file on a half-empty accumulator; M rows are capped at 256
    (128 on v5e).  Pooled layers need an even strip height (row pairs are
    reduced inside the strip).
    """
    row_cap = max(1, min(128 if _V5 else 256,
                         _ACC_BUDGET_ELEMS // max(tc, 128)))
    sh = 2 if pool else 1
    for d in range(1, h + 1):
        if h % d:
            continue
        if pool and d % 2:
            continue
        if n * d * w <= row_cap:
            sh = max(sh, d)
    return sh


# -----------------------------------------------------------------------------
# Pallas kernel: fused 3x3 conv (stride 1, 'same' pad built in VMEM) + bias +
# ReLU (+ vertical 2x1 max-pool).  One grid step = one Cout slab; batch is
# folded into the matmul M dimension; the conv is 9 shifted (M, Cin) @ (Cin, Tc)
# MXU matmuls accumulated in f32, processed in row strips.
# -----------------------------------------------------------------------------
def _conv3x3_bias_relu_kernel(x_ref, w_ref, b_ref, o_ref, xpad_ref, *, sh, pool):
    # x_ref:    (N, H, W, Cin)            bf16 unpadded activations (whole batch)
    # w_ref:    (3, 3, Cin, Tc)           bf16 weight slab for this Cout tile
    # b_ref:    (1, Tc)                   f32 bias slice
    # o_ref:    (N, Ho, W, Tc)            bf16 output tile (Ho = H/2 if pool else H)
    # xpad_ref: (N, H+2, W+2*HALO, Cin)   bf16 zero-haloed activation scratch
    n, h, w, cin = x_ref.shape
    tc = o_ref.shape[3]

    # Fused 'same' padding: build the zero halo in VMEM instead of a separate
    # jnp.pad XLA op that round-trips the activation through HBM every layer.
    # The interior lives at column offset _HALO_OFF, so this store is
    # sublane-aligned; the halo columns 7 and 8+w stay zero.
    xpad_ref[...] = jnp.zeros_like(xpad_ref)
    xpad_ref[:, 1:h + 1, _HALO_OFF:_HALO_OFF + w, :] = x_ref[...]

    bias = b_ref[0, :][None, :]                  # (1, Tc) f32, hoisted out of loops
    m_rows = n * sh * w                          # batch folded into the MXU M dim
    n_strips = h // sh
    sho = sh // 2 if pool else sh
    # Small-Cin (copy-bound early) layers: load one halo slab per kh and slice
    # the three kw taps from that value (3 loads/strip instead of 9 realigned
    # VMEM re-loads).  Large-Cin slabs would blow the vreg file -> per-tap loads.
    use_slab = cin <= 64

    def do_strip(r0, r0_out):
        # Bias folded into the accumulator init (one broadcast per strip).
        acc = jnp.broadcast_to(bias, (m_rows, tc))
        for kh in range(3):
            slab = xpad_ref[:, pl.ds(r0 + kh, sh), :, :] if use_slab else None
            for kw in range(3):
                c0 = _HALO_OFF - 1 + kw
                if use_slab:
                    tap = slab[:, :, c0:c0 + w, :]
                else:
                    tap = xpad_ref[:, pl.ds(r0 + kh, sh), c0:c0 + w, :]
                acc = acc + jnp.dot(tap.reshape(m_rows, cin), w_ref[kh, kw],
                                    preferred_element_type=jnp.float32)
        y = jnp.maximum(acc, 0.0).reshape(n, sh, w, tc).astype(o_ref.dtype)
        if pool:
            # Fused vertical (2x1) max-pool: major-dim reshape + elementwise max,
            # halving the output store traffic of pooled layers.
            # TODO(synk): the horizontal (1x2) half needs a sublane-strided /
            # decimating read; it is left to a cheap XLA op in the wrapper.
            yr = y.reshape(n, sh // 2, 2, w, tc)
            y = jnp.maximum(yr[:, :, 0], yr[:, :, 1])
        o_ref[:, pl.ds(r0_out, sho), :, :] = y

    if n_strips <= 4:
        for s in range(n_strips):            # short fixed trip count: unroll
            do_strip(s * sh, s * sho)
    else:
        @pl.loop(0, n_strips)
        def _(s):
            do_strip(pl.multiple_of(s * sh, sh), pl.multiple_of(s * sho, sho))


def conv3x3_relu(x_nhwc, w_bf16, b_f32, pool):
    """Fused 3x3 conv (stride 1, 'same' pad) + bias + ReLU (+ vertical pool).

    Grid is (Cout tiles,) only: batch is folded into the matmul M dimension, so
    every weight slab is DMA'd from HBM exactly once (conv2-conv4 are weight-DMA
    bound) and the whole-batch activation stays VMEM-resident across Cout tiles.
    """
    n, h, w, cin = x_nhwc.shape
    cout = w_bf16.shape[-1]
    tc = _cout_tile(cout)
    assert cout % tc == 0
    jt = cout // tc
    sh = _strip_height(n, h, w, tc, pool)
    ho = h // 2 if pool else h

    x_bf16 = x_nhwc.astype(jnp.bfloat16)
    b2 = b_f32.reshape(1, cout)

    kernel = functools.partial(_conv3x3_bias_relu_kernel, sh=sh, pool=pool)

    return pl.pallas_call(
        kernel,
        out_shape=jax.ShapeDtypeStruct((n, ho, w, cout), jnp.bfloat16),
        grid_spec=pltpu.PrefetchScalarGridSpec(
            num_scalar_prefetch=0,
            grid=(jt,),
            in_specs=[
                # whole-batch activations: constant block index -> DMA'd once,
                # resident in VMEM across all Cout tiles
                pl.BlockSpec((n, h, w, cin), lambda j: (0, 0, 0, 0)),
                # weights: one 128/256-lane Cout slab per grid step, fetched
                # exactly once per layer (weight-residency fix)
                pl.BlockSpec((3, 3, cin, tc), lambda j: (0, 0, 0, j)),
                pl.BlockSpec((1, tc), lambda j: (0, j)),
            ],
            out_specs=pl.BlockSpec((n, ho, w, tc), lambda j: (0, 0, 0, j)),
            scratch_shapes=[
                pltpu.VMEM((n, h + 2, w + 2 * _HALO_OFF, cin), jnp.bfloat16),
            ],
        ),
        compiler_params=pltpu.CompilerParams(
            # Cout tiles are independent -> megacore-shardable on v7x without
            # duplicating weight HBM traffic (batch lives inside the M dim).
            dimension_semantics=("parallel",),
            # worst per-layer footprint ~11 MiB; 32 MiB fits every generation
            # (v7x has only 64 MiB physical VMEM)
            vmem_limit_bytes=32 * 1024 * 1024,
        ),
    )(x_bf16, w_bf16, b2)


def _maxpool_width(x_nhwc):
    """Horizontal (1x2) max pool; the vertical half is fused into the conv."""
    n, h, w, c = x_nhwc.shape
    return jnp.max(x_nhwc.reshape(n, h, w // 2, 2, c), axis=3)


# -----------------------------------------------------------------------------
# Parameter construction (deterministic, in-script). Weights stored as bf16
# (MXU input dtype), biases as f32 (epilogue dtype).
# -----------------------------------------------------------------------------
def _init_conv(key, cin, cout):
    kw_, kb_ = jax.random.split(key)
    scale = (2.0 / (9.0 * cin)) ** 0.5
    w = (jax.random.normal(kw_, (3, 3, cin, cout), jnp.float32) * scale
         ).astype(jnp.bfloat16)
    b = jax.random.normal(kb_, (cout,), jnp.float32) * 0.01
    return w, b


def init_extract_params(key, input_channels):
    # VGG16 `features` children 0..30 split as in the torch module; each tuple
    # is (Cin, Cout, pool-after) where pool-after marks a following MaxPool2d.
    block_cfgs = [
        [(input_channels, 64, False), (64, 64, True),
         (64, 128, False), (128, 128, True)],                        # conv1 = feats[0:10]
        [(128, 256, False), (256, 256, False), (256, 256, True)],    # conv2 = feats[10:17]
        [(256, 512, False), (512, 512, False), (512, 512, True)],    # conv3 = feats[17:24]
        [(512, 512, False), (512, 512, False), (512, 512, True)],    # conv4 = feats[24:31]
    ]
    blocks, idx = [], 0
    for cfg in block_cfgs:
        layers = []
        for cin, cout, pool in cfg:
            w, b = _init_conv(jax.random.fold_in(key, idx), cin, cout)
            layers.append((w, b, pool))
            idx += 1
        blocks.append(layers)
    return blocks


def _run_block(x_nhwc, block):
    for w, b, pool in block:
        x_nhwc = conv3x3_relu(x_nhwc, w, b, pool)
        if pool:
            x_nhwc = _maxpool_width(x_nhwc)
    return x_nhwc


def extract_forward(x_nchw, params):
    """Forward pass of Extract (== VGG.forward). Inputs/outputs are NCHW f32."""
    x = jnp.transpose(x_nchw, (0, 2, 3, 1))  # NCHW -> NHWC
    conv1, conv2, conv3, conv4 = params

    x = _run_block(x, conv1)
    x = _run_block(x, conv2)
    feats3 = _run_block(x, conv3)
    feats4 = _run_block(feats3, conv4)
    # TODO(synk): `self.conv5` is referenced in VGG.forward but never defined in
    # VGG.__init__ (bug in the reference module); treated as identity here.
    feats5 = feats4

    to_nchw = lambda t: jnp.transpose(t.astype(jnp.float32), (0, 3, 1, 2))
    return to_nchw(feats3), to_nchw(feats4), to_nchw(feats5)


if __name__ == "__main__":
    key = jax.random.PRNGKey(0)
    k_param, k_input = jax.random.split(key)

    batch, input_channels, spatial = 2, 4, 64  # NCHW, like the torch module
    x = jax.random.normal(k_input, (batch, input_channels, spatial, spatial),
                          dtype=jnp.float32)

    params = init_extract_params(k_param, input_channels)

    feats3, feats4, feats5 = extract_forward(x, params)
    jax.block_until_ready((feats3, feats4, feats5))

    # sanity: feats3 (N,512,4,4), feats4/feats5 (N,512,2,2) for 64x64 input
    assert feats3.shape == (batch, 512, spatial // 16, spatial // 16)
    assert feats4.shape == (batch, 512, spatial // 32, spatial // 32)
    assert feats5.shape == feats4.shape
    assert bool(jnp.all(jnp.isfinite(feats5)))

    print("KERNEL_OK")
</pallas_src>

<mosaic_0001>
module attributes {stable_mosaic.version = 11 : i64} {
  func.func @_conv3x3_bias_relu_kernel(%arg0: i32, %arg1: memref<2x64x64x4xbf16, #tpu.memory_space<vmem>>, %arg2: memref<3x3x4x64xbf16, #tpu.memory_space<vmem>>, %arg3: memref<1x64xf32, #tpu.memory_space<vmem>>, %arg4: memref<2x64x64x64xbf16, #tpu.memory_space<vmem>>, %arg5: memref<2x66x80x4xbf16, #tpu.memory_space<vmem>>) attributes {dimension_semantics = [#tpu.dimension_semantics<parallel>], iteration_bounds = array<i64: 1>, scalar_prefetch = 0 : i64, scratch_operands = 1 : i64, tpu.core_type = #tpu.core_type<tc>, window_params = [{pipeline_mode = #tpu.pipeline_mode<synchronous>, transform_indices = @transform_0, window_bounds = array<i64: 2, 64, 64, 4>}, {transform_indices = @transform_1, window_bounds = array<i64: 3, 3, 4, 64>}, {transform_indices = @transform_2, window_bounds = array<i64: 1, 64>}, {transform_indices = @transform_3, window_bounds = array<i64: 2, 64, 64, 64>}]} {
    %cst = arith.constant 0.000000e+00 : bf16
    %0 = vector.broadcast %cst : bf16 to vector<2x66x80x4xbf16>
    %c0 = arith.constant 0 : index
    %c0_0 = arith.constant 0 : index
    %c0_1 = arith.constant 0 : index
    %c0_2 = arith.constant 0 : index
    %1 = vector.load %arg5[%c0, %c0_0, %c0_1, %c0_2] : memref<2x66x80x4xbf16, #tpu.memory_space<vmem>>, vector<2x66x80x4xbf16>
    tpu.vector_store %arg5[%c0, %c0_0, %c0_1, %c0_2], %0 {strides = array<i32>} : memref<2x66x80x4xbf16, #tpu.memory_space<vmem>>, vector<2x66x80x4xbf16>,
    %c0_3 = arith.constant 0 : index
    %c0_4 = arith.constant 0 : index
    %c0_5 = arith.constant 0 : index
    %c0_6 = arith.constant 0 : index
    %2 = vector.load %arg1[%c0_3, %c0_4, %c0_5, %c0_6] : memref<2x64x64x4xbf16, #tpu.memory_space<vmem>>, vector<2x64x64x4xbf16>
    %c0_7 = arith.constant 0 : index
    %c1 = arith.constant 1 : index
    %c8 = arith.constant 8 : index
    %c0_8 = arith.constant 0 : index
    %3 = vector.load %arg5[%c0_7, %c1, %c8, %c0_8] : memref<2x66x80x4xbf16, #tpu.memory_space<vmem>>, vector<2x64x64x4xbf16>
    tpu.vector_store %arg5[%c0_7, %c1, %c8, %c0_8], %2 {strides = array<i32>} : memref<2x66x80x4xbf16, #tpu.memory_space<vmem>>, vector<2x64x64x4xbf16>,
    %c0_9 = arith.constant 0 : index
    %c0_10 = arith.constant 0 : index
    %4 = vector.load %arg3[%c0_9, %c0_10] : memref<1x64xf32, #tpu.memory_space<vmem>>, vector<1x64xf32>
    %5 = vector.shape_cast %4 : vector<1x64xf32> to vector<64xf32>
    %6 = vector.shape_cast %5 : vector<64xf32> to vector<1x64xf32>
    %c0_i32 = arith.constant 0 : i32
    %c32_i32 = arith.constant 32 : i32
    %7 = arith.addi %c0_i32, %c32_i32 : i32
    %c1_i32 = arith.constant 1 : i32
    scf.for %arg6 = %c0_i32 to %7 step %c1_i32  : i32 {
      %c1_i32_12 = arith.constant 1 : i32
      %8 = arith.muli %arg6, %c1_i32_12 : i32
      %c0_i32_13 = arith.constant 0 : i32
      %9 = arith.addi %c0_i32_13, %8 : i32
      %c2_i32 = arith.constant 2 : i32
      %10 = arith.muli %9, %c2_i32 : i32
      %11 = tpu.assume_multiple %10, 2 : i32
      %c2_i32_14 = arith.constant 2 : i32
      %12 = arith.muli %9, %c2_i32_14 : i32
      %13 = tpu.assume_multiple %12, 2 : i32
      %14 = vector.shape_cast %6 : vector<1x64xf32> to vector<1x64xf32>
      %15 = vector.broadcast %14 : vector<1x64xf32> to vector<256x64xf32>
      %c0_i32_15 = arith.constant 0 : i32
      %16 = arith.addi %11, %c0_i32_15 : i32
      %c0_16 = arith.constant 0 : index
      %17 = arith.index_cast %16 : i32 to index
      %c0_17 = arith.constant 0 : index
      %c0_18 = arith.constant 0 : index
      %18 = vector.load %arg5[%c0_16, %17, %c0_17, %c0_18] : memref<2x66x80x4xbf16, #tpu.memory_space<vmem>>, vector<2x2x80x4xbf16>
      %19 = vector.extract_strided_slice %18 {offsets = [0, 0, 7, 0], sizes = [2, 2, 64, 4], strides = [1, 1, 1, 1]} : vector<2x2x80x4xbf16> to vector<2x2x64x4xbf16>
      %20 = vector.shape_cast %19 : vector<2x2x64x4xbf16> to vector<256x4xbf16>
      %c0_19 = arith.constant 0 : index
      %c0_20 = arith.constant 0 : index
      %c0_21 = arith.constant 0 : index
      %c0_22 = arith.constant 0 : index
      %21 = vector.load %arg2[%c0_19, %c0_20, %c0_21, %c0_22] : memref<3x3x4x64xbf16, #tpu.memory_space<vmem>>, vector<1x1x4x64xbf16>
      %22 = vector.shape_cast %21 : vector<1x1x4x64xbf16> to vector<4x64xbf16>
      %cst_23 = arith.constant dense<0.000000e+00> : vector<256x64xf32>
      %23 = tpu.matmul %20, %22, %cst_23 {dimension_numbers = #tpu.dot_dimension_numbers<[1], [0], [0], [1], [0, 0, 1, 1], [], []>} : vector<256x4xbf16>, vector<4x64xbf16>, vector<256x64xf32> -> vector<256x64xf32>
      %24 = arith.addf %15, %23 : vector<256x64xf32>
      %25 = vector.extract_strided_slice %18 {offsets = [0, 0, 8, 0], sizes = [2, 2, 64, 4], strides = [1, 1, 1, 1]} : vector<2x2x80x4xbf16> to vector<2x2x64x4xbf16>
      %26 = vector.shape_cast %25 : vector<2x2x64x4xbf16> to vector<256x4xbf16>
      %c0_24 = arith.constant 0 : index
      %c1_25 = arith.constant 1 : index
      %c0_26 = arith.constant 0 : index
      %c0_27 = arith.constant 0 : index
      %27 = vector.load %arg2[%c0_24, %c1_25, %c0_26, %c0_27] : memref<3x3x4x64xbf16, #tpu.memory_space<vmem>>, vector<1x1x4x64xbf16>
      %28 = vector.shape_cast %27 : vector<1x1x4x64xbf16> to vector<4x64xbf16>
      %cst_28 = arith.constant dense<0.000000e+00> : vector<256x64xf32>
      %29 = tpu.matmul %26, %28, %cst_28 {dimension_numbers = #tpu.dot_dimension_numbers<[1], [0], [0], [1], [0, 0, 1, 1], [], []>} : vector<256x4xbf16>, vector<4x64xbf16>, vector<256x64xf32> -> vector<256x64xf32>
      %30 = arith.addf %24, %29 : vector<256x64xf32>
      %31 = vector.extract_strided_slice %18 {offsets = [0, 0, 9, 0], sizes = [2, 2, 64, 4], strides = [1, 1, 1, 1]} : vector<2x2x80x4xbf16> to vector<2x2x64x4xbf16>
      %32 = vector.shape_cast %31 : vector<2x2x64x4xbf16> to vector<256x4xbf16>
      %c0_29 = arith.constant 0 : index
      %c2 = arith.constant 2 : index
      %c0_30 = arith.constant 0 : index
      %c0_31 = arith.constant 0 : index
      %33 = vector.load %arg2[%c0_29, %c2, %c0_30, %c0_31] : memref<3x3x4x64xbf16, #tpu.memory_space<vmem>>, vector<1x1x4x64xbf16>
      %34 = vector.shape_cast %33 : vector<1x1x4x64xbf16> to vector<4x64xbf16>
      %cst_32 = arith.constant dense<0.000000e+00> : vector<256x64xf32>
      %35 = tpu.matmul %32, %34, %cst_32 {dimension_numbers = #tpu.dot_dimension_numbers<[1], [0], [0], [1], [0, 0, 1, 1], [], []>} : vector<256x4xbf16>, vector<4x64xbf16>, vector<256x64xf32> -> vector<256x64xf32>
      %36 = arith.addf %30, %35 : vector<256x64xf32>
      %c1_i32_33 = arith.constant 1 : i32
      %37 = arith.addi %11, %c1_i32_33 : i32
      %c0_34 = arith.constant 0 : index
      %38 = arith.index_cast %37 : i32 to index
      %c0_35 = arith.constant 0 : index
      %c0_36 = arith.constant 0 : index
      %39 = vector.load %arg5[%c0_34, %38, %c0_35, %c0_36] : memref<2x66x80x4xbf16, #tpu.memory_space<vmem>>, vector<2x2x80x4xbf16>
      %40 = vector.extract_strided_slice %39 {offsets = [0, 0, 7, 0], sizes = [2, 2, 64, 4], strides = [1, 1, 1, 1]} : vector<2x2x80x4xbf16> to vector<2x2x64x4xbf16>
      %41 = vector.shape_cast %40 : vector<2x2x64x4xbf16> to vector<256x4xbf16>
      %c1_37 = arith.constant 1 : index
      %c0_38 = arith.constant 0 : index
      %c0_39 = arith.constant 0 : index
      %c0_40 = arith.constant 0 : index
      %42 = vector.load %arg2[%c1_37, %c0_38, %c0_39, %c0_40] : memref<3x3x4x64xbf16, #tpu.memory_space<vmem>>, vector<1x1x4x64xbf16>
      %43 = vector.shape_cast %42 : vector<1x1x4x64xbf16> to vector<4x64xbf16>
      %cst_41 = arith.constant dense<0.000000e+00> : vector<256x64xf32>
      %44 = tpu.matmul %41, %43, %cst_41 {dimension_numbers = #tpu.dot_dimension_numbers<[1], [0], [0], [1], [0, 0, 1, 1], [], []>} : vector<256x4xbf16>, vector<4x64xbf16>, vector<256x64xf32> -> vector<256x64xf32>
      %45 = arith.addf %36, %44 : vector<256x64xf32>
      %46 = vector.extract_strided_slice %39 {offsets = [0, 0, 8, 0], sizes = [2, 2, 64, 4], strides = [1, 1, 1, 1]} : vector<2x2x80x4xbf16> to vector<2x2x64x4xbf16>
      %47 = vector.shape_cast %46 : vector<2x2x64x4xbf16> to vector<256x4xbf16>
      %c1_42 = arith.constant 1 : index
      %c1_43 = arith.constant 1 : index
      %c0_44 = arith.constant 0 : index
      %c0_45 = arith.constant 0 : index
      %48 = vector.load %arg2[%c1_42, %c1_43, %c0_44, %c0_45] : memref<3x3x4x64xbf16, #tpu.memory_space<vmem>>, vector<1x1x4x64xbf16>
      %49 = vector.shape_cast %48 : vector<1x1x4x64xbf16> to vector<4x64xbf16>
      %cst_46 = arith.constant dense<0.000000e+00> : vector<256x64xf32>
      %50 = tpu.matmul %47, %49, %cst_46 {dimension_numbers = #tpu.dot_dimension_numbers<[1], [0], [0], [1], [0, 0, 1, 1], [], []>} : vector<256x4xbf16>, vector<4x64xbf16>, vector<256x64xf32> -> vector<256x64xf32>
      %51 = arith.addf %45, %50 : vector<256x64xf32>
      %52 = vector.extract_strided_slice %39 {offsets = [0, 0, 9, 0], sizes = [2, 2, 64, 4], strides = [1, 1, 1, 1]} : vector<2x2x80x4xbf16> to vector<2x2x64x4xbf16>
      %53 = vector.shape_cast %52 : vector<2x2x64x4xbf16> to vector<256x4xbf16>
      %c1_47 = arith.constant 1 : index
      %c2_48 = arith.constant 2 : index
      %c0_49 = arith.constant 0 : index
      %c0_50 = arith.constant 0 : index
      %54 = vector.load %arg2[%c1_47, %c2_48, %c0_49, %c0_50] : memref<3x3x4x64xbf16, #tpu.memory_space<vmem>>, vector<1x1x4x64xbf16>
      %55 = vector.shape_cast %54 : vector<1x1x4x64xbf16> to vector<4x64xbf16>
      %cst_51 = arith.constant dense<0.000000e+00> : vector<256x64xf32>
      %56 = tpu.matmul %53, %55, %cst_51 {dimension_numbers = #tpu.dot_dimension_numbers<[1], [0], [0], [1], [0, 0, 1, 1], [], []>} : vector<256x4xbf16>, vector<4x64xbf16>, vector<256x64xf32> -> vector<256x64xf32>
      %57 = arith.addf %51, %56 : vector<256x64xf32>
      %c2_i32_52 = arith.constant 2 : i32
      %58 = arith.addi %11, %c2_i32_52 : i32
      %c0_53 = arith.constant 0 : index
      %59 = arith.index_cast %58 : i32 to index
      %c0_54 = arith.constant 0 : index
      %c0_55 = arith.constant 0 : index
      %60 = vector.load %arg5[%c0_53, %59, %c0_54, %c0_55] : memref<2x66x80x4xbf16, #tpu.memory_space<vmem>>, vector<2x2x80x4xbf16>
      %61 = vector.extract_strided_slice %60 {offsets = [0, 0, 7, 0], sizes = [2, 2, 64, 4], strides = [1, 1, 1, 1]} : vector<2x2x80x4xbf16> to vector<2x2x64x4xbf16>
      %62 = vector.shape_cast %61 : vector<2x2x64x4xbf16> to vector<256x4xbf16>
      %c2_56 = arith.constant 2 : index
      %c0_57 = arith.constant 0 : index
      %c0_58 = arith.constant 0 : index
      %c0_59 = arith.constant 0 : index
      %63 = vector.load %arg2[%c2_56, %c0_57, %c0_58, %c0_59] : memref<3x3x4x64xbf16, #tpu.memory_space<vmem>>, vector<1x1x4x64xbf16>
      %64 = vector.shape_cast %63 : vector<1x1x4x64xbf16> to vector<4x64xbf16>
      %cst_60 = arith.constant dense<0.000000e+00> : vector<256x64xf32>
      %65 = tpu.matmul %62, %64, %cst_60 {dimension_numbers = #tpu.dot_dimension_numbers<[1], [0], [0], [1], [0, 0, 1, 1], [], []>} : vector<256x4xbf16>, vector<4x64xbf16>, vector<256x64xf32> -> vector<256x64xf32>
      %66 = arith.addf %57, %65 : vector<256x64xf32>
      %67 = vector.extract_strided_slice %60 {offsets = [0, 0, 8, 0], sizes = [2, 2, 64, 4], strides = [1, 1, 1, 1]} : vector<2x2x80x4xbf16> to vector<2x2x64x4xbf16>
      %68 = vector.shape_cast %67 : vector<2x2x64x4xbf16> to vector<256x4xbf16>
      %c2_61 = arith.constant 2 : index
      %c1_62 = arith.constant 1 : index
      %c0_63 = arith.constant 0 : index
      %c0_64 = arith.constant 0 : index
      %69 = vector.load %arg2[%c2_61, %c1_62, %c0_63, %c0_64] : memref<3x3x4x64xbf16, #tpu.memory_space<vmem>>, vector<1x1x4x64xbf16>
      %70 = vector.shape_cast %69 : vector<1x1x4x64xbf16> to vector<4x64xbf16>
      %cst_65 = arith.constant dense<0.000000e+00> : vector<256x64xf32>
      %71 = tpu.matmul %68, %70, %cst_65 {dimension_numbers = #tpu.dot_dimension_numbers<[1], [0], [0], [1], [0, 0, 1, 1], [], []>} : vector<256x4xbf16>, vector<4x64xbf16>, vector<256x64xf32> -> vector<256x64xf32>
      %72 = arith.addf %66, %71 : vector<256x64xf32>
      %73 = vector.extract_strided_slice %60 {offsets = [0, 0, 9, 0], sizes = [2, 2, 64, 4], strides = [1, 1, 1, 1]} : vector<2x2x80x4xbf16> to vector<2x2x64x4xbf16>
      %74 = vector.shape_cast %73 : vector<2x2x64x4xbf16> to vector<256x4xbf16>
      %c2_66 = arith.constant 2 : index
      %c2_67 = arith.constant 2 : index
      %c0_68 = arith.constant 0 : index
      %c0_69 = arith.constant 0 : index
      %75 = vector.load %arg2[%c2_66, %c2_67, %c0_68, %c0_69] : memref<3x3x4x64xbf16, #tpu.memory_space<vmem>>, vector<1x1x4x64xbf16>
      %76 = vector.shape_cast %75 : vector<1x1x4x64xbf16> to vector<4x64xbf16>
      %cst_70 = arith.constant dense<0.000000e+00> : vector<256x64xf32>
      %77 = tpu.matmul %74, %76, %cst_70 {dimension_numbers = #tpu.dot_dimension_numbers<[1], [0], [0], [1], [0, 0, 1, 1], [], []>} : vector<256x4xbf16>, vector<4x64xbf16>, vector<256x64xf32> -> vector<256x64xf32>
      %78 = arith.addf %72, %77 : vector<256x64xf32>
      %cst_71 = arith.constant 0.000000e+00 : f32
      %79 = vector.broadcast %cst_71 : f32 to vector<256x64xf32>
      %80 = arith.maximumf %78, %79 : vector<256x64xf32>
      %81 = vector.shape_cast %80 : vector<256x64xf32> to vector<2x2x64x64xf32>
      %82 = arith.truncf %81 : vector<2x2x64x64xf32> to vector<2x2x64x64xbf16>
      %c0_72 = arith.constant 0 : index
      %83 = arith.index_cast %13 : i32 to index
      %c0_73 = arith.constant 0 : index
      %c0_74 = arith.constant 0 : index
      %84 = vector.load %arg4[%c0_72, %83, %c0_73, %c0_74] : memref<2x64x64x64xbf16, #tpu.memory_space<vmem>>, vector<2x2x64x64xbf16>
      tpu.vector_store %arg4[%c0_72, %83, %c0_73, %c0_74], %82 {strides = array<i32>} : memref<2x64x64x64xbf16, #tpu.memory_space<vmem>>, vector<2x2x64x64xbf16>,
    }
    %c32_i32_11 = arith.constant 32 : i32
    return
  }
  func.func @transform_0(%arg0: i32) -> (i32, i32, i32, i32) {
    %c0_i32 = arith.constant 0 : i32
    %c0_i32_0 = arith.constant 0 : i32
    %c0_i32_1 = arith.constant 0 : i32
    %c0_i32_2 = arith.constant 0 : i32
    %c0_i32_3 = arith.constant 0 : i32
    return %c0_i32, %c0_i32_0, %c0_i32_1, %c0_i32_2 : i32, i32, i32, i32
  }
  func.func @transform_1(%arg0: i32) -> (i32, i32, i32, i32) {
    %c0_i32 = arith.constant 0 : i32
    %c0_i32_0 = arith.constant 0 : i32
    %c0_i32_1 = arith.constant 0 : i32
    %c0_i32_2 = arith.constant 0 : i32
    return %c0_i32, %c0_i32_0, %c0_i32_1, %arg0 : i32, i32, i32, i32
  }
  func.func @transform_2(%arg0: i32) -> (i32, i32) {
    %c0_i32 = arith.constant 0 : i32
    %c0_i32_0 = arith.constant 0 : i32
    return %c0_i32, %arg0 : i32, i32
  }
  func.func @transform_3(%arg0: i32) -> (i32, i32, i32, i32) {
    %c0_i32 = arith.constant 0 : i32
    %c0_i32_0 = arith.constant 0 : i32
    %c0_i32_1 = arith.constant 0 : i32
    %c0_i32_2 = arith.constant 0 : i32
    return %c0_i32, %c0_i32_0, %c0_i32_1, %arg0 : i32, i32, i32, i32
  }
}

</mosaic_0001>

<bundles_post_ra>
// kernel: tpu_custom_call.1
= control target key start
LH: loop header
LB: loop body
LE: loop exit
PB: predicated region body
PF: predicated region fallthrough
CT: control target
= control target key end

     0   :  { %vm16_vm0 = vcmask 31744   ;;  %s16583_s0 = inlined_call_operand.vmem [shape: bf16[2,64,64,4], index: 0, kind: input, shape index: {}]   ;;  %s16584_s1 = inlined_call_operand.vmem [shape: bf16[3,3,4,64], index: 1, kind: input, shape index: {}]   ;;  %s16585_s2 = inlined_call_operand.vmem [shape: f32[1,64], index: 2, kind: input, shape index: {}]   ;;  %s16586_s3 = inlined_call_operand.hbm [shape: bf16[2,64,64,64], index: 3, kind: output, shape index: {}]  }
   0x1   :  { %v11512_v0 = vld [vmem:[%s16585_s2] ss:$0 sm:$0xff] }
   0x2   :  { %16662 = vst [vmem:[#allocation6_spill] sm:$0xff] %v11512_v0 }
   0x3   :  { %8 = vsyncpa [#allocation4], 0  ;;  %v11485_v1 = vmov 0   ;;  %v10807_v2 = vld [vmem:[%s16583_s0] ss:$0 sps:$4 sm:$0xff]   ;;  %vm5030_vm1 = vcmask 31748  }
   0x4   :  { %22 = vst.msk [vmem:[#allocation2 + $0x28] sm:$0xff] %vm16_vm0, %v11485_v1  ;;  %17 = vst.msk [vmem:[#allocation2] sm:$0xff] %vm16_vm0, %v11485_v1  ;;  %v10808_v3 = vld [vmem:[%s16583_s0 + $0x4] sm:$0xff]   ;;  %v10809_v4 = vld [vmem:[%s16583_s0 + $0xc] sm:$0xff]   ;;  %vm5035_vm2 = vcmask 27648   ;;  %s15394_s6 = smov 0  }
   0x5   :  { %18 = vst.msk [vmem:[#allocation2 + $0x8] sm:$0xff] %vm16_vm0, %v11485_v1  ;;  %19 = vst.msk [vmem:[#allocation2 + $0x10] sm:$0xff] %vm16_vm0, %v11485_v1  ;;  %v10810_v5 = vld [vmem:[%s16583_s0 + $0x14] sm:$0xff]   ;;  %v10811_v6 = vld [vmem:[%s16583_s0 + $0x1c] ss:$0 sps:$4 sm:$0xff]  }
   0x6   :  { %20 = vst.msk [vmem:[#allocation2 + $0x18] sm:$0xff] %vm16_vm0, %v11485_v1  ;;  %21 = vst.msk [vmem:[#allocation2 + $0x20] sm:$0xff] %vm16_vm0, %v11485_v1  ;;  %v10812_v7 = vld [vmem:[%s16583_s0 + $0x20] ss:$0 sps:$4 sm:$0xff]   ;;  %v10813_v8 = vld [vmem:[%s16583_s0 + $0x24] sm:$0xff]  }
   0x7   :  { %23 = vst.msk [vmem:[#allocation2 + $0x30] sm:$0xff] %vm16_vm0, %v11485_v1  ;;  %24 = vst.msk [vmem:[#allocation2 + $0x38] sm:$0xff] %vm16_vm0, %v11485_v1  ;;  %v10814_v9 = vld [vmem:[%s16583_s0 + $0x2c] sm:$0xff]   ;;  %v10815_v10 = vld [vmem:[%s16583_s0 + $0x34] sm:$0xff]  }
   0x8   :  { %25 = vst.msk [vmem:[#allocation2 + $0x40] sm:$0xff] %vm16_vm0, %v11485_v1  ;;  %26 = vst.msk [vmem:[#allocation2 + $0x48] sm:$0xff] %vm16_vm0, %v11485_v1  ;;  %v10816_v11 = vld [vmem:[%s16583_s0 + $0x3c] ss:$0 sps:$4 sm:$0xff]   ;;  %v10817_v12 = vld [vmem:[%s16583_s0 + $0x40] ss:$0 sps:$4 sm:$0xff]  }
   0x9   :  { %27 = vst.msk [vmem:[#allocation2 + $0x50] sm:$0xff] %vm16_vm0, %v11485_v1  ;;  %28 = vst.msk [vmem:[#allocation2 + $0x58] sm:$0xff] %vm16_vm0, %v11485_v1  ;;  %v10818_v13 = vld [vmem:[%s16583_s0 + $0x44] sm:$0xff]   ;;  %v10819_v14 = vld [vmem:[%s16583_s0 + $0x4c] sm:$0xff]  }
   0xa   :  { %29 = vst.msk [vmem:[#allocation2 + $0x60] sm:$0xff] %vm16_vm0, %v11485_v1  ;;  %30 = vst.msk [vmem:[#allocation2 + $0x68] sm:$0xff] %vm16_vm0, %v11485_v1  ;;  %v10820_v15 = vld [vmem:[%s16583_s0 + $0x54] sm:$0xff]   ;;  %v10821_v16 = vld [vmem:[%s16583_s0 + $0x5c] ss:$0 sps:$4 sm:$0xff]  }
   0xb   :  { %31 = vst.msk [vmem:[#allocation2 + $0x70] sm:$0xff] %vm16_vm0, %v11485_v1  ;;  %32 = vst.msk [vmem:[#allocation2 + $0x78] sm:$0xff] %vm16_vm0, %v11485_v1  ;;  %v10822_v17 = vld [vmem:[%s16583_s0 + $0x60] ss:$0 sps:$4 sm:$0xff]   ;;  %v10823_v18 = vld [vmem:[%s16583_s0 + $0x64] sm:$0xff]  }
   0xc   :  { %33 = vst.msk [vmem:[#allocation2 + $0x80] sm:$0xff] %vm16_vm0, %v11485_v1  ;;  %34 = vst.msk [vmem:[#allocation2 + $0x88] sm:$0xff] %vm16_vm0, %v11485_v1  ;;  %v10824_v19 = vld [vmem:[%s16583_s0 + $0x6c] sm:$0xff]   ;;  %v10825_v20 = vld [vmem:[%s16583_s0 + $0x74] sm:$0xff]  }
   0xd   :  { %35 = vst.msk [vmem:[#allocation2 + $0x90] sm:$0xff] %vm16_vm0, %v11485_v1  ;;  %36 = vst.msk [vmem:[#allocation2 + $0x98] sm:$0xff] %vm16_vm0, %v11485_v1  ;;  %v10826_v21 = vld [vmem:[%s16583_s0 + $0x7c] ss:$0 sps:$4 sm:$0xff]   ;;  %v10827_v22 = vld [vmem:[%s16583_s0 + $0x80] ss:$0 sps:$4 sm:$0xff]  }
   0xe   :  { %37 = vst.msk [vmem:[#allocation2 + $0xa0] sm:$0xff] %vm16_vm0, %v11485_v1  ;;  %38 = vst.msk [vmem:[#allocation2 + $0xa8] sm:$0xff] %vm16_vm0, %v11485_v1  ;;  %v10828_v23 = vld [vmem:[%s16583_s0 + $0x84] sm:$0xff]   ;;  %v10829_v24 = vld [vmem:[%s16583_s0 + $0x8c] sm:$0xff]  }
   0xf   :  { %39 = vst.msk [vmem:[#allocation2 + $0xb0] sm:$0xff] %vm16_vm0, %v11485_v1  ;;  %40 = vst.msk [vmem:[#allocation2 + $0xb8] sm:$0xff] %vm16_vm0, %v11485_v1  ;;  %v10830_v25 = vld [vmem:[%s16583_s0 + $0x94] sm:$0xff]   ;;  %v10831_v26 = vld [vmem:[%s16583_s0 + $0x9c] ss:$0 sps:$4 sm:$0xff]  }
  0x10   :  { %41 = vst.msk [vmem:[#allocation2 + $0xc0] sm:$0xff] %vm16_vm0, %v11485_v1  ;;  %42 = vst.msk [vmem:[#allocation2 + $0xc8] sm:$0xff] %vm16_vm0, %v11485_v1  ;;  %v10832_v27 = vld [vmem:[%s16583_s0 + $0xa0] ss:$0 sps:$4 sm:$0xff]   ;;  %v10833_v28 = vld [vmem:[%s16583_s0 + $0xa4] sm:$0xff]  }
  0x11   :  { %43 = vst.msk [vmem:[#allocation2 + $0xd0] sm:$0xff] %vm16_vm0, %v11485_v1  ;;  %44 = vst.msk [vmem:[#allocation2 + $0xd8] sm:$0xff] %vm16_vm0, %v11485_v1  ;;  %v10834_v29 = vld [vmem:[%s16583_s0 + $0xac] sm:$0xff]   ;;  %v10835_v30 = vld [vmem:[%s16583_s0 + $0xb4] sm:$0xff]  }
  0x12   :  { %45 = vst.msk [vmem:[#allocation2 + $0xe0] sm:$0xff] %vm16_vm0, %v11485_v1  ;;  %46 = vst.msk [vmem:[#allocation2 + $0xe8] sm:$0xff] %vm16_vm0, %v11485_v1  ;;  %v10836_v31 = vld [vmem:[%s16583_s0 + $0xbc] ss:$0 sps:$4 sm:$0xff]   ;;  %v10837_v32 = vld [vmem:[%s16583_s0 + $0xc0] ss:$0 sps:$4 sm:$0xff]  }
  0x13   :  { %47 = vst.msk [vmem:[#allocation2 + $0xf0] sm:$0xff] %vm16_vm0, %v11485_v1  ;;  %48 = vst.msk [vmem:[#allocation2 + $0xf8] sm:$0xff] %vm16_vm0, %v11485_v1  ;;  %v10838_v33 = vld [vmem:[%s16583_s0 + $0xc4] sm:$0xff]   ;;  %v10839_v34 = vld [vmem:[%s16583_s0 + $0xcc] sm:$0xff]  }
  0x14   :  { %49 = vst.msk [vmem:[#allocation2 + $0x100] sm:$0xff] %vm16_vm0, %v11485_v1  ;;  %50 = vst.msk [vmem:[#allocation2 + $0x108] sm:$0xff] %vm16_vm0, %v11485_v1  ;;  %v10840_v35 = vld [vmem:[%s16583_s0 + $0xd4] sm:$0xff]   ;;  %v10841_v36 = vld [vmem:[%s16583_s0 + $0xdc] ss:$0 sps:$4 sm:$0xff]  }
  0x15   :  { %51 = vst.msk [vmem:[#allocation2 + $0x110] sm:$0xff] %vm16_vm0, %v11485_v1  ;;  %52 = vst.msk [vmem:[#allocation2 + $0x118] sm:$0xff] %vm16_vm0, %v11485_v1  ;;  %v10842_v37 = vld [vmem:[%s16583_s0 + $0xe0] ss:$0 sps:$4 sm:$0xff]   ;;  %v10843_v38 = vld [vmem:[%s16583_s0 + $0xe4] sm:$0xff]  }
  0x16   :  { %53 = vst.msk [vmem:[#allocation2 + $0x120] sm:$0xff] %vm16_vm0, %v11485_v1  ;;  %54 = vst.msk [vmem:[#allocation2 + $0x128] sm:$0xff] %vm16_vm0, %v11485_v1  ;;  %v10844_v39 = vld [vmem:[%s16583_s0 + $0xec] sm:$0xff]   ;;  %v10845_v40 = vld [vmem:[%s16583_s0 + $0xf4] sm:$0xff]  }
  0x17   :  { %55 = vst.msk [vmem:[#allocation2 + $0x130] sm:$0xff] %vm16_vm0, %v11485_v1  ;;  %56 = vst.msk [vmem:[#allocation2 + $0x138] sm:$0xff] %vm16_vm0, %v11485_v1  ;;  %v10846_v41 = vld [vmem:[%s16583_s0 + $0xfc] ss:$0 sps:$4 sm:$0xff]   ;;  %v10847_v42 = vld [vmem:[%s16583_s0 + $0x100] ss:$0 sps:$4 sm:$0xff]  }
  0x18   :  { %57 = vst.msk [vmem:[#allocation2 + $0x140] sm:$0xff] %vm16_vm0, %v11485_v1  ;;  %58 = vst.msk [vmem:[#allocation2 + $0x148] sm:$0xff] %vm16_vm0, %v11485_v1  ;;  %v10848_v43 = vld [vmem:[%s16583_s0 + $0x104] sm:$0xff]   ;;  %v10849_v44 = vld [vmem:[%s16583_s0 + $0x10c] sm:$0xff]  }
  0x19   :  { %59 = vst.msk [vmem:[#allocation2 + $0x150] sm:$0xff] %vm16_vm0, %v11485_v1  ;;  %60 = vst.msk [vmem:[#allocation2 + $0x158] sm:$0xff] %vm16_vm0, %v11485_v1  ;;  %v10850_v45 = vld [vmem:[%s16583_s0 + $0x114] sm:$0xff]   ;;  %v10851_v46 = vld [vmem:[%s16583_s0 + $0x11c] ss:$0 sps:$4 sm:$0xff]  }
  0x1a   :  { %61 = vst.msk [vmem:[#allocation2 + $0x160] sm:$0xff] %vm16_vm0, %v11485_v1  ;;  %62 = vst.msk [vmem:[#allocation2 + $0x168] sm:$0xff] %vm16_vm0, %v11485_v1  ;;  %v10852_v47 = vld [vmem:[%s16583_s0 + $0x120] ss:$0 sps:$4 sm:$0xff]   ;;  %v10853_v48 = vld [vmem:[%s16583_s0 + $0x124] sm:$0xff]  }
  0x1b   :  { %63 = vst.msk [vmem:[#allocation2 + $0x170] sm:$0xff] %vm16_vm0, %v11485_v1  ;;  %64 = vst.msk [vmem:[#allocation2 + $0x178] sm:$0xff] %vm16_vm0, %v11485_v1  ;;  %v10854_v49 = vld [vmem:[%s16583_s0 + $0x12c] sm:$0xff]   ;;  %v10855_v50 = vld [vmem:[%s16583_s0 + $0x134] sm:$0xff]  }
  0x1c   :  { %65 = vst.msk [vmem:[#allocation2 + $0x180] sm:$0xff] %vm16_vm0, %v11485_v1  ;;  %66 = vst.msk [vmem:[#allocation2 + $0x188] sm:$0xff] %vm16_vm0, %v11485_v1  ;;  %v10856_v51 = vld [vmem:[%s16583_s0 + $0x13c] ss:$0 sps:$4 sm:$0xff]   ;;  %v10857_v52 = vld [vmem:[%s16583_s0 + $0x140] ss:$0 sps:$4 sm:$0xff]  }
  0x1d   :  { %67 = vst.msk [vmem:[#allocation2 + $0x190] sm:$0xff] %vm16_vm0, %v11485_v1  ;;  %68 = vst.msk [vmem:[#allocation2 + $0x198] sm:$0xff] %vm16_vm0, %v11485_v1  ;;  %v10858_v53 = vld [vmem:[%s16583_s0 + $0x144] sm:$0xff]   ;;  %v10859_v54 = vld [vmem:[%s16583_s0 + $0x14c] sm:$0xff]  }
  0x1e   :  { %69 = vst.msk [vmem:[#allocation2 + $0x1a0] sm:$0xff] %vm16_vm0, %v11485_v1  ;;  %70 = vst.msk [vmem:[#allocation2 + $0x1a8] sm:$0xff] %vm16_vm0, %v11485_v1  ;;  %v10860_v55 = vld [vmem:[%s16583_s0 + $0x154] sm:$0xff]   ;;  %v10861_v56 = vld [vmem:[%s16583_s0 + $0x15c] ss:$0 sps:$4 sm:$0xff]  }
  0x1f   :  { %71 = vst.msk [vmem:[#allocation2 + $0x1b0] sm:$0xff] %vm16_vm0, %v11485_v1  ;;  %72 = vst.msk [vmem:[#allocation2 + $0x1b8] sm:$0xff] %vm16_vm0, %v11485_v1  ;;  %v10862_v57 = vld [vmem:[%s16583_s0 + $0x160] ss:$0 sps:$4 sm:$0xff]   ;;  %v10863_v58 = vld [vmem:[%s16583_s0 + $0x164] sm:$0xff]  }
  0x20   :  { %73 = vst.msk [vmem:[#allocation2 + $0x1c0] sm:$0xff] %vm16_vm0, %v11485_v1  ;;  %74 = vst.msk [vmem:[#allocation2 + $0x1c8] sm:$0xff] %vm16_vm0, %v11485_v1  ;;  %v10864_v59 = vld [vmem:[%s16583_s0 + $0x16c] sm:$0xff]   ;;  %v10865_v60 = vld [vmem:[%s16583_s0 + $0x174] sm:$0xff]  }
  0x21   :  { %75 = vst.msk [vmem:[#allocation2 + $0x1d0] sm:$0xff] %vm16_vm0, %v11485_v1  ;;  %76 = vst.msk [vmem:[#allocation2 + $0x1d8] sm:$0xff] %vm16_vm0, %v11485_v1  ;;  %v10866_v61 = vld [vmem:[%s16583_s0 + $0x17c] ss:$0 sps:$4 sm:$0xff]   ;;  %v10867_v62 = vld [vmem:[%s16583_s0 + $0x180] ss:$0 sps:$4 sm:$0xff]  }
  0x22   :  { %77 = vst.msk [vmem:[#allocation2 + $0x1e0] sm:$0xff] %vm16_vm0, %v11485_v1  ;;  %78 = vst.msk [vmem:[#allocation2 + $0x1e8] sm:$0xff] %vm16_vm0, %v11485_v1  ;;  %v10868_v63 = vld [vmem:[%s16583_s0 + $0x184] sm:$0xff]  }
  0x23   :  { %79 = vst.msk [vmem:[#allocation2 + $0x1f0] sm:$0xff] %vm16_vm0, %v11485_v1  ;;  %80 = vst.msk [vmem:[#allocation2 + $0x1f8] sm:$0xff] %vm16_vm0, %v11485_v1 }
  0x24   :  { %81 = vst.msk [vmem:[#allocation2 + $0x200] sm:$0xff] %vm16_vm0, %v11485_v1  ;;  %82 = vst.msk [vmem:[#allocation2 + $0x208] sm:$0xff] %vm16_vm0, %v11485_v1 }
  0x25   :  { %83 = vst.msk [vmem:[#allocation2 + $0x210] sm:$0xff] %vm16_vm0, %v11485_v1  ;;  %84 = vst.msk [vmem:[#allocation2 + $0x218] sm:$0xff] %vm16_vm0, %v11485_v1 }
  0x26   :  { %85 = vst.msk [vmem:[#allocation2 + $0x220] sm:$0xff] %vm16_vm0, %v11485_v1  ;;  %86 = vst.msk [vmem:[#allocation2 + $0x228] sm:$0xff] %vm16_vm0, %v11485_v1 }
  0x27   :  { %87 = vst.msk [vmem:[#allocation2 + $0x230] sm:$0xff] %vm16_vm0, %v11485_v1  ;;  %88 = vst.msk [vmem:[#allocation2 + $0x238] sm:$0xff] %vm16_vm0, %v11485_v1 }
  0x28   :  { %89 = vst.msk [vmem:[#allocation2 + $0x240] sm:$0xff] %vm16_vm0, %v11485_v1  ;;  %90 = vst.msk [vmem:[#allocation2 + $0x248] sm:$0xff] %vm16_vm0, %v11485_v1 }
  0x29   :  { %91 = vst.msk [vmem:[#allocation2 + $0x250] sm:$0xff] %vm16_vm0, %v11485_v1  ;;  %92 = vst.msk [vmem:[#allocation2 + $0x258] sm:$0xff] %vm16_vm0, %v11485_v1 }
  0x2a   :  { %93 = vst.msk [vmem:[#allocation2 + $0x260] sm:$0xff] %vm16_vm0, %v11485_v1  ;;  %94 = vst.msk [vmem:[#allocation2 + $0x268] sm:$0xff] %vm16_vm0, %v11485_v1 }
  0x2b   :  { %95 = vst.msk [vmem:[#allocation2 + $0x270] sm:$0xff] %vm16_vm0, %v11485_v1  ;;  %96 = vst.msk [vmem:[#allocation2 + $0x278] sm:$0xff] %vm16_vm0, %v11485_v1 }
  0x2c   :  { %97 = vst.msk [vmem:[#allocation2 + $0x280] sm:$0xff] %vm16_vm0, %v11485_v1  ;;  %98 = vst.msk [vmem:[#allocation2 + $0x288] sm:$0xff] %vm16_vm0, %v11485_v1 }
  0x2d   :  { %99 = vst.msk [vmem:[#allocation2 + $0x290] sm:$0xff] %vm16_vm0, %v11485_v1  ;;  %100 = vst.msk [vmem:[#allocation2 + $0x298] sm:$0xff] %vm16_vm0, %v11485_v1 }
  0x2e   :  { %101 = vst.msk [vmem:[#allocation2 + $0x2a0] sm:$0xff] %vm16_vm0, %v11485_v1  ;;  %102 = vst.msk [vmem:[#allocation2 + $0x2a8] sm:$0xff] %vm16_vm0, %v11485_v1 }
  0x2f   :  { %103 = vst.msk [vmem:[#allocation2 + $0x2b0] sm:$0xff] %vm16_vm0, %v11485_v1  ;;  %104 = vst.msk [vmem:[#allocation2 + $0x2b8] sm:$0xff] %vm16_vm0, %v11485_v1 }
  0x30   :  { %105 = vst.msk [vmem:[#allocation2 + $0x2c0] sm:$0xff] %vm16_vm0, %v11485_v1  ;;  %106 = vst.msk [vmem:[#allocation2 + $0x2c8] sm:$0xff] %vm16_vm0, %v11485_v1 }
  0x31   :  { %107 = vst.msk [vmem:[#allocation2 + $0x2d0] sm:$0xff] %vm16_vm0, %v11485_v1  ;;  %108 = vst.msk [vmem:[#allocation2 + $0x2d8] sm:$0xff] %vm16_vm0, %v11485_v1 }
  0x32   :  { %109 = vst.msk [vmem:[#allocation2 + $0x2e0] sm:$0xff] %vm16_vm0, %v11485_v1  ;;  %110 = vst.msk [vmem:[#allocation2 + $0x2e8] sm:$0xff] %vm16_vm0, %v11485_v1 }
  0x33   :  { %111 = vst.msk [vmem:[#allocation2 + $0x2f0] sm:$0xff] %vm16_vm0, %v11485_v1  ;;  %112 = vst.msk [vmem:[#allocation2 + $0x2f8] sm:$0xff] %vm16_vm0, %v11485_v1 }
  0x34   :  { %113 = vst.msk [vmem:[#allocation2 + $0x300] sm:$0xff] %vm16_vm0, %v11485_v1  ;;  %114 = vst.msk [vmem:[#allocation2 + $0x308] sm:$0xff] %vm16_vm0, %v11485_v1 }
  0x35   :  { %115 = vst.msk [vmem:[#allocation2 + $0x310] sm:$0xff] %vm16_vm0, %v11485_v1  ;;  %116 = vst.msk [vmem:[#allocation2 + $0x318] sm:$0xff] %vm16_vm0, %v11485_v1 }
  0x36   :  { %117 = vst.msk [vmem:[#allocation2 + $0x320] sm:$0xff] %vm16_vm0, %v11485_v1  ;;  %118 = vst.msk [vmem:[#allocation2 + $0x328] sm:$0xff] %vm16_vm0, %v11485_v1 }
  0x37   :  { %119 = vst.msk [vmem:[#allocation2 + $0x330] sm:$0xff] %vm16_vm0, %v11485_v1  ;;  %120 = vst.msk [vmem:[#allocation2 + $0x338] sm:$0xff] %vm16_vm0, %v11485_v1 }
  0x38   :  { %121 = vst.msk [vmem:[#allocation2 + $0x340] sm:$0xff] %vm16_vm0, %v11485_v1  ;;  %122 = vst.msk [vmem:[#allocation2 + $0x348] sm:$0xff] %vm16_vm0, %v11485_v1 }
  0x39   :  { %123 = vst.msk [vmem:[#allocation2 + $0x350] sm:$0xff] %vm16_vm0, %v11485_v1  ;;  %124 = vst.msk [vmem:[#allocation2 + $0x358] sm:$0xff] %vm16_vm0, %v11485_v1 }
  0x3a   :  { %125 = vst.msk [vmem:[#allocation2 + $0x360] sm:$0xff] %vm16_vm0, %v11485_v1  ;;  %126 = vst.msk [vmem:[#allocation2 + $0x368] sm:$0xff] %vm16_vm0, %v11485_v1 }
  0x3b   :  { %127 = vst.msk [vmem:[#allocation2 + $0x370] sm:$0xff] %vm16_vm0, %v11485_v1  ;;  %128 = vst.msk [vmem:[#allocation2 + $0x378] sm:$0xff] %vm16_vm0, %v11485_v1 }
  0x3c   :  { %129 = vst.msk [vmem:[#allocation2 + $0x380] sm:$0xff] %vm16_vm0, %v11485_v1  ;;  %130 = vst.msk [vmem:[#allocation2 + $0x388] sm:$0xff] %vm16_vm0, %v11485_v1 }
  0x3d   :  { %131 = vst.msk [vmem:[#allocation2 + $0x390] sm:$0xff] %vm16_vm0, %v11485_v1  ;;  %132 = vst.msk [vmem:[#allocation2 + $0x398] sm:$0xff] %vm16_vm0, %v11485_v1 }
  0x3e   :  { %133 = vst.msk [vmem:[#allocation2 + $0x3a0] sm:$0xff] %vm16_vm0, %v11485_v1  ;;  %134 = vst.msk [vmem:[#allocation2 + $0x3a8] sm:$0xff] %vm16_vm0, %v11485_v1 }
  0x3f   :  { %135 = vst.msk [vmem:[#allocation2 + $0x3b0] sm:$0xff] %vm16_vm0, %v11485_v1  ;;  %136 = vst.msk [vmem:[#allocation2 + $0x3b8] sm:$0xff] %vm16_vm0, %v11485_v1 }
  0x40   :  { %137 = vst.msk [vmem:[#allocation2 + $0x3c0] sm:$0xff] %vm16_vm0, %v11485_v1  ;;  %138 = vst.msk [vmem:[#allocation2 + $0x3c8] sm:$0xff] %vm16_vm0, %v11485_v1 }
  0x41   :  { %139 = vst.msk [vmem:[#allocation2 + $0x3d0] sm:$0xff] %vm16_vm0, %v11485_v1  ;;  %140 = vst.msk [vmem:[#allocation2 + $0x3d8] sm:$0xff] %vm16_vm0, %v11485_v1 }
  0x42   :  { %141 = vst.msk [vmem:[#allocation2 + $0x3e0] sm:$0xff] %vm16_vm0, %v11485_v1  ;;  %142 = vst.msk [vmem:[#allocation2 + $0x3e8] sm:$0xff] %vm16_vm0, %v11485_v1 }
  0x43   :  { %143 = vst.msk [vmem:[#allocation2 + $0x3f0] sm:$0xff] %vm16_vm0, %v11485_v1  ;;  %144 = vst.msk [vmem:[#allocation2 + $0x3f8] sm:$0xff] %vm16_vm0, %v11485_v1 }
  0x44   :  { %145 = vst.msk [vmem:[#allocation2 + $0x400] sm:$0xff] %vm16_vm0, %v11485_v1  ;;  %146 = vst.msk [vmem:[#allocation2 + $0x408] sm:$0xff] %vm16_vm0, %v11485_v1 }
  0x45   :  { %147 = vst.msk [vmem:[#allocation2 + $0x410] sm:$0xff] %vm16_vm0, %v11485_v1  ;;  %148 = vst.msk [vmem:[#allocation2 + $0x418] sm:$0xff] %vm16_vm0, %v11485_v1 }
  0x46   :  { %149 = vst.msk [vmem:[#allocation2 + $0x420] sm:$0xff] %vm16_vm0, %v11485_v1  ;;  %150 = vst.msk [vmem:[#allocation2 + $0x428] sm:$0xff] %vm16_vm0, %v11485_v1 }
  0x47   :  { %151 = vst.msk [vmem:[#allocation2 + $0x430] sm:$0xff] %vm16_vm0, %v11485_v1  ;;  %152 = vst.msk [vmem:[#allocation2 + $0x438] sm:$0xff] %vm16_vm0, %v11485_v1 }
  0x48   :  { %153 = vst.msk [vmem:[#allocation2 + $0x440] sm:$0xff] %vm16_vm0, %v11485_v1  ;;  %154 = vst.msk [vmem:[#allocation2 + $0x448] sm:$0xff] %vm16_vm0, %v11485_v1 }
  0x49   :  { %155 = vst.msk [vmem:[#allocation2 + $0x450] sm:$0xff] %vm16_vm0, %v11485_v1  ;;  %156 = vst.msk [vmem:[#allocation2 + $0x458] sm:$0xff] %vm16_vm0, %v11485_v1 }
  0x4a   :  { %157 = vst.msk [vmem:[#allocation2 + $0x460] sm:$0xff] %vm16_vm0, %v11485_v1  ;;  %158 = vst.msk [vmem:[#allocation2 + $0x468] sm:$0xff] %vm16_vm0, %v11485_v1 }
  0x4b   :  { %159 = vst.msk [vmem:[#allocation2 + $0x470] sm:$0xff] %vm16_vm0, %v11485_v1  ;;  %160 = vst.msk [vmem:[#allocation2 + $0x478] sm:$0xff] %vm16_vm0, %v11485_v1 }
  0x4c   :  { %161 = vst.msk [vmem:[#allocation2 + $0x480] sm:$0xff] %vm16_vm0, %v11485_v1  ;;  %162 = vst.msk [vmem:[#allocation2 + $0x488] sm:$0xff] %vm16_vm0, %v11485_v1 }
  0x4d   :  { %163 = vst.msk [vmem:[#allocation2 + $0x490] sm:$0xff] %vm16_vm0, %v11485_v1  ;;  %164 = vst.msk [vmem:[#allocation2 + $0x498] sm:$0xff] %vm16_vm0, %v11485_v1 }
  0x4e   :  { %165 = vst.msk [vmem:[#allocation2 + $0x4a0] sm:$0xff] %vm16_vm0, %v11485_v1  ;;  %166 = vst.msk [vmem:[#allocation2 + $0x4a8] sm:$0xff] %vm16_vm0, %v11485_v1 }
  0x4f   :  { %167 = vst.msk [vmem:[#allocation2 + $0x4b0] sm:$0xff] %vm16_vm0, %v11485_v1  ;;  %168 = vst.msk [vmem:[#allocation2 + $0x4b8] sm:$0xff] %vm16_vm0, %v11485_v1 }
  0x50   :  { %169 = vst.msk [vmem:[#allocation2 + $0x4c0] sm:$0xff] %vm16_vm0, %v11485_v1  ;;  %170 = vst.msk [vmem:[#allocation2 + $0x4c8] sm:$0xff] %vm16_vm0, %v11485_v1 }
  0x51   :  { %171 = vst.msk [vmem:[#allocation2 + $0x4d0] sm:$0xff] %vm16_vm0, %v11485_v1  ;;  %172 = vst.msk [vmem:[#allocation2 + $0x4d8] sm:$0xff] %vm16_vm0, %v11485_v1 }
  0x52   :  { %173 = vst.msk [vmem:[#allocation2 + $0x4e0] sm:$0xff] %vm16_vm0, %v11485_v1  ;;  %174 = vst.msk [vmem:[#allocation2 + $0x4e8] sm:$0xff] %vm16_vm0, %v11485_v1 }
  0x53   :  { %175 = vst.msk [vmem:[#allocation2 + $0x4f0] sm:$0xff] %vm16_vm0, %v11485_v1  ;;  %176 = vst.msk [vmem:[#allocation2 + $0x4f8] sm:$0xff] %vm16_vm0, %v11485_v1 }
  0x54   :  { %177 = vst.msk [vmem:[#allocation2 + $0x500] sm:$0xff] %vm16_vm0, %v11485_v1  ;;  %178 = vst.msk [vmem:[#allocation2 + $0x508] sm:$0xff] %vm16_vm0, %v11485_v1 }
  0x55   :  { %179 = vst.msk [vmem:[#allocation2 + $0x510] sm:$0xff] %vm16_vm0, %v11485_v1  ;;  %180 = vst.msk [vmem:[#allocation2 + $0x518] sm:$0xff] %vm16_vm0, %v11485_v1 }
  0x56   :  { %181 = vst.msk [vmem:[#allocation2 + $0x520] sm:$0xff] %vm16_vm0, %v11485_v1  ;;  %182 = vst.msk [vmem:[#allocation2 + $0x528] sm:$0xff] %vm16_vm0, %v11485_v1 }
  0x57   :  { %183 = vst.msk [vmem:[#allocation2 + $0x530] sm:$0xff] %vm16_vm0, %v11485_v1  ;;  %184 = vst.msk [vmem:[#allocation2 + $0x538] sm:$0xff] %vm16_vm0, %v11485_v1 }
  0x58   :  { %185 = vst.msk [vmem:[#allocation2 + $0x540] sm:$0xff] %vm16_vm0, %v11485_v1  ;;  %186 = vst.msk [vmem:[#allocation2 + $0x548] sm:$0xff] %vm16_vm0, %v11485_v1 }
  0x59   :  { %187 = vst.msk [vmem:[#allocation2 + $0x550] sm:$0xff] %vm16_vm0, %v11485_v1  ;;  %188 = vst.msk [vmem:[#allocation2 + $0x558] sm:$0xff] %vm16_vm0, %v11485_v1 }
  0x5a   :  { %189 = vst.msk [vmem:[#allocation2 + $0x560] sm:$0xff] %vm16_vm0, %v11485_v1  ;;  %190 = vst.msk [vmem:[#allocation2 + $0x568] sm:$0xff] %vm16_vm0, %v11485_v1 }
  0x5b   :  { %191 = vst.msk [vmem:[#allocation2 + $0x570] sm:$0xff] %vm16_vm0, %v11485_v1  ;;  %192 = vst.msk [vmem:[#allocation2 + $0x578] sm:$0xff] %vm16_vm0, %v11485_v1 }
  0x5c   :  { %193 = vst.msk [vmem:[#allocation2 + $0x580] sm:$0xff] %vm16_vm0, %v11485_v1  ;;  %194 = vst.msk [vmem:[#allocation2 + $0x588] sm:$0xff] %vm16_vm0, %v11485_v1 }
  0x5d   :  { %195 = vst.msk [vmem:[#allocation2 + $0x590] sm:$0xff] %vm16_vm0, %v11485_v1  ;;  %196 = vst.msk [vmem:[#allocation2 + $0x598] sm:$0xff] %vm16_vm0, %v11485_v1 }
  0x5e   :  { %197 = vst.msk [vmem:[#allocation2 + $0x5a0] sm:$0xff] %vm16_vm0, %v11485_v1  ;;  %198 = vst.msk [vmem:[#allocation2 + $0x5a8] sm:$0xff] %vm16_vm0, %v11485_v1 }
  0x5f   :  { %199 = vst.msk [vmem:[#allocation2 + $0x5b0] sm:$0xff] %vm16_vm0, %v11485_v1  ;;  %200 = vst.msk [vmem:[#allocation2 + $0x5b8] sm:$0xff] %vm16_vm0, %v11485_v1 }
  0x60   :  { %201 = vst.msk [vmem:[#allocation2 + $0x5c0] sm:$0xff] %vm16_vm0, %v11485_v1  ;;  %202 = vst.msk [vmem:[#allocation2 + $0x5c8] sm:$0xff] %vm16_vm0, %v11485_v1 }
  0x61   :  { %203 = vst.msk [vmem:[#allocation2 + $0x5d0] sm:$0xff] %vm16_vm0, %v11485_v1  ;;  %204 = vst.msk [vmem:[#allocation2 + $0x5d8] sm:$0xff] %vm16_vm0, %v11485_v1 }
  0x62   :  { %205 = vst.msk [vmem:[#allocation2 + $0x5e0] sm:$0xff] %vm16_vm0, %v11485_v1  ;;  %206 = vst.msk [vmem:[#allocation2 + $0x5e8] sm:$0xff] %vm16_vm0, %v11485_v1 }
  0x63   :  { %207 = vst.msk [vmem:[#allocation2 + $0x5f0] sm:$0xff] %vm16_vm0, %v11485_v1  ;;  %208 = vst.msk [vmem:[#allocation2 + $0x5f8] sm:$0xff] %vm16_vm0, %v11485_v1 }
  0x64   :  { %209 = vst.msk [vmem:[#allocation2 + $0x600] sm:$0xff] %vm16_vm0, %v11485_v1  ;;  %210 = vst.msk [vmem:[#allocation2 + $0x608] sm:$0xff] %vm16_vm0, %v11485_v1 }
  0x65   :  { %211 = vst.msk [vmem:[#allocation2 + $0x610] sm:$0xff] %vm16_vm0, %v11485_v1  ;;  %212 = vst.msk [vmem:[#allocation2 + $0x618] sm:$0xff] %vm16_vm0, %v11485_v1 }
  0x66   :  { %213 = vst.msk [vmem:[#allocation2 + $0x620] sm:$0xff] %vm16_vm0, %v11485_v1  ;;  %214 = vst.msk [vmem:[#allocation2 + $0x628] sm:$0xff] %vm16_vm0, %v11485_v1 }
  0x67   :  { %215 = vst.msk [vmem:[#allocation2 + $0x630] sm:$0xff] %vm16_vm0, %v11485_v1  ;;  %216 = vst.msk [vmem:[#allocation2 + $0x638] sm:$0xff] %vm16_vm0, %v11485_v1 }
  0x68   :  { %217 = vst.msk [vmem:[#allocation2 + $0x640] sm:$0xff] %vm16_vm0, %v11485_v1  ;;  %218 = vst.msk [vmem:[#allocation2 + $0x648] sm:$0xff] %vm16_vm0, %v11485_v1 }
  0x69   :  { %219 = vst.msk [vmem:[#allocation2 + $0x650] sm:$0xff] %vm16_vm0, %v11485_v1  ;;  %220 = vst.msk [vmem:[#allocation2 + $0x658] sm:$0xff] %vm16_vm0, %v11485_v1 }
  0x6a   :  { %221 = vst.msk [vmem:[#allocation2 + $0x660] sm:$0xff] %vm16_vm0, %v11485_v1  ;;  %222 = vst.msk [vmem:[#allocation2 + $0x668] sm:$0xff] %vm16_vm0, %v11485_v1 }
  0x6b   :  { %223 = vst.msk [vmem:[#allocation2 + $0x670] sm:$0xff] %vm16_vm0, %v11485_v1  ;;  %224 = vst.msk [vmem:[#allocation2 + $0x678] sm:$0xff] %vm16_vm0, %v11485_v1 }
  0x6c   :  { %225 = vst.msk [vmem:[#allocation2 + $0x680] sm:$0xff] %vm16_vm0, %v11485_v1  ;;  %226 = vst.msk [vmem:[#allocation2 + $0x688] sm:$0xff] %vm16_vm0, %v11485_v1 }
  0x6d   :  { %227 = vst.msk [vmem:[#allocation2 + $0x690] sm:$0xff] %vm16_vm0, %v11485_v1  ;;  %228 = vst.msk [vmem:[#allocation2 + $0x698] sm:$0xff] %vm16_vm0, %v11485_v1 }
  0x6e   :  { %229 = vst.msk [vmem:[#allocation2 + $0x6a0] sm:$0xff] %vm16_vm0, %v11485_v1  ;;  %230 = vst.msk [vmem:[#allocation2 + $0x6a8] sm:$0xff] %vm16_vm0, %v11485_v1 }
  0x6f   :  { %231 = vst.msk [vmem:[#allocation2 + $0x6b0] sm:$0xff] %vm16_vm0, %v11485_v1  ;;  %232 = vst.msk [vmem:[#allocation2 + $0x6b8] sm:$0xff] %vm16_vm0, %v11485_v1 }
  0x70   :  { %233 = vst.msk [vmem:[#allocation2 + $0x6c0] sm:$0xff] %vm16_vm0, %v11485_v1  ;;  %234 = vst.msk [vmem:[#allocation2 + $0x6c8] sm:$0xff] %vm16_vm0, %v11485_v1 }
  0x71   :  { %235 = vst.msk [vmem:[#allocation2 + $0x6d0] sm:$0xff] %vm16_vm0, %v11485_v1  ;;  %236 = vst.msk [vmem:[#allocation2 + $0x6d8] sm:$0xff] %vm16_vm0, %v11485_v1 }
  0x72   :  { %237 = vst.msk [vmem:[#allocation2 + $0x6e0] sm:$0xff] %vm16_vm0, %v11485_v1  ;;  %238 = vst.msk [vmem:[#allocation2 + $0x6e8] sm:$0xff] %vm16_vm0, %v11485_v1 }
  0x73   :  { %239 = vst.msk [vmem:[#allocation2 + $0x6f0] sm:$0xff] %vm16_vm0, %v11485_v1  ;;  %240 = vst.msk [vmem:[#allocation2 + $0x6f8] sm:$0xff] %vm16_vm0, %v11485_v1 }
  0x74   :  { %241 = vst.msk [vmem:[#allocation2 + $0x700] sm:$0xff] %vm16_vm0, %v11485_v1  ;;  %242 = vst.msk [vmem:[#allocation2 + $0x708] sm:$0xff] %vm16_vm0, %v11485_v1 }
  0x75   :  { %243 = vst.msk [vmem:[#allocation2 + $0x710] sm:$0xff] %vm16_vm0, %v11485_v1  ;;  %244 = vst.msk [vmem:[#allocation2 + $0x718] sm:$0xff] %vm16_vm0, %v11485_v1 }
  0x76   :  { %245 = vst.msk [vmem:[#allocation2 + $0x720] sm:$0xff] %vm16_vm0, %v11485_v1  ;;  %246 = vst.msk [vmem:[#allocation2 + $0x728] sm:$0xff] %vm16_vm0, %v11485_v1 }
  0x77   :  { %247 = vst.msk [vmem:[#allocation2 + $0x730] sm:$0xff] %vm16_vm0, %v11485_v1  ;;  %248 = vst.msk [vmem:[#allocation2 + $0x738] sm:$0xff] %vm16_vm0, %v11485_v1 }
  0x78   :  { %249 = vst.msk [vmem:[#allocation2 + $0x740] sm:$0xff] %vm16_vm0, %v11485_v1  ;;  %250 = vst.msk [vmem:[#allocation2 + $0x748] sm:$0xff] %vm16_vm0, %v11485_v1 }
  0x79   :  { %251 = vst.msk [vmem:[#allocation2 + $0x750] sm:$0xff] %vm16_vm0, %v11485_v1  ;;  %252 = vst.msk [vmem:[#allocation2 + $0x758] sm:$0xff] %vm16_vm0, %v11485_v1 }
  0x7a   :  { %253 = vst.msk [vmem:[#allocation2 + $0x760] sm:$0xff] %vm16_vm0, %v11485_v1  ;;  %254 = vst.msk [vmem:[#allocation2 + $0x768] sm:$0xff] %vm16_vm0, %v11485_v1 }
  0x7b   :  { %255 = vst.msk [vmem:[#allocation2 + $0x770] sm:$0xff] %vm16_vm0, %v11485_v1  ;;  %256 = vst.msk [vmem:[#allocation2 + $0x778] sm:$0xff] %vm16_vm0, %v11485_v1 }
  0x7c   :  { %257 = vst.msk [vmem:[#allocation2 + $0x780] sm:$0xff] %vm16_vm0, %v11485_v1  ;;  %258 = vst.msk [vmem:[#allocation2 + $0x788] sm:$0xff] %vm16_vm0, %v11485_v1 }
  0x7d   :  { %259 = vst.msk [vmem:[#allocation2 + $0x790] sm:$0xff] %vm16_vm0, %v11485_v1  ;;  %260 = vst.msk [vmem:[#allocation2 + $0x798] sm:$0xff] %vm16_vm0, %v11485_v1 }
  0x7e   :  { %261 = vst.msk [vmem:[#allocation2 + $0x7a0] sm:$0xff] %vm16_vm0, %v11485_v1  ;;  %262 = vst.msk [vmem:[#allocation2 + $0x7a8] sm:$0xff] %vm16_vm0, %v11485_v1 }
  0x7f   :  { %263 = vst.msk [vmem:[#allocation2 + $0x7b0] sm:$0xff] %vm16_vm0, %v11485_v1  ;;  %264 = vst.msk [vmem:[#allocation2 + $0x7b8] sm:$0xff] %vm16_vm0, %v11485_v1 }
  0x80   :  { %265 = vst.msk [vmem:[#allocation2 + $0x7c0] sm:$0xff] %vm16_vm0, %v11485_v1  ;;  %266 = vst.msk [vmem:[#allocation2 + $0x7c8] sm:$0xff] %vm16_vm0, %v11485_v1 }
  0x81   :  { %267 = vst.msk [vmem:[#allocation2 + $0x7d0] sm:$0xff] %vm16_vm0, %v11485_v1  ;;  %268 = vst.msk [vmem:[#allocation2 + $0x7d8] sm:$0xff] %vm16_vm0, %v11485_v1 }
  0x82   :  { %269 = vst.msk [vmem:[#allocation2 + $0x7e0] sm:$0xff] %vm16_vm0, %v11485_v1  ;;  %270 = vst.msk [vmem:[#allocation2 + $0x7e8] sm:$0xff] %vm16_vm0, %v11485_v1 }
  0x83   :  { %271 = vst.msk [vmem:[#allocation2 + $0x7f0] sm:$0xff] %vm16_vm0, %v11485_v1  ;;  %272 = vst.msk [vmem:[#allocation2 + $0x7f8] sm:$0xff] %vm16_vm0, %v11485_v1 }
  0x84   :  { %273 = vst.msk [vmem:[#allocation2 + $0x800] sm:$0xff] %vm16_vm0, %v11485_v1  ;;  %274 = vst.msk [vmem:[#allocation2 + $0x808] sm:$0xff] %vm16_vm0, %v11485_v1 }
  0x85   :  { %275 = vst.msk [vmem:[#allocation2 + $0x810] sm:$0xff] %vm16_vm0, %v11485_v1  ;;  %276 = vst.msk [vmem:[#allocation2 + $0x818] sm:$0xff] %vm16_vm0, %v11485_v1 }
  0x86   :  { %277 = vst.msk [vmem:[#allocation2 + $0x820] sm:$0xff] %vm16_vm0, %v11485_v1  ;;  %278 = vst.msk [vmem:[#allocation2 + $0x828] sm:$0xff] %vm16_vm0, %v11485_v1 }
  0x87   :  { %279 = vst.msk [vmem:[#allocation2 + $0x830] sm:$0xff] %vm16_vm0, %v11485_v1  ;;  %280 = vst.msk [vmem:[#allocation2 + $0x838] sm:$0xff] %vm16_vm0, %v11485_v1 }
  0x88   :  { %281 = vst.msk [vmem:[#allocation2 + $0x840] sm:$0xff] %vm16_vm0, %v11485_v1  ;;  %282 = vst.msk [vmem:[#allocation2 + $0x848] sm:$0xff] %vm16_vm0, %v11485_v1 }
  0x89   :  { %283 = vst.msk [vmem:[#allocation2 + $0x850] sm:$0xff] %vm16_vm0, %v11485_v1  ;;  %284 = vst.msk [vmem:[#allocation2 + $0x858] sm:$0xff] %vm16_vm0, %v11485_v1 }
  0x8a   :  { %285 = vst.msk [vmem:[#allocation2 + $0x860] sm:$0xff] %vm16_vm0, %v11485_v1  ;;  %286 = vst.msk [vmem:[#allocation2 + $0x868] sm:$0xff] %vm16_vm0, %v11485_v1 }
  0x8b   :  { %287 = vst.msk [vmem:[#allocation2 + $0x870] sm:$0xff] %vm16_vm0, %v11485_v1  ;;  %288 = vst.msk [vmem:[#allocation2 + $0x878] sm:$0xff] %vm16_vm0, %v11485_v1 }
  0x8c   :  { %289 = vst.msk [vmem:[#allocation2 + $0x880] sm:$0xff] %vm16_vm0, %v11485_v1  ;;  %290 = vst.msk [vmem:[#allocation2 + $0x888] sm:$0xff] %vm16_vm0, %v11485_v1 }
  0x8d   :  { %291 = vst.msk [vmem:[#allocation2 + $0x890] sm:$0xff] %vm16_vm0, %v11485_v1  ;;  %292 = vst.msk [vmem:[#allocation2 + $0x898] sm:$0xff] %vm16_vm0, %v11485_v1 }
  0x8e   :  { %293 = vst.msk [vmem:[#allocation2 + $0x8a0] sm:$0xff] %vm16_vm0, %v11485_v1  ;;  %294 = vst.msk [vmem:[#allocation2 + $0x8a8] sm:$0xff] %vm16_vm0, %v11485_v1 }
  0x8f   :  { %295 = vst.msk [vmem:[#allocation2 + $0x8b0] sm:$0xff] %vm16_vm0, %v11485_v1  ;;  %296 = vst.msk [vmem:[#allocation2 + $0x8b8] sm:$0xff] %vm16_vm0, %v11485_v1 }
  0x90   :  { %297 = vst.msk [vmem:[#allocation2 + $0x8c0] sm:$0xff] %vm16_vm0, %v11485_v1  ;;  %298 = vst.msk [vmem:[#allocation2 + $0x8c8] sm:$0xff] %vm16_vm0, %v11485_v1 }
  0x91   :  { %299 = vst.msk [vmem:[#allocation2 + $0x8d0] sm:$0xff] %vm16_vm0, %v11485_v1  ;;  %300 = vst.msk [vmem:[#allocation2 + $0x8d8] sm:$0xff] %vm16_vm0, %v11485_v1 }
  0x92   :  { %301 = vst.msk [vmem:[#allocation2 + $0x8e0] sm:$0xff] %vm16_vm0, %v11485_v1  ;;  %302 = vst.msk [vmem:[#allocation2 + $0x8e8] sm:$0xff] %vm16_vm0, %v11485_v1 }
  0x93   :  { %303 = vst.msk [vmem:[#allocation2 + $0x8f0] sm:$0xff] %vm16_vm0, %v11485_v1  ;;  %304 = vst.msk [vmem:[#allocation2 + $0x8f8] sm:$0xff] %vm16_vm0, %v11485_v1 }
  0x94   :  { %305 = vst.msk [vmem:[#allocation2 + $0x900] sm:$0xff] %vm16_vm0, %v11485_v1  ;;  %306 = vst.msk [vmem:[#allocation2 + $0x908] sm:$0xff] %vm16_vm0, %v11485_v1 }
  0x95   :  { %307 = vst.msk [vmem:[#allocation2 + $0x910] sm:$0xff] %vm16_vm0, %v11485_v1  ;;  %308 = vst.msk [vmem:[#allocation2 + $0x918] sm:$0xff] %vm16_vm0, %v11485_v1 }
  0x96   :  { %309 = vst.msk [vmem:[#allocation2 + $0x920] sm:$0xff] %vm16_vm0, %v11485_v1  ;;  %310 = vst.msk [vmem:[#allocation2 + $0x928] sm:$0xff] %vm16_vm0, %v11485_v1 }
  0x97   :  { %311 = vst.msk [vmem:[#allocation2 + $0x930] sm:$0xff] %vm16_vm0, %v11485_v1  ;;  %312 = vst.msk [vmem:[#allocation2 + $0x938] sm:$0xff] %vm16_vm0, %v11485_v1 }
  0x98   :  { %313 = vst.msk [vmem:[#allocation2 + $0x940] sm:$0xff] %vm16_vm0, %v11485_v1  ;;  %314 = vst.msk [vmem:[#allocation2 + $0x948] sm:$0xff] %vm16_vm0, %v11485_v1 }
  0x99   :  { %315 = vst.msk [vmem:[#allocation2 + $0x950] sm:$0xff] %vm16_vm0, %v11485_v1  ;;  %316 = vst.msk [vmem:[#allocation2 + $0x958] sm:$0xff] %vm16_vm0, %v11485_v1 }
  0x9a   :  { %317 = vst.msk [vmem:[#allocation2 + $0x960] sm:$0xff] %vm16_vm0, %v11485_v1  ;;  %318 = vst.msk [vmem:[#allocation2 + $0x968] sm:$0xff] %vm16_vm0, %v11485_v1 }
  0x9b   :  { %319 = vst.msk [vmem:[#allocation2 + $0x970] sm:$0xff] %vm16_vm0, %v11485_v1  ;;  %320 = vst.msk [vmem:[#allocation2 + $0x978] sm:$0xff] %vm16_vm0, %v11485_v1 }
  0x9c   :  { %321 = vst.msk [vmem:[#allocation2 + $0x980] sm:$0xff] %vm16_vm0, %v11485_v1  ;;  %322 = vst.msk [vmem:[#allocation2 + $0x988] sm:$0xff] %vm16_vm0, %v11485_v1 }
  0x9d   :  { %323 = vst.msk [vmem:[#allocation2 + $0x990] sm:$0xff] %vm16_vm0, %v11485_v1  ;;  %324 = vst.msk [vmem:[#allocation2 + $0x998] sm:$0xff] %vm16_vm0, %v11485_v1 }
  0x9e   :  { %325 = vst.msk [vmem:[#allocation2 + $0x9a0] sm:$0xff] %vm16_vm0, %v11485_v1  ;;  %326 = vst.msk [vmem:[#allocation2 + $0x9a8] sm:$0xff] %vm16_vm0, %v11485_v1 }
  0x9f   :  { %327 = vst.msk [vmem:[#allocation2 + $0x9b0] sm:$0xff] %vm16_vm0, %v11485_v1  ;;  %328 = vst.msk [vmem:[#allocation2 + $0x9b8] sm:$0xff] %vm16_vm0, %v11485_v1 }
  0xa0   :  { %329 = vst.msk [vmem:[#allocation2 + $0x9c0] sm:$0xff] %vm16_vm0, %v11485_v1  ;;  %330 = vst.msk [vmem:[#allocation2 + $0x9c8] sm:$0xff] %vm16_vm0, %v11485_v1 }
  0xa1   :  { %331 = vst.msk [vmem:[#allocation2 + $0x9d0] sm:$0xff] %vm16_vm0, %v11485_v1  ;;  %332 = vst.msk [vmem:[#allocation2 + $0x9d8] sm:$0xff] %vm16_vm0, %v11485_v1 }
  0xa2   :  { %333 = vst.msk [vmem:[#allocation2 + $0x9e0] sm:$0xff] %vm16_vm0, %v11485_v1  ;;  %334 = vst.msk [vmem:[#allocation2 + $0x9e8] sm:$0xff] %vm16_vm0, %v11485_v1 }
  0xa3   :  { %335 = vst.msk [vmem:[#allocation2 + $0x9f0] sm:$0xff] %vm16_vm0, %v11485_v1  ;;  %336 = vst.msk [vmem:[#allocation2 + $0x9f8] sm:$0xff] %vm16_vm0, %v11485_v1 }
  0xa4   :  { %337 = vst.msk [vmem:[#allocation2 + $0xa00] sm:$0xff] %vm16_vm0, %v11485_v1  ;;  %338 = vst.msk [vmem:[#allocation2 + $0xa08] sm:$0xff] %vm16_vm0, %v11485_v1 }
  0xa5   :  { %339 = vst.msk [vmem:[#allocation2 + $0xa10] sm:$0xff] %vm16_vm0, %v11485_v1  ;;  %340 = vst.msk [vmem:[#allocation2 + $0xa18] sm:$0xff] %vm16_vm0, %v11485_v1 }
  0xa6   :  { %341 = vst.msk [vmem:[#allocation2 + $0xa20] sm:$0xff] %vm16_vm0, %v11485_v1  ;;  %342 = vst.msk [vmem:[#allocation2 + $0xa28] sm:$0xff] %vm16_vm0, %v11485_v1 }
  0xa7   :  { %343 = vst.msk [vmem:[#allocation2 + $0xa30] sm:$0xff] %vm16_vm0, %v11485_v1  ;;  %344 = vst.msk [vmem:[#allocation2 + $0xa38] sm:$0xff] %vm16_vm0, %v11485_v1 }
  0xa8   :  { %345 = vst.msk [vmem:[#allocation2 + $0xa40] sm:$0xff] %vm16_vm0, %v11485_v1  ;;  %346 = vst.msk [vmem:[#allocation2 + $0xa48] sm:$0xff] %vm16_vm0, %v11485_v1 }
  0xa9   :  { %347 = vst.msk [vmem:[#allocation2 + $0xa50] sm:$0xff] %vm16_vm0, %v11485_v1  ;;  %348 = vst.msk [vmem:[#allocation2 + $0xa58] sm:$0xff] %vm16_vm0, %v11485_v1 }
  0xaa   :  { %349 = vst.msk [vmem:[#allocation2 + $0xa60] sm:$0xff] %vm16_vm0, %v11485_v1  ;;  %350 = vst.msk [vmem:[#allocation2 + $0xa68] sm:$0xff] %vm16_vm0, %v11485_v1 }
  0xab   :  { %351 = vst.msk [vmem:[#allocation2 + $0xa70] sm:$0xff] %vm16_vm0, %v11485_v1  ;;  %352 = vst.msk [vmem:[#allocation2 + $0xa78] sm:$0xff] %vm16_vm0, %v11485_v1 }
  0xac   :  { %353 = vst.msk [vmem:[#allocation2 + $0xa80] sm:$0xff] %vm16_vm0, %v11485_v1  ;;  %354 = vst.msk [vmem:[#allocation2 + $0xa88] sm:$0xff] %vm16_vm0, %v11485_v1 }
  0xad   :  { %355 = vst.msk [vmem:[#allocation2 + $0xa90] sm:$0xff] %vm16_vm0, %v11485_v1  ;;  %356 = vst.msk [vmem:[#allocation2 + $0xa98] sm:$0xff] %vm16_vm0, %v11485_v1 }
  0xae   :  { %357 = vst.msk [vmem:[#allocation2 + $0xaa0] sm:$0xff] %vm16_vm0, %v11485_v1  ;;  %358 = vst.msk [vmem:[#allocation2 + $0xaa8] sm:$0xff] %vm16_vm0, %v11485_v1 }
  0xaf   :  { %359 = vst.msk [vmem:[#allocation2 + $0xab0] sm:$0xff] %vm16_vm0, %v11485_v1  ;;  %360 = vst.msk [vmem:[#allocation2 + $0xab8] sm:$0xff] %vm16_vm0, %v11485_v1 }
  0xb0   :  { %361 = vst.msk [vmem:[#allocation2 + $0xac0] sm:$0xff] %vm16_vm0, %v11485_v1  ;;  %362 = vst.msk [vmem:[#allocation2 + $0xac8] sm:$0xff] %vm16_vm0, %v11485_v1 }
  0xb1   :  { %363 = vst.msk [vmem:[#allocation2 + $0xad0] sm:$0xff] %vm16_vm0, %v11485_v1  ;;  %364 = vst.msk [vmem:[#allocation2 + $0xad8] sm:$0xff] %vm16_vm0, %v11485_v1 }
  0xb2   :  { %365 = vst.msk [vmem:[#allocation2 + $0xae0] sm:$0xff] %vm16_vm0, %v11485_v1  ;;  %366 = vst.msk [vmem:[#allocation2 + $0xae8] sm:$0xff] %vm16_vm0, %v11485_v1 }
  0xb3   :  { %367 = vst.msk [vmem:[#allocation2 + $0xaf0] sm:$0xff] %vm16_vm0, %v11485_v1  ;;  %368 = vst.msk [vmem:[#allocation2 + $0xaf8] sm:$0xff] %vm16_vm0, %v11485_v1 }
  0xb4   :  { %369 = vst.msk [vmem:[#allocation2 + $0xb00] sm:$0xff] %vm16_vm0, %v11485_v1  ;;  %370 = vst.msk [vmem:[#allocation2 + $0xb08] sm:$0xff] %vm16_vm0, %v11485_v1 }
  0xb5   :  { %371 = vst.msk [vmem:[#allocation2 + $0xb10] sm:$0xff] %vm16_vm0, %v11485_v1  ;;  %372 = vst.msk [vmem:[#allocation2 + $0xb18] sm:$0xff] %vm16_vm0, %v11485_v1 }
  0xb6   :  { %373 = vst.msk [vmem:[#allocation2 + $0xb20] sm:$0xff] %vm16_vm0, %v11485_v1  ;;  %374 = vst.msk [vmem:[#allocation2 + $0xb28] sm:$0xff] %vm16_vm0, %v11485_v1 }
  0xb7   :  { %375 = vst.msk [vmem:[#allocation2 + $0xb30] sm:$0xff] %vm16_vm0, %v11485_v1  ;;  %376 = vst.msk [vmem:[#allocation2 + $0xb38] sm:$0xff] %vm16_vm0, %v11485_v1 }
  0xb8   :  { %377 = vst.msk [vmem:[#allocation2 + $0xb40] sm:$0xff] %vm16_vm0, %v11485_v1  ;;  %378 = vst.msk [vmem:[#allocation2 + $0xb48] sm:$0xff] %vm16_vm0, %v11485_v1 }
  0xb9   :  { %379 = vst.msk [vmem:[#allocation2 + $0xb50] sm:$0xff] %vm16_vm0, %v11485_v1  ;;  %380 = vst.msk [vmem:[#allocation2 + $0xb58] sm:$0xff] %vm16_vm0, %v11485_v1 }
  0xba   :  { %381 = vst.msk [vmem:[#allocation2 + $0xb60] sm:$0xff] %vm16_vm0, %v11485_v1  ;;  %382 = vst.msk [vmem:[#allocation2 + $0xb68] sm:$0xff] %vm16_vm0, %v11485_v1 }
  0xbb   :  { %383 = vst.msk [vmem:[#allocation2 + $0xb70] sm:$0xff] %vm16_vm0, %v11485_v1  ;;  %384 = vst.msk [vmem:[#allocation2 + $0xb78] sm:$0xff] %vm16_vm0, %v11485_v1 }
  0xbc   :  { %385 = vst.msk [vmem:[#allocation2 + $0xb80] sm:$0xff] %vm16_vm0, %v11485_v1  ;;  %386 = vst.msk [vmem:[#allocation2 + $0xb88] sm:$0xff] %vm16_vm0, %v11485_v1 }
  0xbd   :  { %387 = vst.msk [vmem:[#allocation2 + $0xb90] sm:$0xff] %vm16_vm0, %v11485_v1  ;;  %388 = vst.msk [vmem:[#allocation2 + $0xb98] sm:$0xff] %vm16_vm0, %v11485_v1 }
  0xbe   :  { %389 = vst.msk [vmem:[#allocation2 + $0xba0] sm:$0xff] %vm16_vm0, %v11485_v1  ;;  %390 = vst.msk [vmem:[#allocation2 + $0xba8] sm:$0xff] %vm16_vm0, %v11485_v1 }
  0xbf   :  { %391 = vst.msk [vmem:[#allocation2 + $0xbb0] sm:$0xff] %vm16_vm0, %v11485_v1  ;;  %392 = vst.msk [vmem:[#allocation2 + $0xbb8] sm:$0xff] %vm16_vm0, %v11485_v1 }
  0xc0   :  { %393 = vst.msk [vmem:[#allocation2 + $0xbc0] sm:$0xff] %vm16_vm0, %v11485_v1  ;;  %394 = vst.msk [vmem:[#allocation2 + $0xbc8] sm:$0xff] %vm16_vm0, %v11485_v1 }
  0xc1   :  { %395 = vst.msk [vmem:[#allocation2 + $0xbd0] sm:$0xff] %vm16_vm0, %v11485_v1  ;;  %396 = vst.msk [vmem:[#allocation2 + $0xbd8] sm:$0xff] %vm16_vm0, %v11485_v1 }
  0xc2   :  { %397 = vst.msk [vmem:[#allocation2 + $0xbe0] sm:$0xff] %vm16_vm0, %v11485_v1  ;;  %398 = vst.msk [vmem:[#allocation2 + $0xbe8] sm:$0xff] %vm16_vm0, %v11485_v1 }
  0xc3   :  { %399 = vst.msk [vmem:[#allocation2 + $0xbf0] sm:$0xff] %vm16_vm0, %v11485_v1  ;;  %400 = vst.msk [vmem:[#allocation2 + $0xbf8] sm:$0xff] %vm16_vm0, %v11485_v1 }
  0xc4   :  { %401 = vst.msk [vmem:[#allocation2 + $0xc00] sm:$0xff] %vm16_vm0, %v11485_v1  ;;  %402 = vst.msk [vmem:[#allocation2 + $0xc08] sm:$0xff] %vm16_vm0, %v11485_v1 }
  0xc5   :  { %403 = vst.msk [vmem:[#allocation2 + $0xc10] sm:$0xff] %vm16_vm0, %v11485_v1  ;;  %404 = vst.msk [vmem:[#allocation2 + $0xc18] sm:$0xff] %vm16_vm0, %v11485_v1 }
  0xc6   :  { %405 = vst.msk [vmem:[#allocation2 + $0xc20] sm:$0xff] %vm16_vm0, %v11485_v1  ;;  %406 = vst.msk [vmem:[#allocation2 + $0xc28] sm:$0xff] %vm16_vm0, %v11485_v1 }
  0xc7   :  { %407 = vst.msk [vmem:[#allocation2 + $0xc30] sm:$0xff] %vm16_vm0, %v11485_v1  ;;  %408 = vst.msk [vmem:[#allocation2 + $0xc38] sm:$0xff] %vm16_vm0, %v11485_v1 }
  0xc8   :  { %409 = vst.msk [vmem:[#allocation2 + $0xc40] sm:$0xff] %vm16_vm0, %v11485_v1  ;;  %410 = vst.msk [vmem:[#allocation2 + $0xc48] sm:$0xff] %vm16_vm0, %v11485_v1 }
  0xc9   :  { %411 = vst.msk [vmem:[#allocation2 + $0xc50] sm:$0xff] %vm16_vm0, %v11485_v1  ;;  %412 = vst.msk [vmem:[#allocation2 + $0xc58] sm:$0xff] %vm16_vm0, %v11485_v1 }
  0xca   :  { %413 = vst.msk [vmem:[#allocation2 + $0xc60] sm:$0xff] %vm16_vm0, %v11485_v1  ;;  %414 = vst.msk [vmem:[#allocation2 + $0xc68] sm:$0xff] %vm16_vm0, %v11485_v1 }
  0xcb   :  { %415 = vst.msk [vmem:[#allocation2 + $0xc70] sm:$0xff] %vm16_vm0, %v11485_v1  ;;  %416 = vst.msk [vmem:[#allocation2 + $0xc78] sm:$0xff] %vm16_vm0, %v11485_v1 }
  0xcc   :  { %417 = vst.msk [vmem:[#allocation2 + $0xc80] sm:$0xff] %vm16_vm0, %v11485_v1  ;;  %418 = vst.msk [vmem:[#allocation2 + $0xc88] sm:$0xff] %vm16_vm0, %v11485_v1 }
  0xcd   :  { %419 = vst.msk [vmem:[#allocation2 + $0xc90] sm:$0xff] %vm16_vm0, %v11485_v1  ;;  %420 = vst.msk [vmem:[#allocation2 + $0xc98] sm:$0xff] %vm16_vm0, %v11485_v1 }
  0xce   :  { %421 = vst.msk [vmem:[#allocation2 + $0xca0] sm:$0xff] %vm16_vm0, %v11485_v1  ;;  %422 = vst.msk [vmem:[#allocation2 + $0xca8] sm:$0xff] %vm16_vm0, %v11485_v1 }
  0xcf   :  { %423 = vst.msk [vmem:[#allocation2 + $0xcb0] sm:$0xff] %vm16_vm0, %v11485_v1  ;;  %424 = vst.msk [vmem:[#allocation2 + $0xcb8] sm:$0xff] %vm16_vm0, %v11485_v1 }
  0xd0   :  { %425 = vst.msk [vmem:[#allocation2 + $0xcc0] sm:$0xff] %vm16_vm0, %v11485_v1  ;;  %426 = vst.msk [vmem:[#allocation2 + $0xcc8] sm:$0xff] %vm16_vm0, %v11485_v1 }
  0xd1   :  { %427 = vst.msk [vmem:[#allocation2 + $0xcd0] sm:$0xff] %vm16_vm0, %v11485_v1  ;;  %428 = vst.msk [vmem:[#allocation2 + $0xcd8] sm:$0xff] %vm16_vm0, %v11485_v1 }
  0xd2   :  { %429 = vst.msk [vmem:[#allocation2 + $0xce0] sm:$0xff] %vm16_vm0, %v11485_v1  ;;  %430 = vst.msk [vmem:[#allocation2 + $0xce8] sm:$0xff] %vm16_vm0, %v11485_v1 }
  0xd3   :  { %431 = vst.msk [vmem:[#allocation2 + $0xcf0] sm:$0xff] %vm16_vm0, %v11485_v1  ;;  %432 = vst.msk [vmem:[#allocation2 + $0xcf8] sm:$0xff] %vm16_vm0, %v11485_v1 }
  0xd4   :  { %433 = vst.msk [vmem:[#allocation2 + $0xd00] sm:$0xff] %vm16_vm0, %v11485_v1  ;;  %434 = vst.msk [vmem:[#allocation2 + $0xd08] sm:$0xff] %vm16_vm0, %v11485_v1 }
  0xd5   :  { %435 = vst.msk [vmem:[#allocation2 + $0xd10] sm:$0xff] %vm16_vm0, %v11485_v1  ;;  %436 = vst.msk [vmem:[#allocation2 + $0xd18] sm:$0xff] %vm16_vm0, %v11485_v1 }
  0xd6   :  { %437 = vst.msk [vmem:[#allocation2 + $0xd20] sm:$0xff] %vm16_vm0, %v11485_v1  ;;  %438 = vst.msk [vmem:[#allocation2 + $0xd28] sm:$0xff] %vm16_vm0, %v11485_v1 }
  0xd7   :  { %439 = vst.msk [vmem:[#allocation2 + $0xd30] sm:$0xff] %vm16_vm0, %v11485_v1  ;;  %440 = vst.msk [vmem:[#allocation2 + $0xd38] sm:$0xff] %vm16_vm0, %v11485_v1 }
  0xd8   :  { %441 = vst.msk [vmem:[#allocation2 + $0xd40] sm:$0xff] %vm16_vm0, %v11485_v1  ;;  %442 = vst.msk [vmem:[#allocation2 + $0xd48] sm:$0xff] %vm16_vm0, %v11485_v1 }
  0xd9   :  { %443 = vst.msk [vmem:[#allocation2 + $0xd50] sm:$0xff] %vm16_vm0, %v11485_v1  ;;  %444 = vst.msk [vmem:[#allocation2 + $0xd58] sm:$0xff] %vm16_vm0, %v11485_v1 }
  0xda   :  { %445 = vst.msk [vmem:[#allocation2 + $0xd60] sm:$0xff] %vm16_vm0, %v11485_v1  ;;  %446 = vst.msk [vmem:[#allocation2 + $0xd68] sm:$0xff] %vm16_vm0, %v11485_v1 }
  0xdb   :  { %447 = vst.msk [vmem:[#allocation2 + $0xd70] sm:$0xff] %vm16_vm0, %v11485_v1  ;;  %448 = vst.msk [vmem:[#allocation2 + $0xd78] sm:$0xff] %vm16_vm0, %v11485_v1 }
  0xdc   :  { %449 = vst.msk [vmem:[#allocation2 + $0xd80] sm:$0xff] %vm16_vm0, %v11485_v1  ;;  %450 = vst.msk [vmem:[#allocation2 + $0xd88] sm:$0xff] %vm16_vm0, %v11485_v1 }
  0xdd   :  { %451 = vst.msk [vmem:[#allocation2 + $0xd90] sm:$0xff] %vm16_vm0, %v11485_v1  ;;  %452 = vst.msk [vmem:[#allocation2 + $0xd98] sm:$0xff] %vm16_vm0, %v11485_v1 }
  0xde   :  { %453 = vst.msk [vmem:[#allocation2 + $0xda0] sm:$0xff] %vm16_vm0, %v11485_v1  ;;  %454 = vst.msk [vmem:[#allocation2 + $0xda8] sm:$0xff] %vm16_vm0, %v11485_v1 }
  0xdf   :  { %455 = vst.msk [vmem:[#allocation2 + $0xdb0] sm:$0xff] %vm16_vm0, %v11485_v1  ;;  %456 = vst.msk [vmem:[#allocation2 + $0xdb8] sm:$0xff] %vm16_vm0, %v11485_v1 }
  0xe0   :  { %457 = vst.msk [vmem:[#allocation2 + $0xdc0] sm:$0xff] %vm16_vm0, %v11485_v1  ;;  %458 = vst.msk [vmem:[#allocation2 + $0xdc8] sm:$0xff] %vm16_vm0, %v11485_v1 }
  0xe1   :  { %459 = vst.msk [vmem:[#allocation2 + $0xdd0] sm:$0xff] %vm16_vm0, %v11485_v1  ;;  %460 = vst.msk [vmem:[#allocation2 + $0xdd8] sm:$0xff] %vm16_vm0, %v11485_v1 }
  0xe2   :  { %461 = vst.msk [vmem:[#allocation2 + $0xde0] sm:$0xff] %vm16_vm0, %v11485_v1  ;;  %462 = vst.msk [vmem:[#allocation2 + $0xde8] sm:$0xff] %vm16_vm0, %v11485_v1 }
  0xe3   :  { %463 = vst.msk [vmem:[#allocation2 + $0xdf0] sm:$0xff] %vm16_vm0, %v11485_v1  ;;  %464 = vst.msk [vmem:[#allocation2 + $0xdf8] sm:$0xff] %vm16_vm0, %v11485_v1 }
  0xe4   :  { %465 = vst.msk [vmem:[#allocation2 + $0xe00] sm:$0xff] %vm16_vm0, %v11485_v1  ;;  %466 = vst.msk [vmem:[#allocation2 + $0xe08] sm:$0xff] %vm16_vm0, %v11485_v1 }
  0xe5   :  { %467 = vst.msk [vmem:[#allocation2 + $0xe10] sm:$0xff] %vm16_vm0, %v11485_v1  ;;  %468 = vst.msk [vmem:[#allocation2 + $0xe18] sm:$0xff] %vm16_vm0, %v11485_v1 }
  0xe6   :  { %469 = vst.msk [vmem:[#allocation2 + $0xe20] sm:$0xff] %vm16_vm0, %v11485_v1  ;;  %470 = vst.msk [vmem:[#allocation2 + $0xe28] sm:$0xff] %vm16_vm0, %v11485_v1 }
  0xe7   :  { %471 = vst.msk [vmem:[#allocation2 + $0xe30] sm:$0xff] %vm16_vm0, %v11485_v1  ;;  %472 = vst.msk [vmem:[#allocation2 + $0xe38] sm:$0xff] %vm16_vm0, %v11485_v1 }
  0xe8   :  { %473 = vst.msk [vmem:[#allocation2 + $0xe40] sm:$0xff] %vm16_vm0, %v11485_v1  ;;  %474 = vst.msk [vmem:[#allocation2 + $0xe48] sm:$0xff] %vm16_vm0, %v11485_v1 }
  0xe9   :  { %475 = vst.msk [vmem:[#allocation2 + $0xe50] sm:$0xff] %vm16_vm0, %v11485_v1  ;;  %476 = vst.msk [vmem:[#allocation2 + $0xe58] sm:$0xff] %vm16_vm0, %v11485_v1 }
  0xea   :  { %477 = vst.msk [vmem:[#allocation2 + $0xe60] sm:$0xff] %vm16_vm0, %v11485_v1  ;;  %478 = vst.msk [vmem:[#allocation2 + $0xe68] sm:$0xff] %vm16_vm0, %v11485_v1 }
  0xeb   :  { %479 = vst.msk [vmem:[#allocation2 + $0xe70] sm:$0xff] %vm16_vm0, %v11485_v1  ;;  %480 = vst.msk [vmem:[#allocation2 + $0xe78] sm:$0xff] %vm16_vm0, %v11485_v1 }
  0xec   :  { %481 = vst.msk [vmem:[#allocation2 + $0xe80] sm:$0xff] %vm16_vm0, %v11485_v1  ;;  %482 = vst.msk [vmem:[#allocation2 + $0xe88] sm:$0xff] %vm16_vm0, %v11485_v1 }
  0xed   :  { %483 = vst.msk [vmem:[#allocation2 + $0xe90] sm:$0xff] %vm16_vm0, %v11485_v1  ;;  %484 = vst.msk [vmem:[#allocation2 + $0xe98] sm:$0xff] %vm16_vm0, %v11485_v1 }
  0xee   :  { %485 = vst.msk [vmem:[#allocation2 + $0xea0] sm:$0xff] %vm16_vm0, %v11485_v1  ;;  %486 = vst.msk [vmem:[#allocation2 + $0xea8] sm:$0xff] %vm16_vm0, %v11485_v1 }
  0xef   :  { %487 = vst.msk [vmem:[#allocation2 + $0xeb0] sm:$0xff] %vm16_vm0, %v11485_v1  ;;  %488 = vst.msk [vmem:[#allocation2 + $0xeb8] sm:$0xff] %vm16_vm0, %v11485_v1 }
  0xf0   :  { %489 = vst.msk [vmem:[#allocation2 + $0xec0] sm:$0xff] %vm16_vm0, %v11485_v1  ;;  %490 = vst.msk [vmem:[#allocation2 + $0xec8] sm:$0xff] %vm16_vm0, %v11485_v1 }
  0xf1   :  { %491 = vst.msk [vmem:[#allocation2 + $0xed0] sm:$0xff] %vm16_vm0, %v11485_v1  ;;  %492 = vst.msk [vmem:[#allocation2 + $0xed8] sm:$0xff] %vm16_vm0, %v11485_v1 }
  0xf2   :  { %493 = vst.msk [vmem:[#allocation2 + $0xee0] sm:$0xff] %vm16_vm0, %v11485_v1  ;;  %494 = vst.msk [vmem:[#allocation2 + $0xee8] sm:$0xff] %vm16_vm0, %v11485_v1 }
  0xf3   :  { %495 = vst.msk [vmem:[#allocation2 + $0xef0] sm:$0xff] %vm16_vm0, %v11485_v1  ;;  %496 = vst.msk [vmem:[#allocation2 + $0xef8] sm:$0xff] %vm16_vm0, %v11485_v1 }
  0xf4   :  { %497 = vst.msk [vmem:[#allocation2 + $0xf00] sm:$0xff] %vm16_vm0, %v11485_v1  ;;  %498 = vst.msk [vmem:[#allocation2 + $0xf08] sm:$0xff] %vm16_vm0, %v11485_v1 }
  0xf5   :  { %499 = vst.msk [vmem:[#allocation2 + $0xf10] sm:$0xff] %vm16_vm0, %v11485_v1  ;;  %500 = vst.msk [vmem:[#allocation2 + $0xf18] sm:$0xff] %vm16_vm0, %v11485_v1 }
  0xf6   :  { %501 = vst.msk [vmem:[#allocation2 + $0xf20] sm:$0xff] %vm16_vm0, %v11485_v1  ;;  %502 = vst.msk [vmem:[#allocation2 + $0xf28] sm:$0xff] %vm16_vm0, %v11485_v1 }
  0xf7   :  { %503 = vst.msk [vmem:[#allocation2 + $0xf30] sm:$0xff] %vm16_vm0, %v11485_v1  ;;  %504 = vst.msk [vmem:[#allocation2 + $0xf38] sm:$0xff] %vm16_vm0, %v11485_v1 }
  0xf8   :  { %505 = vst.msk [vmem:[#allocation2 + $0xf40] sm:$0xff] %vm16_vm0, %v11485_v1  ;;  %506 = vst.msk [vmem:[#allocation2 + $0xf48] sm:$0xff] %vm16_vm0, %v11485_v1 }
  0xf9   :  { %507 = vst.msk [vmem:[#allocation2 + $0xf50] sm:$0xff] %vm16_vm0, %v11485_v1  ;;  %508 = vst.msk [vmem:[#allocation2 + $0xf58] sm:$0xff] %vm16_vm0, %v11485_v1 }
  0xfa   :  { %509 = vst.msk [vmem:[#allocation2 + $0xf60] sm:$0xff] %vm16_vm0, %v11485_v1  ;;  %510 = vst.msk [vmem:[#allocation2 + $0xf68] sm:$0xff] %vm16_vm0, %v11485_v1 }
  0xfb   :  { %511 = vst.msk [vmem:[#allocation2 + $0xf70] sm:$0xff] %vm16_vm0, %v11485_v1  ;;  %512 = vst.msk [vmem:[#allocation2 + $0xf78] sm:$0xff] %vm16_vm0, %v11485_v1 }
  0xfc   :  { %513 = vst.msk [vmem:[#allocation2 + $0xf80] sm:$0xff] %vm16_vm0, %v11485_v1  ;;  %514 = vst.msk [vmem:[#allocation2 + $0xf88] sm:$0xff] %vm16_vm0, %v11485_v1 }
  0xfd   :  { %515 = vst.msk [vmem:[#allocation2 + $0xf90] sm:$0xff] %vm16_vm0, %v11485_v1  ;;  %516 = vst.msk [vmem:[#allocation2 + $0xf98] sm:$0xff] %vm16_vm0, %v11485_v1 }
  0xfe   :  { %517 = vst.msk [vmem:[#allocation2 + $0xfa0] sm:$0xff] %vm16_vm0, %v11485_v1  ;;  %518 = vst.msk [vmem:[#allocation2 + $0xfa8] sm:$0xff] %vm16_vm0, %v11485_v1 }
  0xff   :  { %519 = vst.msk [vmem:[#allocation2 + $0xfb0] sm:$0xff] %vm16_vm0, %v11485_v1  ;;  %520 = vst.msk [vmem:[#allocation2 + $0xfb8] sm:$0xff] %vm16_vm0, %v11485_v1 }
 0x100   :  { %521 = vst.msk [vmem:[#allocation2 + $0xfc0] sm:$0xff] %vm16_vm0, %v11485_v1  ;;  %522 = vst.msk [vmem:[#allocation2 + $0xfc8] sm:$0xff] %vm16_vm0, %v11485_v1 }
 0x101   :  { %523 = vst.msk [vmem:[#allocation2 + $0xfd0] sm:$0xff] %vm16_vm0, %v11485_v1  ;;  %524 = vst.msk [vmem:[#allocation2 + $0xfd8] sm:$0xff] %vm16_vm0, %v11485_v1 }
 0x102   :  { %525 = vst.msk [vmem:[#allocation2 + $0xfe0] sm:$0xff] %vm16_vm0, %v11485_v1  ;;  %526 = vst.msk [vmem:[#allocation2 + $0xfe8] sm:$0xff] %vm16_vm0, %v11485_v1 }
 0x103   :  { %527 = vst.msk [vmem:[#allocation2 + $0xff0] sm:$0xff] %vm16_vm0, %v11485_v1  ;;  %528 = vst.msk [vmem:[#allocation2 + $0xff8] sm:$0xff] %vm16_vm0, %v11485_v1 }
 0x104   :  { %529 = vst.msk [vmem:[#allocation2 + $0x1000] sm:$0xff] %vm16_vm0, %v11485_v1  ;;  %530 = vst.msk [vmem:[#allocation2 + $0x1008] sm:$0xff] %vm16_vm0, %v11485_v1 }
 0x105   :  { %531 = vst.msk [vmem:[#allocation2 + $0x1010] sm:$0xff] %vm16_vm0, %v11485_v1  ;;  %532 = vst.msk [vmem:[#allocation2 + $0x1018] sm:$0xff] %vm16_vm0, %v11485_v1 }
 0x106   :  { %533 = vst.msk [vmem:[#allocation2 + $0x1020] sm:$0xff] %vm16_vm0, %v11485_v1  ;;  %534 = vst.msk [vmem:[#allocation2 + $0x1028] sm:$0xff] %vm16_vm0, %v11485_v1 }
 0x107   :  { %535 = vst.msk [vmem:[#allocation2 + $0x1030] sm:$0xff] %vm16_vm0, %v11485_v1  ;;  %536 = vst.msk [vmem:[#allocation2 + $0x1038] sm:$0xff] %vm16_vm0, %v11485_v1 }
 0x108   :  { %537 = vst.msk [vmem:[#allocation2 + $0x1040] sm:$0xff] %vm16_vm0, %v11485_v1  ;;  %538 = vst.msk [vmem:[#allocation2 + $0x1048] sm:$0xff] %vm16_vm0, %v11485_v1 }
 0x109   :  { %539 = vst.msk [vmem:[#allocation2 + $0x1050] sm:$0xff] %vm16_vm0, %v11485_v1  ;;  %540 = vst.msk [vmem:[#allocation2 + $0x1058] sm:$0xff] %vm16_vm0, %v11485_v1 }
 0x10a   :  { %541 = vst.msk [vmem:[#allocation2 + $0x1060] sm:$0xff] %vm16_vm0, %v11485_v1  ;;  %542 = vst.msk [vmem:[#allocation2 + $0x1068] sm:$0xff] %vm16_vm0, %v11485_v1 }
 0x10b   :  { %543 = vst.msk [vmem:[#allocation2 + $0x1070] sm:$0xff] %vm16_vm0, %v11485_v1  ;;  %544 = vst.msk [vmem:[#allocation2 + $0x1078] sm:$0xff] %vm16_vm0, %v11485_v1 }
 0x10c   :  { %545 = vst.msk [vmem:[#allocation2 + $0x1080] sm:$0xff] %vm16_vm0, %v11485_v1  ;;  %546 = vst.msk [vmem:[#allocation2 + $0x1088] sm:$0xff] %vm16_vm0, %v11485_v1 }
 0x10d   :  { %547 = vst.msk [vmem:[#allocation2 + $0x1090] sm:$0xff] %vm16_vm0, %v11485_v1  ;;  %548 = vst.msk [vmem:[#allocation2 + $0x1098] sm:$0xff] %vm16_vm0, %v11485_v1 }
 0x10e   :  { %549 = vst.msk [vmem:[#allocation2 + $0x10a0] sm:$0xff] %vm16_vm0, %v11485_v1  ;;  %550 = vst.msk [vmem:[#allocation2 + $0x10a8] sm:$0xff] %vm16_vm0, %v11485_v1 }
 0x10f   :  { %551 = vst.msk [vmem:[#allocation2 + $0x10b0] sm:$0xff] %vm16_vm0, %v11485_v1  ;;  %552 = vst.msk [vmem:[#allocation2 + $0x10b8] sm:$0xff] %vm16_vm0, %v11485_v1 }
 0x110   :  { %553 = vst.msk [vmem:[#allocation2 + $0x10c0] sm:$0xff] %vm16_vm0, %v11485_v1  ;;  %554 = vst.msk [vmem:[#allocation2 + $0x10c8] sm:$0xff] %vm16_vm0, %v11485_v1 }
 0x111   :  { %555 = vst.msk [vmem:[#allocation2 + $0x10d0] sm:$0xff] %vm16_vm0, %v11485_v1  ;;  %556 = vst.msk [vmem:[#allocation2 + $0x10d8] sm:$0xff] %vm16_vm0, %v11485_v1 }
 0x112   :  { %557 = vst.msk [vmem:[#allocation2 + $0x10e0] sm:$0xff] %vm16_vm0, %v11485_v1  ;;  %558 = vst.msk [vmem:[#allocation2 + $0x10e8] sm:$0xff] %vm16_vm0, %v11485_v1 }
 0x113   :  { %559 = vst.msk [vmem:[#allocation2 + $0x10f0] sm:$0xff] %vm16_vm0, %v11485_v1  ;;  %560 = vst.msk [vmem:[#allocation2 + $0x10f8] sm:$0xff] %vm16_vm0, %v11485_v1 }
 0x114   :  { %561 = vst.msk [vmem:[#allocation2 + $0x1100] sm:$0xff] %vm16_vm0, %v11485_v1  ;;  %562 = vst.msk [vmem:[#allocation2 + $0x1108] sm:$0xff] %vm16_vm0, %v11485_v1 }
 0x115   :  { %563 = vst.msk [vmem:[#allocation2 + $0x1110] sm:$0xff] %vm16_vm0, %v11485_v1  ;;  %564 = vst.msk [vmem:[#allocation2 + $0x1118] sm:$0xff] %vm16_vm0, %v11485_v1 }
 0x116   :  { %565 = vst.msk [vmem:[#allocation2 + $0x1120] sm:$0xff] %vm16_vm0, %v11485_v1  ;;  %566 = vst.msk [vmem:[#allocation2 + $0x1128] sm:$0xff] %vm16_vm0, %v11485_v1 }
 0x117   :  { %567 = vst.msk [vmem:[#allocation2 + $0x1130] sm:$0xff] %vm16_vm0, %v11485_v1  ;;  %568 = vst.msk [vmem:[#allocation2 + $0x1138] sm:$0xff] %vm16_vm0, %v11485_v1 }
 0x118   :  { %569 = vst.msk [vmem:[#allocation2 + $0x1140] sm:$0xff] %vm16_vm0, %v11485_v1  ;;  %570 = vst.msk [vmem:[#allocation2 + $0x1148] sm:$0xff] %vm16_vm0, %v11485_v1 }
 0x119   :  { %571 = vst.msk [vmem:[#allocation2 + $0x1150] sm:$0xff] %vm16_vm0, %v11485_v1  ;;  %572 = vst.msk [vmem:[#allocation2 + $0x1158] sm:$0xff] %vm16_vm0, %v11485_v1 }
 0x11a   :  { %573 = vst.msk [vmem:[#allocation2 + $0x1160] sm:$0xff] %vm16_vm0, %v11485_v1  ;;  %574 = vst.msk [vmem:[#allocation2 + $0x1168] sm:$0xff] %vm16_vm0, %v11485_v1 }
 0x11b   :  { %575 = vst.msk [vmem:[#allocation2 + $0x1170] sm:$0xff] %vm16_vm0, %v11485_v1  ;;  %576 = vst.msk [vmem:[#allocation2 + $0x1178] sm:$0xff] %vm16_vm0, %v11485_v1 }
 0x11c   :  { %577 = vst.msk [vmem:[#allocation2 + $0x1180] sm:$0xff] %vm16_vm0, %v11485_v1  ;;  %578 = vst.msk [vmem:[#allocation2 + $0x1188] sm:$0xff] %vm16_vm0, %v11485_v1 }
 0x11d   :  { %579 = vst.msk [vmem:[#allocation2 + $0x1190] sm:$0xff] %vm16_vm0, %v11485_v1  ;;  %580 = vst.msk [vmem:[#allocation2 + $0x1198] sm:$0xff] %vm16_vm0, %v11485_v1 }
 0x11e   :  { %581 = vst.msk [vmem:[#allocation2 + $0x11a0] sm:$0xff] %vm16_vm0, %v11485_v1  ;;  %582 = vst.msk [vmem:[#allocation2 + $0x11a8] sm:$0xff] %vm16_vm0, %v11485_v1 }
 0x11f   :  { %583 = vst.msk [vmem:[#allocation2 + $0x11b0] sm:$0xff] %vm16_vm0, %v11485_v1  ;;  %584 = vst.msk [vmem:[#allocation2 + $0x11b8] sm:$0xff] %vm16_vm0, %v11485_v1 }
 0x120   :  { %585 = vst.msk [vmem:[#allocation2 + $0x11c0] sm:$0xff] %vm16_vm0, %v11485_v1  ;;  %586 = vst.msk [vmem:[#allocation2 + $0x11c8] sm:$0xff] %vm16_vm0, %v11485_v1 }
 0x121   :  { %587 = vst.msk [vmem:[#allocation2 + $0x11d0] sm:$0xff] %vm16_vm0, %v11485_v1  ;;  %588 = vst.msk [vmem:[#allocation2 + $0x11d8] sm:$0xff] %vm16_vm0, %v11485_v1 }
 0x122   :  { %589 = vst.msk [vmem:[#allocation2 + $0x11e0] sm:$0xff] %vm16_vm0, %v11485_v1  ;;  %590 = vst.msk [vmem:[#allocation2 + $0x11e8] sm:$0xff] %vm16_vm0, %v11485_v1 }
 0x123   :  { %591 = vst.msk [vmem:[#allocation2 + $0x11f0] sm:$0xff] %vm16_vm0, %v11485_v1  ;;  %592 = vst.msk [vmem:[#allocation2 + $0x11f8] sm:$0xff] %vm16_vm0, %v11485_v1 }
 0x124   :  { %593 = vst.msk [vmem:[#allocation2 + $0x1200] sm:$0xff] %vm16_vm0, %v11485_v1  ;;  %594 = vst.msk [vmem:[#allocation2 + $0x1208] sm:$0xff] %vm16_vm0, %v11485_v1 }
 0x125   :  { %595 = vst.msk [vmem:[#allocation2 + $0x1210] sm:$0xff] %vm16_vm0, %v11485_v1  ;;  %596 = vst.msk [vmem:[#allocation2 + $0x1218] sm:$0xff] %vm16_vm0, %v11485_v1 }
 0x126   :  { %597 = vst.msk [vmem:[#allocation2 + $0x1220] sm:$0xff] %vm16_vm0, %v11485_v1  ;;  %598 = vst.msk [vmem:[#allocation2 + $0x1228] sm:$0xff] %vm16_vm0, %v11485_v1 }
 0x127   :  { %599 = vst.msk [vmem:[#allocation2 + $0x1230] sm:$0xff] %vm16_vm0, %v11485_v1  ;;  %600 = vst.msk [vmem:[#allocation2 + $0x1238] sm:$0xff] %vm16_vm0, %v11485_v1 }
 0x128   :  { %601 = vst.msk [vmem:[#allocation2 + $0x1240] sm:$0xff] %vm16_vm0, %v11485_v1  ;;  %602 = vst.msk [vmem:[#allocation2 + $0x1248] sm:$0xff] %vm16_vm0, %v11485_v1 }
 0x129   :  { %603 = vst.msk [vmem:[#allocation2 + $0x1250] sm:$0xff] %vm16_vm0, %v11485_v1  ;;  %604 = vst.msk [vmem:[#allocation2 + $0x1258] sm:$0xff] %vm16_vm0, %v11485_v1 }
 0x12a   :  { %605 = vst.msk [vmem:[#allocation2 + $0x1260] sm:$0xff] %vm16_vm0, %v11485_v1  ;;  %606 = vst.msk [vmem:[#allocation2 + $0x1268] sm:$0xff] %vm16_vm0, %v11485_v1 }
 0x12b   :  { %607 = vst.msk [vmem:[#allocation2 + $0x1270] sm:$0xff] %vm16_vm0, %v11485_v1  ;;  %608 = vst.msk [vmem:[#allocation2 + $0x1278] sm:$0xff] %vm16_vm0, %v11485_v1 }
 0x12c   :  { %609 = vst.msk [vmem:[#allocation2 + $0x1280] sm:$0xff] %vm16_vm0, %v11485_v1  ;;  %610 = vst.msk [vmem:[#allocation2 + $0x1288] sm:$0xff] %vm16_vm0, %v11485_v1 }
 0x12d   :  { %611 = vst.msk [vmem:[#allocation2 + $0x1290] sm:$0xff] %vm16_vm0, %v11485_v1  ;;  %612 = vst.msk [vmem:[#allocation2 + $0x1298] sm:$0xff] %vm16_vm0, %v11485_v1 }
 0x12e   :  { %613 = vst.msk [vmem:[#allocation2 + $0x12a0] sm:$0xff] %vm16_vm0, %v11485_v1  ;;  %614 = vst.msk [vmem:[#allocation2 + $0x12a8] sm:$0xff] %vm16_vm0, %v11485_v1 }
 0x12f   :  { %615 = vst.msk [vmem:[#allocation2 + $0x12b0] sm:$0xff] %vm16_vm0, %v11485_v1  ;;  %616 = vst.msk [vmem:[#allocation2 + $0x12b8] sm:$0xff] %vm16_vm0, %v11485_v1 }
 0x130   :  { %617 = vst.msk [vmem:[#allocation2 + $0x12c0] sm:$0xff] %vm16_vm0, %v11485_v1  ;;  %618 = vst.msk [vmem:[#allocation2 + $0x12c8] sm:$0xff] %vm16_vm0, %v11485_v1 }
 0x131   :  { %619 = vst.msk [vmem:[#allocation2 + $0x12d0] sm:$0xff] %vm16_vm0, %v11485_v1  ;;  %620 = vst.msk [vmem:[#allocation2 + $0x12d8] sm:$0xff] %vm16_vm0, %v11485_v1 }
 0x132   :  { %621 = vst.msk [vmem:[#allocation2 + $0x12e0] sm:$0xff] %vm16_vm0, %v11485_v1  ;;  %622 = vst.msk [vmem:[#allocation2 + $0x12e8] sm:$0xff] %vm16_vm0, %v11485_v1 }
 0x133   :  { %623 = vst.msk [vmem:[#allocation2 + $0x12f0] sm:$0xff] %vm16_vm0, %v11485_v1  ;;  %624 = vst.msk [vmem:[#allocation2 + $0x12f8] sm:$0xff] %vm16_vm0, %v11485_v1 }
 0x134   :  { %625 = vst.msk [vmem:[#allocation2 + $0x1300] sm:$0xff] %vm16_vm0, %v11485_v1  ;;  %626 = vst.msk [vmem:[#allocation2 + $0x1308] sm:$0xff] %vm16_vm0, %v11485_v1 }
 0x135   :  { %627 = vst.msk [vmem:[#allocation2 + $0x1310] sm:$0xff] %vm16_vm0, %v11485_v1  ;;  %628 = vst.msk [vmem:[#allocation2 + $0x1318] sm:$0xff] %vm16_vm0, %v11485_v1 }
 0x136   :  { %629 = vst.msk [vmem:[#allocation2 + $0x1320] sm:$0xff] %vm16_vm0, %v11485_v1  ;;  %630 = vst.msk [vmem:[#allocation2 + $0x1328] sm:$0xff] %vm16_vm0, %v11485_v1 }
 0x137   :  { %631 = vst.msk [vmem:[#allocation2 + $0x1330] sm:$0xff] %vm16_vm0, %v11485_v1  ;;  %632 = vst.msk [vmem:[#allocation2 + $0x1338] sm:$0xff] %vm16_vm0, %v11485_v1 }
 0x138   :  { %633 = vst.msk [vmem:[#allocation2 + $0x1340] sm:$0xff] %vm16_vm0, %v11485_v1  ;;  %634 = vst.msk [vmem:[#allocation2 + $0x1348] sm:$0xff] %vm16_vm0, %v11485_v1 }
 0x139   :  { %635 = vst.msk [vmem:[#allocation2 + $0x1350] sm:$0xff] %vm16_vm0, %v11485_v1  ;;  %636 = vst.msk [vmem:[#allocation2 + $0x1358] sm:$0xff] %vm16_vm0, %v11485_v1 }
 0x13a   :  { %637 = vst.msk [vmem:[#allocation2 + $0x1360] sm:$0xff] %vm16_vm0, %v11485_v1  ;;  %638 = vst.msk [vmem:[#allocation2 + $0x1368] sm:$0xff] %vm16_vm0, %v11485_v1 }
 0x13b   :  { %639 = vst.msk [vmem:[#allocation2 + $0x1370] sm:$0xff] %vm16_vm0, %v11485_v1  ;;  %640 = vst.msk [vmem:[#allocation2 + $0x1378] sm:$0xff] %vm16_vm0, %v11485_v1 }
 0x13c   :  { %641 = vst.msk [vmem:[#allocation2 + $0x1380] sm:$0xff] %vm16_vm0, %v11485_v1  ;;  %642 = vst.msk [vmem:[#allocation2 + $0x1388] sm:$0xff] %vm16_vm0, %v11485_v1 }
 0x13d   :  { %643 = vst.msk [vmem:[#allocation2 + $0x1390] sm:$0xff] %vm16_vm0, %v11485_v1  ;;  %644 = vst.msk [vmem:[#allocation2 + $0x1398] sm:$0xff] %vm16_vm0, %v11485_v1 }
 0x13e   :  { %645 = vst.msk [vmem:[#allocation2 + $0x13a0] sm:$0xff] %vm16_vm0, %v11485_v1  ;;  %646 = vst.msk [vmem:[#allocation2 + $0x13a8] sm:$0xff] %vm16_vm0, %v11485_v1 }
 0x13f   :  { %647 = vst.msk [vmem:[#allocation2 + $0x13b0] sm:$0xff] %vm16_vm0, %v11485_v1  ;;  %648 = vst.msk [vmem:[#allocation2 + $0x13b8] sm:$0xff] %vm16_vm0, %v11485_v1 }
 0x140   :  { %649 = vst.msk [vmem:[#allocation2 + $0x13c0] sm:$0xff] %vm16_vm0, %v11485_v1  ;;  %650 = vst.msk [vmem:[#allocation2 + $0x13c8] sm:$0xff] %vm16_vm0, %v11485_v1 }
 0x141   :  { %651 = vst.msk [vmem:[#allocation2 + $0x13d0] sm:$0xff] %vm16_vm0, %v11485_v1  ;;  %652 = vst.msk [vmem:[#allocation2 + $0x13d8] sm:$0xff] %vm16_vm0, %v11485_v1 }
 0x142   :  { %653 = vst.msk [vmem:[#allocation2 + $0x13e0] sm:$0xff] %vm16_vm0, %v11485_v1  ;;  %654 = vst.msk [vmem:[#allocation2 + $0x13e8] sm:$0xff] %vm16_vm0, %v11485_v1 }
 0x143   :  { %655 = vst.msk [vmem:[#allocation2 + $0x13f0] sm:$0xff] %vm16_vm0, %v11485_v1  ;;  %656 = vst.msk [vmem:[#allocation2 + $0x13f8] sm:$0xff] %vm16_vm0, %v11485_v1 }
 0x144   :  { %657 = vst.msk [vmem:[#allocation2 + $0x1400] sm:$0xff] %vm16_vm0, %v11485_v1  ;;  %658 = vst.msk [vmem:[#allocation2 + $0x1408] sm:$0xff] %vm16_vm0, %v11485_v1 }
 0x145   :  { %659 = vst.msk [vmem:[#allocation2 + $0x1410] sm:$0xff] %vm16_vm0, %v11485_v1  ;;  %660 = vst.msk [vmem:[#allocation2 + $0x1418] sm:$0xff] %vm16_vm0, %v11485_v1 }
 0x146   :  { %661 = vst.msk [vmem:[#allocation2 + $0x1420] sm:$0xff] %vm16_vm0, %v11485_v1  ;;  %662 = vst.msk [vmem:[#allocation2 + $0x1428] sm:$0xff] %vm16_vm0, %v11485_v1 }
 0x147   :  { %663 = vst.msk [vmem:[#allocation2 + $0x1430] sm:$0xff] %vm16_vm0, %v11485_v1  ;;  %664 = vst.msk [vmem:[#allocation2 + $0x1438] sm:$0xff] %vm16_vm0, %v11485_v1 }
 0x148   :  { %665 = vst.msk [vmem:[#allocation2 + $0x1440] sm:$0xff] %vm16_vm0, %v11485_v1  ;;  %666 = vst.msk [vmem:[#allocation2 + $0x1448] sm:$0xff] %vm16_vm0, %v11485_v1 }
 0x149   :  { %667 = vst.msk [vmem:[#allocation2 + $0x1450] sm:$0xff] %vm16_vm0, %v11485_v1  ;;  %668 = vst.msk [vmem:[#allocation2 + $0x1458] sm:$0xff] %vm16_vm0, %v11485_v1 }
 0x14a   :  { %669 = vst.msk [vmem:[#allocation2 + $0x1460] sm:$0xff] %vm16_vm0, %v11485_v1  ;;  %670 = vst.msk [vmem:[#allocation2 + $0x1468] sm:$0xff] %vm16_vm0, %v11485_v1 }
 0x14b   :  { %671 = vst.msk [vmem:[#allocation2 + $0x1470] sm:$0xff] %vm16_vm0, %v11485_v1  ;;  %672 = vst.msk [vmem:[#allocation2 + $0x1478] sm:$0xff] %vm16_vm0, %v11485_v1 }
 0x14c   :  { %673 = vst.msk [vmem:[#allocation2 + $0x1480] sm:$0xff] %vm16_vm0, %v11485_v1  ;;  %674 = vst.msk [vmem:[#allocation2 + $0x1488] sm:$0xff] %vm16_vm0, %v11485_v1 }
 0x14d   :  { %675 = vst.msk [vmem:[#allocation2 + $0x1490] sm:$0xff] %vm16_vm0, %v11485_v1  ;;  %676 = vst.msk [vmem:[#allocation2 + $0x1498] sm:$0xff] %vm16_vm0, %v11485_v1  ;;  %v10869_v1 = vld [vmem:[%s16583_s0 + $0x18c] sm:$0xff]  }
 0x14e   :  { %5031 = vst.msk [vmem:[#allocation2 + $0x28] sm:$0xf0] %vm5030_vm1, %v10807_v2  ;;  %5037 = vst.msk [vmem:[#allocation2 + $0x50] sm:$0xf0] %vm5030_vm1, %v10812_v7  ;;  %v10870_v2 = vld [vmem:[%s16583_s0 + $0x194] sm:$0xff]  }
 0x14f   :  { %5032 = vst.msk [vmem:[#allocation2 + $0x30] sm:$0xff] %vm16_vm0, %v10808_v3  ;;  %5033 = vst.msk [vmem:[#allocation2 + $0x38] sm:$0xff] %vm16_vm0, %v10809_v4  ;;  %v10871_v3 = vld [vmem:[%s16583_s0 + $0x19c] ss:$0 sps:$4 sm:$0xff]   ;;  %v10872_v4 = vld [vmem:[%s16583_s0 + $0x1a0] ss:$0 sps:$4 sm:$0xff]  }
 0x150   :  { %5034 = vst.msk [vmem:[#allocation2 + $0x40] sm:$0xff] %vm16_vm0, %v10810_v5  ;;  %5038 = vst.msk [vmem:[#allocation2 + $0x58] sm:$0xff] %vm16_vm0, %v10813_v8  ;;  %v10873_v5 = vld [vmem:[%s16583_s0 + $0x1a4] sm:$0xff]   ;;  %v10875_v7 = vld [vmem:[%s16583_s0 + $0x1b4] sm:$0xff]  }
 0x151   :  { %5036 = vst.msk [vmem:[#allocation2 + $0x48] sm:$0xf] %vm5035_vm2, %v10811_v6  ;;  %5041 = vst.msk [vmem:[#allocation2 + $0x70] sm:$0xf] %vm5035_vm2, %v10816_v11  ;;  %v10874_v6 = vld [vmem:[%s16583_s0 + $0x1ac] sm:$0xff]  }
 0x152   :  { %5039 = vst.msk [vmem:[#allocation2 + $0x60] sm:$0xff] %vm16_vm0, %v10814_v9  ;;  %5040 = vst.msk [vmem:[#allocation2 + $0x68] sm:$0xff] %vm16_vm0, %v10815_v10  ;;  %v10876_v8 = vld [vmem:[%s16583_s0 + $0x1bc] ss:$0 sps:$4 sm:$0xff]   ;;  %v10877_v9 = vld [vmem:[%s16583_s0 + $0x1c0] ss:$0 sps:$4 sm:$0xff]  }
 0x153   :  { %5042 = vst.msk [vmem:[#allocation2 + $0x78] sm:$0xf0] %vm5030_vm1, %v10817_v12  ;;  %5047 = vst.msk [vmem:[#allocation2 + $0xa0] sm:$0xf0] %vm5030_vm1, %v10822_v17  ;;  %v10878_v10 = vld [vmem:[%s16583_s0 + $0x1c4] sm:$0xff]   ;;  %v10879_v11 = vld [vmem:[%s16583_s0 + $0x1cc] sm:$0xff]  }
 0x154   :  { %5043 = vst.msk [vmem:[#allocation2 + $0x80] sm:$0xff] %vm16_vm0, %v10818_v13  ;;  %5044 = vst.msk [vmem:[#allocation2 + $0x88] sm:$0xff] %vm16_vm0, %v10819_v14  ;;  %v10880_v12 = vld [vmem:[%s16583_s0 + $0x1d4] sm:$0xff]   ;;  %v10881_v13 = vld [vmem:[%s16583_s0 + $0x1dc] ss:$0 sps:$4 sm:$0xff]  }
 0x155   :  { %5045 = vst.msk [vmem:[#allocation2 + $0x90] sm:$0xff] %vm16_vm0, %v10820_v15  ;;  %5048 = vst.msk [vmem:[#allocation2 + $0xa8] sm:$0xff] %vm16_vm0, %v10823_v18  ;;  %v10882_v14 = vld [vmem:[%s16583_s0 + $0x1e0] ss:$0 sps:$4 sm:$0xff]   ;;  %v10883_v15 = vld [vmem:[%s16583_s0 + $0x1e4] sm:$0xff]  }
 0x156   :  { %5046 = vst.msk [vmem:[#allocation2 + $0x98] sm:$0xf] %vm5035_vm2, %v10821_v16  ;;  %5051 = vst.msk [vmem:[#allocation2 + $0xc0] sm:$0xf] %vm5035_vm2, %v10826_v21  ;;  %v10884_v16 = vld [vmem:[%s16583_s0 + $0x1ec] sm:$0xff]   ;;  %v10885_v17 = vld [vmem:[%s16583_s0 + $0x1f4] sm:$0xff]  }
 0x157   :  { %5049 = vst.msk [vmem:[#allocation2 + $0xb0] sm:$0xff] %vm16_vm0, %v10824_v19  ;;  %5050 = vst.msk [vmem:[#allocation2 + $0xb8] sm:$0xff] %vm16_vm0, %v10825_v20  ;;  %v10886_v18 = vld [vmem:[%s16583_s0 + $0x1fc] ss:$0 sps:$4 sm:$0xff]   ;;  %v10887_v19 = vld [vmem:[%s16583_s0 + $0x200] ss:$0 sps:$4 sm:$0xff]  }
 0x158   :  { %5052 = vst.msk [vmem:[#allocation2 + $0xc8] sm:$0xf0] %vm5030_vm1, %v10827_v22  ;;  %5057 = vst.msk [vmem:[#allocation2 + $0xf0] sm:$0xf0] %vm5030_vm1, %v10832_v27  ;;  %v10888_v20 = vld [vmem:[%s16583_s0 + $0x204] sm:$0xff]   ;;  %v10889_v21 = vld [vmem:[%s16583_s0 + $0x20c] sm:$0xff]  }
 0x159   :  { %5053 = vst.msk [vmem:[#allocation2 + $0xd0] sm:$0xff] %vm16_vm0, %v10828_v23  ;;  %5054 = vst.msk [vmem:[#allocation2 + $0xd8] sm:$0xff] %vm16_vm0, %v10829_v24  ;;  %v10890_v22 = vld [vmem:[%s16583_s0 + $0x214] sm:$0xff]   ;;  %v10891_v23 = vld [vmem:[%s16583_s0 + $0x21c] ss:$0 sps:$4 sm:$0xff]  }
 0x15a   :  { %5055 = vst.msk [vmem:[#allocation2 + $0xe0] sm:$0xff] %vm16_vm0, %v10830_v25  ;;  %5058 = vst.msk [vmem:[#allocation2 + $0xf8] sm:$0xff] %vm16_vm0, %v10833_v28  ;;  %v10892_v24 = vld [vmem:[%s16583_s0 + $0x220] ss:$0 sps:$4 sm:$0xff]   ;;  %v10893_v25 = vld [vmem:[%s16583_s0 + $0x224] sm:$0xff]  }
 0x15b   :  { %5056 = vst.msk [vmem:[#allocation2 + $0xe8] sm:$0xf] %vm5035_vm2, %v10831_v26  ;;  %5061 = vst.msk [vmem:[#allocation2 + $0x110] sm:$0xf] %vm5035_vm2, %v10836_v31  ;;  %v10894_v26 = vld [vmem:[%s16583_s0 + $0x22c] sm:$0xff]   ;;  %v10895_v27 = vld [vmem:[%s16583_s0 + $0x234] sm:$0xff]  }
 0x15c   :  { %5059 = vst.msk [vmem:[#allocation2 + $0x100] sm:$0xff] %vm16_vm0, %v10834_v29  ;;  %5060 = vst.msk [vmem:[#allocation2 + $0x108] sm:$0xff] %vm16_vm0, %v10835_v30  ;;  %v10896_v28 = vld [vmem:[%s16583_s0 + $0x23c] ss:$0 sps:$4 sm:$0xff]   ;;  %v10897_v29 = vld [vmem:[%s16583_s0 + $0x240] ss:$0 sps:$4 sm:$0xff]  }
 0x15d   :  { %5062 = vst.msk [vmem:[#allocation2 + $0x118] sm:$0xf0] %vm5030_vm1, %v10837_v32  ;;  %5067 = vst.msk [vmem:[#allocation2 + $0x140] sm:$0xf0] %vm5030_vm1, %v10842_v37  ;;  %v10898_v30 = vld [vmem:[%s16583_s0 + $0x244] sm:$0xff]   ;;  %v10899_v31 = vld [vmem:[%s16583_s0 + $0x24c] sm:$0xff]  }
 0x15e   :  { %5063 = vst.msk [vmem:[#allocation2 + $0x120] sm:$0xff] %vm16_vm0, %v10838_v33  ;;  %5064 = vst.msk [vmem:[#allocation2 + $0x128] sm:$0xff] %vm16_vm0, %v10839_v34  ;;  %v10900_v32 = vld [vmem:[%s16583_s0 + $0x254] sm:$0xff]   ;;  %v10901_v33 = vld [vmem:[%s16583_s0 + $0x25c] ss:$0 sps:$4 sm:$0xff]  }
 0x15f   :  { %5065 = vst.msk [vmem:[#allocation2 + $0x130] sm:$0xff] %vm16_vm0, %v10840_v35  ;;  %5068 = vst.msk [vmem:[#allocation2 + $0x148] sm:$0xff] %vm16_vm0, %v10843_v38  ;;  %v10902_v34 = vld [vmem:[%s16583_s0 + $0x260] ss:$0 sps:$4 sm:$0xff]   ;;  %v10903_v35 = vld [vmem:[%s16583_s0 + $0x264] sm:$0xff]  }
 0x160   :  { %5066 = vst.msk [vmem:[#allocation2 + $0x138] sm:$0xf] %vm5035_vm2, %v10841_v36  ;;  %5071 = vst.msk [vmem:[#allocation2 + $0x160] sm:$0xf] %vm5035_vm2, %v10846_v41  ;;  %v10904_v36 = vld [vmem:[%s16583_s0 + $0x26c] sm:$0xff]   ;;  %v10905_v37 = vld [vmem:[%s16583_s0 + $0x274] sm:$0xff]  }
 0x161   :  { %5069 = vst.msk [vmem:[#allocation2 + $0x150] sm:$0xff] %vm16_vm0, %v10844_v39  ;;  %5070 = vst.msk [vmem:[#allocation2 + $0x158] sm:$0xff] %vm16_vm0, %v10845_v40  ;;  %v10906_v38 = vld [vmem:[%s16583_s0 + $0x27c] ss:$0 sps:$4 sm:$0xff]   ;;  %v10907_v39 = vld [vmem:[%s16583_s0 + $0x280] ss:$0 sps:$4 sm:$0xff]  }
 0x162   :  { %5072 = vst.msk [vmem:[#allocation2 + $0x168] sm:$0xf0] %vm5030_vm1, %v10847_v42  ;;  %5077 = vst.msk [vmem:[#allocation2 + $0x190] sm:$0xf0] %vm5030_vm1, %v10852_v47  ;;  %v10908_v40 = vld [vmem:[%s16583_s0 + $0x284] sm:$0xff]   ;;  %v10909_v41 = vld [vmem:[%s16583_s0 + $0x28c] sm:$0xff]  }
 0x163   :  { %5073 = vst.msk [vmem:[#allocation2 + $0x170] sm:$0xff] %vm16_vm0, %v10848_v43  ;;  %5074 = vst.msk [vmem:[#allocation2 + $0x178] sm:$0xff] %vm16_vm0, %v10849_v44  ;;  %v10910_v42 = vld [vmem:[%s16583_s0 + $0x294] sm:$0xff]   ;;  %v10911_v43 = vld [vmem:[%s16583_s0 + $0x29c] ss:$0 sps:$4 sm:$0xff]  }
 0x164   :  { %5075 = vst.msk [vmem:[#allocation2 + $0x180] sm:$0xff] %vm16_vm0, %v10850_v45  ;;  %5078 = vst.msk [vmem:[#allocation2 + $0x198] sm:$0xff] %vm16_vm0, %v10853_v48  ;;  %v10912_v44 = vld [vmem:[%s16583_s0 + $0x2a0] ss:$0 sps:$4 sm:$0xff]   ;;  %v10913_v45 = vld [vmem:[%s16583_s0 + $0x2a4] sm:$0xff]  }
 0x165   :  { %5076 = vst.msk [vmem:[#allocation2 + $0x188] sm:$0xf] %vm5035_vm2, %v10851_v46  ;;  %5081 = vst.msk [vmem:[#allocation2 + $0x1b0] sm:$0xf] %vm5035_vm2, %v10856_v51  ;;  %v10914_v46 = vld [vmem:[%s16583_s0 + $0x2ac] sm:$0xff]   ;;  %v10915_v47 = vld [vmem:[%s16583_s0 + $0x2b4] sm:$0xff]  }
 0x166   :  { %5079 = vst.msk [vmem:[#allocation2 + $0x1a0] sm:$0xff] %vm16_vm0, %v10854_v49  ;;  %5080 = vst.msk [vmem:[#allocation2 + $0x1a8] sm:$0xff] %vm16_vm0, %v10855_v50  ;;  %v10916_v48 = vld [vmem:[%s16583_s0 + $0x2bc] ss:$0 sps:$4 sm:$0xff]   ;;  %v10917_v49 = vld [vmem:[%s16583_s0 + $0x2c0] ss:$0 sps:$4 sm:$0xff]  }
 0x167   :  { %5082 = vst.msk [vmem:[#allocation2 + $0x1b8] sm:$0xf0] %vm5030_vm1, %v10857_v52  ;;  %5087 = vst.msk [vmem:[#allocation2 + $0x1e0] sm:$0xf0] %vm5030_vm1, %v10862_v57  ;;  %v10918_v50 = vld [vmem:[%s16583_s0 + $0x2c4] sm:$0xff]   ;;  %v10919_v51 = vld [vmem:[%s16583_s0 + $0x2cc] sm:$0xff]  }
 0x168   :  { %5083 = vst.msk [vmem:[#allocation2 + $0x1c0] sm:$0xff] %vm16_vm0, %v10858_v53  ;;  %5084 = vst.msk [vmem:[#allocation2 + $0x1c8] sm:$0xff] %vm16_vm0, %v10859_v54  ;;  %v10920_v52 = vld [vmem:[%s16583_s0 + $0x2d4] sm:$0xff]   ;;  %v10921_v53 = vld [vmem:[%s16583_s0 + $0x2dc] ss:$0 sps:$4 sm:$0xff]  }
 0x169   :  { %5085 = vst.msk [vmem:[#allocation2 + $0x1d0] sm:$0xff] %vm16_vm0, %v10860_v55  ;;  %5088 = vst.msk [vmem:[#allocation2 + $0x1e8] sm:$0xff] %vm16_vm0, %v10863_v58  ;;  %v10922_v54 = vld [vmem:[%s16583_s0 + $0x2e0] ss:$0 sps:$4 sm:$0xff]   ;;  %v10923_v55 = vld [vmem:[%s16583_s0 + $0x2e4] sm:$0xff]  }
 0x16a   :  { %5086 = vst.msk [vmem:[#allocation2 + $0x1d8] sm:$0xf] %vm5035_vm2, %v10861_v56  ;;  %5091 = vst.msk [vmem:[#allocation2 + $0x200] sm:$0xf] %vm5035_vm2, %v10866_v61  ;;  %v10924_v56 = vld [vmem:[%s16583_s0 + $0x2ec] sm:$0xff]   ;;  %v10925_v57 = vld [vmem:[%s16583_s0 + $0x2f4] sm:$0xff]  }
 0x16b   :  { %5089 = vst.msk [vmem:[#allocation2 + $0x1f0] sm:$0xff] %vm16_vm0, %v10864_v59  ;;  %5090 = vst.msk [vmem:[#allocation2 + $0x1f8] sm:$0xff] %vm16_vm0, %v10865_v60  ;;  %v10926_v58 = vld [vmem:[%s16583_s0 + $0x2fc] ss:$0 sps:$4 sm:$0xff]   ;;  %v10927_v59 = vld [vmem:[%s16583_s0 + $0x300] ss:$0 sps:$4 sm:$0xff]  }
 0x16c   :  { %5092 = vst.msk [vmem:[#allocation2 + $0x208] sm:$0xf0] %vm5030_vm1, %v10867_v62  ;;  %5097 = vst.msk [vmem:[#allocation2 + $0x230] sm:$0xf0] %vm5030_vm1, %v10872_v4  ;;  %v10928_v60 = vld [vmem:[%s16583_s0 + $0x304] sm:$0xff]   ;;  %v10929_v61 = vld [vmem:[%s16583_s0 + $0x30c] sm:$0xff]  }
 0x16d   :  { %5093 = vst.msk [vmem:[#allocation2 + $0x210] sm:$0xff] %vm16_vm0, %v10868_v63  ;;  %5094 = vst.msk [vmem:[#allocation2 + $0x218] sm:$0xff] %vm16_vm0, %v10869_v1  ;;  %v10930_v62 = vld [vmem:[%s16583_s0 + $0x314] sm:$0xff]   ;;  %v10931_v63 = vld [vmem:[%s16583_s0 + $0x31c] ss:$0 sps:$4 sm:$0xff]  }
 0x16e   :  { %5095 = vst.msk [vmem:[#allocation2 + $0x220] sm:$0xff] %vm16_vm0, %v10870_v2  ;;  %5098 = vst.msk [vmem:[#allocation2 + $0x238] sm:$0xff] %vm16_vm0, %v10873_v5  ;;  %v10932_v1 = vld [vmem:[%s16583_s0 + $0x320] ss:$0 sps:$4 sm:$0xff]   ;;  %v10933_v2 = vld [vmem:[%s16583_s0 + $0x324] sm:$0xff]  }
 0x16f   :  { %5096 = vst.msk [vmem:[#allocation2 + $0x228] sm:$0xf] %vm5035_vm2, %v10871_v3  ;;  %5101 = vst.msk [vmem:[#allocation2 + $0x250] sm:$0xf] %vm5035_vm2, %v10876_v8  ;;  %v10934_v3 = vld [vmem:[%s16583_s0 + $0x32c] sm:$0xff]   ;;  %v10935_v4 = vld [vmem:[%s16583_s0 + $0x334] sm:$0xff]  }
 0x170   :  { %5099 = vst.msk [vmem:[#allocation2 + $0x240] sm:$0xff] %vm16_vm0, %v10874_v6  ;;  %5100 = vst.msk [vmem:[#allocation2 + $0x248] sm:$0xff] %vm16_vm0, %v10875_v7  ;;  %v10936_v5 = vld [vmem:[%s16583_s0 + $0x33c] ss:$0 sps:$4 sm:$0xff]   ;;  %v10937_v6 = vld [vmem:[%s16583_s0 + $0x340] ss:$0 sps:$4 sm:$0xff]  }
 0x171   :  { %5102 = vst.msk [vmem:[#allocation2 + $0x258] sm:$0xf0] %vm5030_vm1, %v10877_v9  ;;  %5107 = vst.msk [vmem:[#allocation2 + $0x280] sm:$0xf0] %vm5030_vm1, %v10882_v14  ;;  %v10938_v7 = vld [vmem:[%s16583_s0 + $0x344] sm:$0xff]   ;;  %v10939_v8 = vld [vmem:[%s16583_s0 + $0x34c] sm:$0xff]  }
 0x172   :  { %5103 = vst.msk [vmem:[#allocation2 + $0x260] sm:$0xff] %vm16_vm0, %v10878_v10  ;;  %5104 = vst.msk [vmem:[#allocation2 + $0x268] sm:$0xff] %vm16_vm0, %v10879_v11  ;;  %v10940_v9 = vld [vmem:[%s16583_s0 + $0x354] sm:$0xff]   ;;  %v10941_v10 = vld [vmem:[%s16583_s0 + $0x35c] ss:$0 sps:$4 sm:$0xff]  }
 0x173   :  { %5105 = vst.msk [vmem:[#allocation2 + $0x270] sm:$0xff] %vm16_vm0, %v10880_v12  ;;  %5108 = vst.msk [vmem:[#allocation2 + $0x288] sm:$0xff] %vm16_vm0, %v10883_v15  ;;  %v10942_v11 = vld [vmem:[%s16583_s0 + $0x360] ss:$0 sps:$4 sm:$0xff]   ;;  %v10943_v12 = vld [vmem:[%s16583_s0 + $0x364] sm:$0xff]  }
 0x174   :  { %5106 = vst.msk [vmem:[#allocation2 + $0x278] sm:$0xf] %vm5035_vm2, %v10881_v13  ;;  %5111 = vst.msk [vmem:[#allocation2 + $0x2a0] sm:$0xf] %vm5035_vm2, %v10886_v18  ;;  %v10944_v13 = vld [vmem:[%s16583_s0 + $0x36c] sm:$0xff]   ;;  %v10945_v14 = vld [vmem:[%s16583_s0 + $0x374] sm:$0xff]  }
 0x175   :  { %5109 = vst.msk [vmem:[#allocation2 + $0x290] sm:$0xff] %vm16_vm0, %v10884_v16  ;;  %5110 = vst.msk [vmem:[#allocation2 + $0x298] sm:$0xff] %vm16_vm0, %v10885_v17  ;;  %v10946_v15 = vld [vmem:[%s16583_s0 + $0x37c] ss:$0 sps:$4 sm:$0xff]   ;;  %v10947_v16 = vld [vmem:[%s16583_s0 + $0x380] ss:$0 sps:$4 sm:$0xff]  }
 0x176   :  { %5112 = vst.msk [vmem:[#allocation2 + $0x2a8] sm:$0xf0] %vm5030_vm1, %v10887_v19  ;;  %5117 = vst.msk [vmem:[#allocation2 + $0x2d0] sm:$0xf0] %vm5030_vm1, %v10892_v24  ;;  %v10948_v17 = vld [vmem:[%s16583_s0 + $0x384] sm:$0xff]   ;;  %v10949_v18 = vld [vmem:[%s16583_s0 + $0x38c] sm:$0xff]  }
 0x177   :  { %5113 = vst.msk [vmem:[#allocation2 + $0x2b0] sm:$0xff] %vm16_vm0, %v10888_v20  ;;  %5114 = vst.msk [vmem:[#allocation2 + $0x2b8] sm:$0xff] %vm16_vm0, %v10889_v21  ;;  %v10950_v19 = vld [vmem:[%s16583_s0 + $0x394] sm:$0xff]   ;;  %v10951_v20 = vld [vmem:[%s16583_s0 + $0x39c] ss:$0 sps:$4 sm:$0xff]  }
 0x178   :  { %5115 = vst.msk [vmem:[#allocation2 + $0x2c0] sm:$0xff] %vm16_vm0, %v10890_v22  ;;  %5118 = vst.msk [vmem:[#allocation2 + $0x2d8] sm:$0xff] %vm16_vm0, %v10893_v25  ;;  %v10952_v21 = vld [vmem:[%s16583_s0 + $0x3a0] ss:$0 sps:$4 sm:$0xff]   ;;  %v10953_v22 = vld [vmem:[%s16583_s0 + $0x3a4] sm:$0xff]  }
 0x179   :  { %5116 = vst.msk [vmem:[#allocation2 + $0x2c8] sm:$0xf] %vm5035_vm2, %v10891_v23  ;;  %5121 = vst.msk [vmem:[#allocation2 + $0x2f0] sm:$0xf] %vm5035_vm2, %v10896_v28  ;;  %v10954_v23 = vld [vmem:[%s16583_s0 + $0x3ac] sm:$0xff]   ;;  %v10955_v24 = vld [vmem:[%s16583_s0 + $0x3b4] sm:$0xff]  }
 0x17a   :  { %5119 = vst.msk [vmem:[#allocation2 + $0x2e0] sm:$0xff] %vm16_vm0, %v10894_v26  ;;  %5120 = vst.msk [vmem:[#allocation2 + $0x2e8] sm:$0xff] %vm16_vm0, %v10895_v27  ;;  %v10956_v25 = vld [vmem:[%s16583_s0 + $0x3bc] ss:$0 sps:$4 sm:$0xff]   ;;  %v10957_v26 = vld [vmem:[%s16583_s0 + $0x3c0] ss:$0 sps:$4 sm:$0xff]  }
 0x17b   :  { %5122 = vst.msk [vmem:[#allocation2 + $0x2f8] sm:$0xf0] %vm5030_vm1, %v10897_v29  ;;  %5127 = vst.msk [vmem:[#allocation2 + $0x320] sm:$0xf0] %vm5030_vm1, %v10902_v34  ;;  %v10958_v27 = vld [vmem:[%s16583_s0 + $0x3c4] sm:$0xff]   ;;  %v10959_v28 = vld [vmem:[%s16583_s0 + $0x3cc] sm:$0xff]  }
 0x17c   :  { %5123 = vst.msk [vmem:[#allocation2 + $0x300] sm:$0xff] %vm16_vm0, %v10898_v30  ;;  %5124 = vst.msk [vmem:[#allocation2 + $0x308] sm:$0xff] %vm16_vm0, %v10899_v31  ;;  %v10960_v29 = vld [vmem:[%s16583_s0 + $0x3d4] sm:$0xff]   ;;  %v10961_v30 = vld [vmem:[%s16583_s0 + $0x3dc] ss:$0 sps:$4 sm:$0xff]  }
 0x17d   :  { %5125 = vst.msk [vmem:[#allocation2 + $0x310] sm:$0xff] %vm16_vm0, %v10900_v32  ;;  %5128 = vst.msk [vmem:[#allocation2 + $0x328] sm:$0xff] %vm16_vm0, %v10903_v35  ;;  %v10962_v31 = vld [vmem:[%s16583_s0 + $0x3e0] ss:$0 sps:$4 sm:$0xff]   ;;  %v10963_v32 = vld [vmem:[%s16583_s0 + $0x3e4] sm:$0xff]  }
 0x17e   :  { %5126 = vst.msk [vmem:[#allocation2 + $0x318] sm:$0xf] %vm5035_vm2, %v10901_v33  ;;  %5131 = vst.msk [vmem:[#allocation2 + $0x340] sm:$0xf] %vm5035_vm2, %v10906_v38  ;;  %v10964_v33 = vld [vmem:[%s16583_s0 + $0x3ec] sm:$0xff]   ;;  %v10965_v34 = vld [vmem:[%s16583_s0 + $0x3f4] sm:$0xff]  }
 0x17f   :  { %5129 = vst.msk [vmem:[#allocation2 + $0x330] sm:$0xff] %vm16_vm0, %v10904_v36  ;;  %5130 = vst.msk [vmem:[#allocation2 + $0x338] sm:$0xff] %vm16_vm0, %v10905_v37  ;;  %v10966_v35 = vld [vmem:[%s16583_s0 + $0x3fc] ss:$0 sps:$4 sm:$0xff]   ;;  %v10967_v36 = vld [vmem:[%s16583_s0 + $0x400] ss:$0 sps:$4 sm:$0xff]  }
 0x180   :  { %5132 = vst.msk [vmem:[#allocation2 + $0x348] sm:$0xf0] %vm5030_vm1, %v10907_v39  ;;  %5137 = vst.msk [vmem:[#allocation2 + $0x370] sm:$0xf0] %vm5030_vm1, %v10912_v44  ;;  %v10968_v37 = vld [vmem:[%s16583_s0 + $0x404] sm:$0xff]   ;;  %v10969_v38 = vld [vmem:[%s16583_s0 + $0x40c] sm:$0xff]  }
 0x181   :  { %5133 = vst.msk [vmem:[#allocation2 + $0x350] sm:$0xff] %vm16_vm0, %v10908_v40  ;;  %5134 = vst.msk [vmem:[#allocation2 + $0x358] sm:$0xff] %vm16_vm0, %v10909_v41  ;;  %v10970_v39 = vld [vmem:[%s16583_s0 + $0x414] sm:$0xff]   ;;  %v10971_v40 = vld [vmem:[%s16583_s0 + $0x41c] ss:$0 sps:$4 sm:$0xff]  }
 0x182   :  { %5135 = vst.msk [vmem:[#allocation2 + $0x360] sm:$0xff] %vm16_vm0, %v10910_v42  ;;  %5138 = vst.msk [vmem:[#allocation2 + $0x378] sm:$0xff] %vm16_vm0, %v10913_v45  ;;  %v10972_v41 = vld [vmem:[%s16583_s0 + $0x420] ss:$0 sps:$4 sm:$0xff]   ;;  %v10973_v42 = vld [vmem:[%s16583_s0 + $0x424] sm:$0xff]  }
 0x183   :  { %5136 = vst.msk [vmem:[#allocation2 + $0x368] sm:$0xf] %vm5035_vm2, %v10911_v43  ;;  %5141 = vst.msk [vmem:[#allocation2 + $0x390] sm:$0xf] %vm5035_vm2, %v10916_v48  ;;  %v10974_v43 = vld [vmem:[%s16583_s0 + $0x42c] sm:$0xff]   ;;  %v10975_v44 = vld [vmem:[%s16583_s0 + $0x434] sm:$0xff]  }
 0x184   :  { %5139 = vst.msk [vmem:[#allocation2 + $0x380] sm:$0xff] %vm16_vm0, %v10914_v46  ;;  %5140 = vst.msk [vmem:[#allocation2 + $0x388] sm:$0xff] %vm16_vm0, %v10915_v47  ;;  %v10976_v45 = vld [vmem:[%s16583_s0 + $0x43c] ss:$0 sps:$4 sm:$0xff]   ;;  %v10977_v46 = vld [vmem:[%s16583_s0 + $0x440] ss:$0 sps:$4 sm:$0xff]  }
 0x185   :  { %5142 = vst.msk [vmem:[#allocation2 + $0x398] sm:$0xf0] %vm5030_vm1, %v10917_v49  ;;  %5147 = vst.msk [vmem:[#allocation2 + $0x3c0] sm:$0xf0] %vm5030_vm1, %v10922_v54  ;;  %v10978_v47 = vld [vmem:[%s16583_s0 + $0x444] sm:$0xff]   ;;  %v10979_v48 = vld [vmem:[%s16583_s0 + $0x44c] sm:$0xff]  }
 0x186   :  { %5143 = vst.msk [vmem:[#allocation2 + $0x3a0] sm:$0xff] %vm16_vm0, %v10918_v50  ;;  %5144 = vst.msk [vmem:[#allocation2 + $0x3a8] sm:$0xff] %vm16_vm0, %v10919_v51  ;;  %v10980_v49 = vld [vmem:[%s16583_s0 + $0x454] sm:$0xff]   ;;  %v10981_v50 = vld [vmem:[%s16583_s0 + $0x45c] ss:$0 sps:$4 sm:$0xff]  }
 0x187   :  { %5145 = vst.msk [vmem:[#allocation2 + $0x3b0] sm:$0xff] %vm16_vm0, %v10920_v52  ;;  %5148 = vst.msk [vmem:[#allocation2 + $0x3c8] sm:$0xff] %vm16_vm0, %v10923_v55  ;;  %v10982_v51 = vld [vmem:[%s16583_s0 + $0x460] ss:$0 sps:$4 sm:$0xff]   ;;  %v10983_v52 = vld [vmem:[%s16583_s0 + $0x464] sm:$0xff]  }
 0x188   :  { %5146 = vst.msk [vmem:[#allocation2 + $0x3b8] sm:$0xf] %vm5035_vm2, %v10921_v53  ;;  %5151 = vst.msk [vmem:[#allocation2 + $0x3e0] sm:$0xf] %vm5035_vm2, %v10926_v58  ;;  %v10984_v53 = vld [vmem:[%s16583_s0 + $0x46c] sm:$0xff]   ;;  %v10985_v54 = vld [vmem:[%s16583_s0 + $0x474] sm:$0xff]  }
 0x189   :  { %5149 = vst.msk [vmem:[#allocation2 + $0x3d0] sm:$0xff] %vm16_vm0, %v10924_v56  ;;  %5150 = vst.msk [vmem:[#allocation2 + $0x3d8] sm:$0xff] %vm16_vm0, %v10925_v57  ;;  %v10986_v55 = vld [vmem:[%s16583_s0 + $0x47c] ss:$0 sps:$4 sm:$0xff]   ;;  %v10987_v56 = vld [vmem:[%s16583_s0 + $0x480] ss:$0 sps:$4 sm:$0xff]  }
 0x18a   :  { %5152 = vst.msk [vmem:[#allocation2 + $0x3e8] sm:$0xf0] %vm5030_vm1, %v10927_v59  ;;  %5157 = vst.msk [vmem:[#allocation2 + $0x410] sm:$0xf0] %vm5030_vm1, %v10932_v1  ;;  %v10988_v57 = vld [vmem:[%s16583_s0 + $0x484] sm:$0xff]   ;;  %v10989_v58 = vld [vmem:[%s16583_s0 + $0x48c] sm:$0xff]  }
 0x18b   :  { %5153 = vst.msk [vmem:[#allocation2 + $0x3f0] sm:$0xff] %vm16_vm0, %v10928_v60  ;;  %5154 = vst.msk [vmem:[#allocation2 + $0x3f8] sm:$0xff] %vm16_vm0, %v10929_v61  ;;  %v10990_v59 = vld [vmem:[%s16583_s0 + $0x494] sm:$0xff]   ;;  %v10991_v60 = vld [vmem:[%s16583_s0 + $0x49c] ss:$0 sps:$4 sm:$0xff]  }
 0x18c   :  { %5155 = vst.msk [vmem:[#allocation2 + $0x400] sm:$0xff] %vm16_vm0, %v10930_v62  ;;  %5158 = vst.msk [vmem:[#allocation2 + $0x418] sm:$0xff] %vm16_vm0, %v10933_v2  ;;  %v10992_v61 = vld [vmem:[%s16583_s0 + $0x4a0] ss:$0 sps:$4 sm:$0xff]   ;;  %v10993_v62 = vld [vmem:[%s16583_s0 + $0x4a4] sm:$0xff]  }
 0x18d   :  { %5156 = vst.msk [vmem:[#allocation2 + $0x408] sm:$0xf] %vm5035_vm2, %v10931_v63  ;;  %5161 = vst.msk [vmem:[#allocation2 + $0x430] sm:$0xf] %vm5035_vm2, %v10936_v5  ;;  %v10994_v63 = vld [vmem:[%s16583_s0 + $0x4ac] sm:$0xff]   ;;  %v10995_v1 = vld [vmem:[%s16583_s0 + $0x4b4] sm:$0xff]  }
 0x18e   :  { %5159 = vst.msk [vmem:[#allocation2 + $0x420] sm:$0xff] %vm16_vm0, %v10934_v3  ;;  %5160 = vst.msk [vmem:[#allocation2 + $0x428] sm:$0xff] %vm16_vm0, %v10935_v4  ;;  %v10996_v2 = vld [vmem:[%s16583_s0 + $0x4bc] ss:$0 sps:$4 sm:$0xff]   ;;  %v10997_v3 = vld [vmem:[%s16583_s0 + $0x4c0] ss:$0 sps:$4 sm:$0xff]  }
 0x18f   :  { %5162 = vst.msk [vmem:[#allocation2 + $0x438] sm:$0xf0] %vm5030_vm1, %v10937_v6  ;;  %5167 = vst.msk [vmem:[#allocation2 + $0x460] sm:$0xf0] %vm5030_vm1, %v10942_v11  ;;  %v10998_v4 = vld [vmem:[%s16583_s0 + $0x4c4] sm:$0xff]   ;;  %v10999_v5 = vld [vmem:[%s16583_s0 + $0x4cc] sm:$0xff]  }
 0x190   :  { %5163 = vst.msk [vmem:[#allocation2 + $0x440] sm:$0xff] %vm16_vm0, %v10938_v7  ;;  %5164 = vst.msk [vmem:[#allocation2 + $0x448] sm:$0xff] %vm16_vm0, %v10939_v8  ;;  %v11000_v6 = vld [vmem:[%s16583_s0 + $0x4d4] sm:$0xff]   ;;  %v11001_v7 = vld [vmem:[%s16583_s0 + $0x4dc] ss:$0 sps:$4 sm:$0xff]  }
 0x191   :  { %5165 = vst.msk [vmem:[#allocation2 + $0x450] sm:$0xff] %vm16_vm0, %v10940_v9  ;;  %5168 = vst.msk [vmem:[#allocation2 + $0x468] sm:$0xff] %vm16_vm0, %v10943_v12  ;;  %v11002_v8 = vld [vmem:[%s16583_s0 + $0x4e0] ss:$0 sps:$4 sm:$0xff]   ;;  %v11003_v9 = vld [vmem:[%s16583_s0 + $0x4e4] sm:$0xff]  }
 0x192   :  { %5166 = vst.msk [vmem:[#allocation2 + $0x458] sm:$0xf] %vm5035_vm2, %v10941_v10  ;;  %5171 = vst.msk [vmem:[#allocation2 + $0x480] sm:$0xf] %vm5035_vm2, %v10946_v15  ;;  %v11004_v10 = vld [vmem:[%s16583_s0 + $0x4ec] sm:$0xff]   ;;  %v11005_v11 = vld [vmem:[%s16583_s0 + $0x4f4] sm:$0xff]  }
 0x193   :  { %5169 = vst.msk [vmem:[#allocation2 + $0x470] sm:$0xff] %vm16_vm0, %v10944_v13  ;;  %5170 = vst.msk [vmem:[#allocation2 + $0x478] sm:$0xff] %vm16_vm0, %v10945_v14  ;;  %v11006_v12 = vld [vmem:[%s16583_s0 + $0x4fc] ss:$0 sps:$4 sm:$0xff]   ;;  %v11007_v13 = vld [vmem:[%s16583_s0 + $0x500] ss:$0 sps:$4 sm:$0xff]  }
 0x194   :  { %5172 = vst.msk [vmem:[#allocation2 + $0x488] sm:$0xf0] %vm5030_vm1, %v10947_v16  ;;  %5177 = vst.msk [vmem:[#allocation2 + $0x4b0] sm:$0xf0] %vm5030_vm1, %v10952_v21  ;;  %v11008_v14 = vld [vmem:[%s16583_s0 + $0x504] sm:$0xff]   ;;  %v11009_v15 = vld [vmem:[%s16583_s0 + $0x50c] sm:$0xff]  }
 0x195   :  { %5173 = vst.msk [vmem:[#allocation2 + $0x490] sm:$0xff] %vm16_vm0, %v10948_v17  ;;  %5174 = vst.msk [vmem:[#allocation2 + $0x498] sm:$0xff] %vm16_vm0, %v10949_v18  ;;  %v11010_v16 = vld [vmem:[%s16583_s0 + $0x514] sm:$0xff]   ;;  %v11011_v17 = vld [vmem:[%s16583_s0 + $0x51c] ss:$0 sps:$4 sm:$0xff]  }
 0x196   :  { %5175 = vst.msk [vmem:[#allocation2 + $0x4a0] sm:$0xff] %vm16_vm0, %v10950_v19  ;;  %5178 = vst.msk [vmem:[#allocation2 + $0x4b8] sm:$0xff] %vm16_vm0, %v10953_v22  ;;  %v11012_v18 = vld [vmem:[%s16583_s0 + $0x520] ss:$0 sps:$4 sm:$0xff]   ;;  %v11013_v19 = vld [vmem:[%s16583_s0 + $0x524] sm:$0xff]  }
 0x197   :  { %5176 = vst.msk [vmem:[#allocation2 + $0x4a8] sm:$0xf] %vm5035_vm2, %v10951_v20  ;;  %5181 = vst.msk [vmem:[#allocation2 + $0x4d0] sm:$0xf] %vm5035_vm2, %v10956_v25  ;;  %v11014_v20 = vld [vmem:[%s16583_s0 + $0x52c] sm:$0xff]   ;;  %v11015_v21 = vld [vmem:[%s16583_s0 + $0x534] sm:$0xff]  }
 0x198   :  { %5179 = vst.msk [vmem:[#allocation2 + $0x4c0] sm:$0xff] %vm16_vm0, %v10954_v23  ;;  %5180 = vst.msk [vmem:[#allocation2 + $0x4c8] sm:$0xff] %vm16_vm0, %v10955_v24  ;;  %v11016_v22 = vld [vmem:[%s16583_s0 + $0x53c] ss:$0 sps:$4 sm:$0xff]   ;;  %v11017_v23 = vld [vmem:[%s16583_s0 + $0x540] ss:$0 sps:$4 sm:$0xff]  }
 0x199   :  { %5182 = vst.msk [vmem:[#allocation2 + $0x4d8] sm:$0xf0] %vm5030_vm1, %v10957_v26  ;;  %5187 = vst.msk [vmem:[#allocation2 + $0x500] sm:$0xf0] %vm5030_vm1, %v10962_v31  ;;  %v11018_v24 = vld [vmem:[%s16583_s0 + $0x544] sm:$0xff]   ;;  %v11019_v25 = vld [vmem:[%s16583_s0 + $0x54c] sm:$0xff]  }
 0x19a   :  { %5183 = vst.msk [vmem:[#allocation2 + $0x4e0] sm:$0xff] %vm16_vm0, %v10958_v27  ;;  %5184 = vst.msk [vmem:[#allocation2 + $0x4e8] sm:$0xff] %vm16_vm0, %v10959_v28  ;;  %v11020_v26 = vld [vmem:[%s16583_s0 + $0x554] sm:$0xff]   ;;  %v11021_v27 = vld [vmem:[%s16583_s0 + $0x55c] ss:$0 sps:$4 sm:$0xff]  }
 0x19b   :  { %5185 = vst.msk [vmem:[#allocation2 + $0x4f0] sm:$0xff] %vm16_vm0, %v10960_v29  ;;  %5188 = vst.msk [vmem:[#allocation2 + $0x508] sm:$0xff] %vm16_vm0, %v10963_v32  ;;  %v11022_v28 = vld [vmem:[%s16583_s0 + $0x560] ss:$0 sps:$4 sm:$0xff]   ;;  %v11023_v29 = vld [vmem:[%s16583_s0 + $0x564] sm:$0xff]  }
 0x19c   :  { %5186 = vst.msk [vmem:[#allocation2 + $0x4f8] sm:$0xf] %vm5035_vm2, %v10961_v30  ;;  %5191 = vst.msk [vmem:[#allocation2 + $0x520] sm:$0xf] %vm5035_vm2, %v10966_v35  ;;  %v11024_v30 = vld [vmem:[%s16583_s0 + $0x56c] sm:$0xff]   ;;  %v11025_v31 = vld [vmem:[%s16583_s0 + $0x574] sm:$0xff]  }
 0x19d   :  { %5189 = vst.msk [vmem:[#allocation2 + $0x510] sm:$0xff] %vm16_vm0, %v10964_v33  ;;  %5190 = vst.msk [vmem:[#allocation2 + $0x518] sm:$0xff] %vm16_vm0, %v10965_v34  ;;  %v11026_v32 = vld [vmem:[%s16583_s0 + $0x57c] ss:$0 sps:$4 sm:$0xff]   ;;  %v11027_v33 = vld [vmem:[%s16583_s0 + $0x580] ss:$0 sps:$4 sm:$0xff]  }
 0x19e   :  { %5192 = vst.msk [vmem:[#allocation2 + $0x528] sm:$0xf0] %vm5030_vm1, %v10967_v36  ;;  %5197 = vst.msk [vmem:[#allocation2 + $0x550] sm:$0xf0] %vm5030_vm1, %v10972_v41  ;;  %v11028_v34 = vld [vmem:[%s16583_s0 + $0x584] sm:$0xff]   ;;  %v11029_v35 = vld [vmem:[%s16583_s0 + $0x58c] sm:$0xff]  }
 0x19f   :  { %5193 = vst.msk [vmem:[#allocation2 + $0x530] sm:$0xff] %vm16_vm0, %v10968_v37  ;;  %5194 = vst.msk [vmem:[#allocation2 + $0x538] sm:$0xff] %vm16_vm0, %v10969_v38  ;;  %v11030_v36 = vld [vmem:[%s16583_s0 + $0x594] sm:$0xff]   ;;  %v11031_v37 = vld [vmem:[%s16583_s0 + $0x59c] ss:$0 sps:$4 sm:$0xff]  }
 0x1a0   :  { %5195 = vst.msk [vmem:[#allocation2 + $0x540] sm:$0xff] %vm16_vm0, %v10970_v39  ;;  %5198 = vst.msk [vmem:[#allocation2 + $0x558] sm:$0xff] %vm16_vm0, %v10973_v42  ;;  %v11032_v38 = vld [vmem:[%s16583_s0 + $0x5a0] ss:$0 sps:$4 sm:$0xff]   ;;  %v11033_v39 = vld [vmem:[%s16583_s0 + $0x5a4] sm:$0xff]  }
 0x1a1   :  { %5196 = vst.msk [vmem:[#allocation2 + $0x548] sm:$0xf] %vm5035_vm2, %v10971_v40  ;;  %5201 = vst.msk [vmem:[#allocation2 + $0x570] sm:$0xf] %vm5035_vm2, %v10976_v45  ;;  %v11034_v40 = vld [vmem:[%s16583_s0 + $0x5ac] sm:$0xff]   ;;  %v11035_v41 = vld [vmem:[%s16583_s0 + $0x5b4] sm:$0xff]  }
 0x1a2   :  { %5199 = vst.msk [vmem:[#allocation2 + $0x560] sm:$0xff] %vm16_vm0, %v10974_v43  ;;  %5200 = vst.msk [vmem:[#allocation2 + $0x568] sm:$0xff] %vm16_vm0, %v10975_v44  ;;  %v11036_v42 = vld [vmem:[%s16583_s0 + $0x5bc] ss:$0 sps:$4 sm:$0xff]   ;;  %v11037_v43 = vld [vmem:[%s16583_s0 + $0x5c0] ss:$0 sps:$4 sm:$0xff]  }
 0x1a3   :  { %5202 = vst.msk [vmem:[#allocation2 + $0x578] sm:$0xf0] %vm5030_vm1, %v10977_v46  ;;  %5207 = vst.msk [vmem:[#allocation2 + $0x5a0] sm:$0xf0] %vm5030_vm1, %v10982_v51  ;;  %v11038_v44 = vld [vmem:[%s16583_s0 + $0x5c4] sm:$0xff]   ;;  %v11039_v45 = vld [vmem:[%s16583_s0 + $0x5cc] sm:$0xff]  }
 0x1a4   :  { %5203 = vst.msk [vmem:[#allocation2 + $0x580] sm:$0xff] %vm16_vm0, %v10978_v47  ;;  %5204 = vst.msk [vmem:[#allocation2 + $0x588] sm:$0xff] %vm16_vm0, %v10979_v48  ;;  %v11040_v46 = vld [vmem:[%s16583_s0 + $0x5d4] sm:$0xff]   ;;  %v11041_v47 = vld [vmem:[%s16583_s0 + $0x5dc] ss:$0 sps:$4 sm:$0xff]  }
 0x1a5   :  { %5205 = vst.msk [vmem:[#allocation2 + $0x590] sm:$0xff] %vm16_vm0, %v10980_v49  ;;  %5208 = vst.msk [vmem:[#allocation2 + $0x5a8] sm:$0xff] %vm16_vm0, %v10983_v52  ;;  %v11042_v48 = vld [vmem:[%s16583_s0 + $0x5e0] ss:$0 sps:$4 sm:$0xff]   ;;  %v11043_v49 = vld [vmem:[%s16583_s0 + $0x5e4] sm:$0xff]  }
 0x1a6   :  { %5206 = vst.msk [vmem:[#allocation2 + $0x598] sm:$0xf] %vm5035_vm2, %v10981_v50  ;;  %5211 = vst.msk [vmem:[#allocation2 + $0x5c0] sm:$0xf] %vm5035_vm2, %v10986_v55  ;;  %v11044_v50 = vld [vmem:[%s16583_s0 + $0x5ec] sm:$0xff]   ;;  %v11045_v51 = vld [vmem:[%s16583_s0 + $0x5f4] sm:$0xff]  }
 0x1a7   :  { %5209 = vst.msk [vmem:[#allocation2 + $0x5b0] sm:$0xff] %vm16_vm0, %v10984_v53  ;;  %5210 = vst.msk [vmem:[#allocation2 + $0x5b8] sm:$0xff] %vm16_vm0, %v10985_v54  ;;  %v11046_v52 = vld [vmem:[%s16583_s0 + $0x5fc] ss:$0 sps:$4 sm:$0xff]   ;;  %v11047_v53 = vld [vmem:[%s16583_s0 + $0x600] ss:$0 sps:$4 sm:$0xff]  }
 0x1a8   :  { %5212 = vst.msk [vmem:[#allocation2 + $0x5c8] sm:$0xf0] %vm5030_vm1, %v10987_v56  ;;  %5217 = vst.msk [vmem:[#allocation2 + $0x5f0] sm:$0xf0] %vm5030_vm1, %v10992_v61  ;;  %v11048_v54 = vld [vmem:[%s16583_s0 + $0x604] sm:$0xff]   ;;  %v11049_v55 = vld [vmem:[%s16583_s0 + $0x60c] sm:$0xff]  }
 0x1a9   :  { %5213 = vst.msk [vmem:[#allocation2 + $0x5d0] sm:$0xff] %vm16_vm0, %v10988_v57  ;;  %5214 = vst.msk [vmem:[#allocation2 + $0x5d8] sm:$0xff] %vm16_vm0, %v10989_v58  ;;  %v11050_v56 = vld [vmem:[%s16583_s0 + $0x614] sm:$0xff]   ;;  %v11051_v57 = vld [vmem:[%s16583_s0 + $0x61c] ss:$0 sps:$4 sm:$0xff]  }
 0x1aa   :  { %5215 = vst.msk [vmem:[#allocation2 + $0x5e0] sm:$0xff] %vm16_vm0, %v10990_v59  ;;  %5218 = vst.msk [vmem:[#allocation2 + $0x5f8] sm:$0xff] %vm16_vm0, %v10993_v62  ;;  %v11052_v58 = vld [vmem:[%s16583_s0 + $0x620] ss:$0 sps:$4 sm:$0xff]   ;;  %v11053_v59 = vld [vmem:[%s16583_s0 + $0x624] sm:$0xff]  }
 0x1ab   :  { %5216 = vst.msk [vmem:[#allocation2 + $0x5e8] sm:$0xf] %vm5035_vm2, %v10991_v60  ;;  %5221 = vst.msk [vmem:[#allocation2 + $0x610] sm:$0xf] %vm5035_vm2, %v10996_v2  ;;  %v11054_v60 = vld [vmem:[%s16583_s0 + $0x62c] sm:$0xff]   ;;  %v11055_v61 = vld [vmem:[%s16583_s0 + $0x634] sm:$0xff]  }
 0x1ac   :  { %5219 = vst.msk [vmem:[#allocation2 + $0x600] sm:$0xff] %vm16_vm0, %v10994_v63  ;;  %5220 = vst.msk [vmem:[#allocation2 + $0x608] sm:$0xff] %vm16_vm0, %v10995_v1  ;;  %v11056_v62 = vld [vmem:[%s16583_s0 + $0x63c] ss:$0 sps:$4 sm:$0xff]   ;;  %v11057_v63 = vld [vmem:[%s16583_s0 + $0x640] ss:$0 sps:$4 sm:$0xff]  }
 0x1ad   :  { %5222 = vst.msk [vmem:[#allocation2 + $0x618] sm:$0xf0] %vm5030_vm1, %v10997_v3  ;;  %5227 = vst.msk [vmem:[#allocation2 + $0x640] sm:$0xf0] %vm5030_vm1, %v11002_v8  ;;  %v11058_v1 = vld [vmem:[%s16583_s0 + $0x644] sm:$0xff]   ;;  %v11059_v2 = vld [vmem:[%s16583_s0 + $0x64c] sm:$0xff]  }
 0x1ae   :  { %5223 = vst.msk [vmem:[#allocation2 + $0x620] sm:$0xff] %vm16_vm0, %v10998_v4  ;;  %5224 = vst.msk [vmem:[#allocation2 + $0x628] sm:$0xff] %vm16_vm0, %v10999_v5  ;;  %v11060_v3 = vld [vmem:[%s16583_s0 + $0x654] sm:$0xff]   ;;  %v11061_v4 = vld [vmem:[%s16583_s0 + $0x65c] ss:$0 sps:$4 sm:$0xff]  }
 0x1af   :  { %5225 = vst.msk [vmem:[#allocation2 + $0x630] sm:$0xff] %vm16_vm0, %v11000_v6  ;;  %5228 = vst.msk [vmem:[#allocation2 + $0x648] sm:$0xff] %vm16_vm0, %v11003_v9  ;;  %v11062_v5 = vld [vmem:[%s16583_s0 + $0x660] ss:$0 sps:$4 sm:$0xff]   ;;  %v11063_v6 = vld [vmem:[%s16583_s0 + $0x664] sm:$0xff]  }
 0x1b0   :  { %5226 = vst.msk [vmem:[#allocation2 + $0x638] sm:$0xf] %vm5035_vm2, %v11001_v7  ;;  %5231 = vst.msk [vmem:[#allocation2 + $0x660] sm:$0xf] %vm5035_vm2, %v11006_v12  ;;  %v11064_v7 = vld [vmem:[%s16583_s0 + $0x66c] sm:$0xff]   ;;  %v11065_v8 = vld [vmem:[%s16583_s0 + $0x674] sm:$0xff]  }
 0x1b1   :  { %5229 = vst.msk [vmem:[#allocation2 + $0x650] sm:$0xff] %vm16_vm0, %v11004_v10  ;;  %5230 = vst.msk [vmem:[#allocation2 + $0x658] sm:$0xff] %vm16_vm0, %v11005_v11  ;;  %v11066_v9 = vld [vmem:[%s16583_s0 + $0x67c] ss:$0 sps:$4 sm:$0xff]   ;;  %v11067_v10 = vld [vmem:[%s16583_s0 + $0x680] ss:$0 sps:$4 sm:$0xff]  }
 0x1b2   :  { %5232 = vst.msk [vmem:[#allocation2 + $0x668] sm:$0xf0] %vm5030_vm1, %v11007_v13  ;;  %5237 = vst.msk [vmem:[#allocation2 + $0x690] sm:$0xf0] %vm5030_vm1, %v11012_v18  ;;  %v11068_v11 = vld [vmem:[%s16583_s0 + $0x684] sm:$0xff]   ;;  %v11069_v12 = vld [vmem:[%s16583_s0 + $0x68c] sm:$0xff]  }
 0x1b3   :  { %5233 = vst.msk [vmem:[#allocation2 + $0x670] sm:$0xff] %vm16_vm0, %v11008_v14  ;;  %5234 = vst.msk [vmem:[#allocation2 + $0x678] sm:$0xff] %vm16_vm0, %v11009_v15  ;;  %v11070_v13 = vld [vmem:[%s16583_s0 + $0x694] sm:$0xff]   ;;  %v11071_v14 = vld [vmem:[%s16583_s0 + $0x69c] ss:$0 sps:$4 sm:$0xff]  }
 0x1b4   :  { %5235 = vst.msk [vmem:[#allocation2 + $0x680] sm:$0xff] %vm16_vm0, %v11010_v16  ;;  %5238 = vst.msk [vmem:[#allocation2 + $0x698] sm:$0xff] %vm16_vm0, %v11013_v19  ;;  %v11072_v15 = vld [vmem:[%s16583_s0 + $0x6a0] ss:$0 sps:$4 sm:$0xff]   ;;  %v11073_v16 = vld [vmem:[%s16583_s0 + $0x6a4] sm:$0xff]  }
 0x1b5   :  { %5236 = vst.msk [vmem:[#allocation2 + $0x688] sm:$0xf] %vm5035_vm2, %v11011_v17  ;;  %5241 = vst.msk [vmem:[#allocation2 + $0x6b0] sm:$0xf] %vm5035_vm2, %v11016_v22  ;;  %v11074_v17 = vld [vmem:[%s16583_s0 + $0x6ac] sm:$0xff]   ;;  %v11075_v18 = vld [vmem:[%s16583_s0 + $0x6b4] sm:$0xff]  }
 0x1b6   :  { %5239 = vst.msk [vmem:[#allocation2 + $0x6a0] sm:$0xff] %vm16_vm0, %v11014_v20  ;;  %5240 = vst.msk [vmem:[#allocation2 + $0x6a8] sm:$0xff] %vm16_vm0, %v11015_v21  ;;  %v11076_v19 = vld [vmem:[%s16583_s0 + $0x6bc] ss:$0 sps:$4 sm:$0xff]   ;;  %v11077_v20 = vld [vmem:[%s16583_s0 + $0x6c0] ss:$0 sps:$4 sm:$0xff]  }
 0x1b7   :  { %5242 = vst.msk [vmem:[#allocation2 + $0x6b8] sm:$0xf0] %vm5030_vm1, %v11017_v23  ;;  %5247 = vst.msk [vmem:[#allocation2 + $0x6e0] sm:$0xf0] %vm5030_vm1, %v11022_v28  ;;  %v11078_v21 = vld [vmem:[%s16583_s0 + $0x6c4] sm:$0xff]   ;;  %v11079_v22 = vld [vmem:[%s16583_s0 + $0x6cc] sm:$0xff]  }
 0x1b8   :  { %5243 = vst.msk [vmem:[#allocation2 + $0x6c0] sm:$0xff] %vm16_vm0, %v11018_v24  ;;  %5244 = vst.msk [vmem:[#allocation2 + $0x6c8] sm:$0xff] %vm16_vm0, %v11019_v25  ;;  %v11080_v23 = vld [vmem:[%s16583_s0 + $0x6d4] sm:$0xff]   ;;  %v11081_v24 = vld [vmem:[%s16583_s0 + $0x6dc] ss:$0 sps:$4 sm:$0xff]  }
 0x1b9   :  { %5245 = vst.msk [vmem:[#allocation2 + $0x6d0] sm:$0xff] %vm16_vm0, %v11020_v26  ;;  %5248 = vst.msk [vmem:[#allocation2 + $0x6e8] sm:$0xff] %vm16_vm0, %v11023_v29  ;;  %v11082_v25 = vld [vmem:[%s16583_s0 + $0x6e0] ss:$0 sps:$4 sm:$0xff]   ;;  %v11083_v26 = vld [vmem:[%s16583_s0 + $0x6e4] sm:$0xff]  }
 0x1ba   :  { %5246 = vst.msk [vmem:[#allocation2 + $0x6d8] sm:$0xf] %vm5035_vm2, %v11021_v27  ;;  %5251 = vst.msk [vmem:[#allocation2 + $0x700] sm:$0xf] %vm5035_vm2, %v11026_v32  ;;  %v11084_v27 = vld [vmem:[%s16583_s0 + $0x6ec] sm:$0xff]   ;;  %v11085_v28 = vld [vmem:[%s16583_s0 + $0x6f4] sm:$0xff]  }
 0x1bb   :  { %5249 = vst.msk [vmem:[#allocation2 + $0x6f0] sm:$0xff] %vm16_vm0, %v11024_v30  ;;  %5250 = vst.msk [vmem:[#allocation2 + $0x6f8] sm:$0xff] %vm16_vm0, %v11025_v31  ;;  %v11086_v29 = vld [vmem:[%s16583_s0 + $0x6fc] ss:$0 sps:$4 sm:$0xff]   ;;  %v11087_v30 = vld [vmem:[%s16583_s0 + $0x700] ss:$0 sps:$4 sm:$0xff]  }
 0x1bc   :  { %5252 = vst.msk [vmem:[#allocation2 + $0x708] sm:$0xf0] %vm5030_vm1, %v11027_v33  ;;  %5257 = vst.msk [vmem:[#allocation2 + $0x730] sm:$0xf0] %vm5030_vm1, %v11032_v38  ;;  %v11088_v31 = vld [vmem:[%s16583_s0 + $0x704] sm:$0xff]   ;;  %v11089_v32 = vld [vmem:[%s16583_s0 + $0x70c] sm:$0xff]  }
 0x1bd   :  { %5253 = vst.msk [vmem:[#allocation2 + $0x710] sm:$0xff] %vm16_vm0, %v11028_v34  ;;  %5254 = vst.msk [vmem:[#allocation2 + $0x718] sm:$0xff] %vm16_vm0, %v11029_v35  ;;  %v11090_v33 = vld [vmem:[%s16583_s0 + $0x714] sm:$0xff]   ;;  %v11091_v34 = vld [vmem:[%s16583_s0 + $0x71c] ss:$0 sps:$4 sm:$0xff]  }
 0x1be   :  { %5255 = vst.msk [vmem:[#allocation2 + $0x720] sm:$0xff] %vm16_vm0, %v11030_v36  ;;  %5258 = vst.msk [vmem:[#allocation2 + $0x738] sm:$0xff] %vm16_vm0, %v11033_v39  ;;  %v11092_v35 = vld [vmem:[%s16583_s0 + $0x720] ss:$0 sps:$4 sm:$0xff]   ;;  %v11093_v36 = vld [vmem:[%s16583_s0 + $0x724] sm:$0xff]  }
 0x1bf   :  { %5256 = vst.msk [vmem:[#allocation2 + $0x728] sm:$0xf] %vm5035_vm2, %v11031_v37  ;;  %5261 = vst.msk [vmem:[#allocation2 + $0x750] sm:$0xf] %vm5035_vm2, %v11036_v42  ;;  %v11094_v37 = vld [vmem:[%s16583_s0 + $0x72c] sm:$0xff]   ;;  %v11095_v38 = vld [vmem:[%s16583_s0 + $0x734] sm:$0xff]  }
 0x1c0   :  { %5259 = vst.msk [vmem:[#allocation2 + $0x740] sm:$0xff] %vm16_vm0, %v11034_v40  ;;  %5260 = vst.msk [vmem:[#allocation2 + $0x748] sm:$0xff] %vm16_vm0, %v11035_v41  ;;  %v11096_v39 = vld [vmem:[%s16583_s0 + $0x73c] ss:$0 sps:$4 sm:$0xff]   ;;  %v11097_v40 = vld [vmem:[%s16583_s0 + $0x740] ss:$0 sps:$4 sm:$0xff]  }
 0x1c1   :  { %5262 = vst.msk [vmem:[#allocation2 + $0x758] sm:$0xf0] %vm5030_vm1, %v11037_v43  ;;  %5267 = vst.msk [vmem:[#allocation2 + $0x780] sm:$0xf0] %vm5030_vm1, %v11042_v48  ;;  %v11098_v41 = vld [vmem:[%s16583_s0 + $0x744] sm:$0xff]   ;;  %v11099_v42 = vld [vmem:[%s16583_s0 + $0x74c] sm:$0xff]  }
 0x1c2   :  { %5263 = vst.msk [vmem:[#allocation2 + $0x760] sm:$0xff] %vm16_vm0, %v11038_v44  ;;  %5264 = vst.msk [vmem:[#allocation2 + $0x768] sm:$0xff] %vm16_vm0, %v11039_v45  ;;  %v11100_v43 = vld [vmem:[%s16583_s0 + $0x754] sm:$0xff]   ;;  %v11101_v44 = vld [vmem:[%s16583_s0 + $0x75c] ss:$0 sps:$4 sm:$0xff]  }
 0x1c3   :  { %5265 = vst.msk [vmem:[#allocation2 + $0x770] sm:$0xff] %vm16_vm0, %v11040_v46  ;;  %5268 = vst.msk [vmem:[#allocation2 + $0x788] sm:$0xff] %vm16_vm0, %v11043_v49  ;;  %v11102_v45 = vld [vmem:[%s16583_s0 + $0x760] ss:$0 sps:$4 sm:$0xff]   ;;  %v11103_v46 = vld [vmem:[%s16583_s0 + $0x764] sm:$0xff]  }
 0x1c4   :  { %5266 = vst.msk [vmem:[#allocation2 + $0x778] sm:$0xf] %vm5035_vm2, %v11041_v47  ;;  %5271 = vst.msk [vmem:[#allocation2 + $0x7a0] sm:$0xf] %vm5035_vm2, %v11046_v52  ;;  %v11104_v47 = vld [vmem:[%s16583_s0 + $0x76c] sm:$0xff]   ;;  %v11105_v48 = vld [vmem:[%s16583_s0 + $0x774] sm:$0xff]  }
 0x1c5   :  { %5269 = vst.msk [vmem:[#allocation2 + $0x790] sm:$0xff] %vm16_vm0, %v11044_v50  ;;  %5270 = vst.msk [vmem:[#allocation2 + $0x798] sm:$0xff] %vm16_vm0, %v11045_v51  ;;  %v11106_v49 = vld [vmem:[%s16583_s0 + $0x77c] ss:$0 sps:$4 sm:$0xff]   ;;  %v11107_v50 = vld [vmem:[%s16583_s0 + $0x780] ss:$0 sps:$4 sm:$0xff]  }
 0x1c6   :  { %5272 = vst.msk [vmem:[#allocation2 + $0x7a8] sm:$0xf0] %vm5030_vm1, %v11047_v53  ;;  %5277 = vst.msk [vmem:[#allocation2 + $0x7d0] sm:$0xf0] %vm5030_vm1, %v11052_v58  ;;  %v11108_v51 = vld [vmem:[%s16583_s0 + $0x784] sm:$0xff]   ;;  %v11109_v52 = vld [vmem:[%s16583_s0 + $0x78c] sm:$0xff]  }
 0x1c7   :  { %5273 = vst.msk [vmem:[#allocation2 + $0x7b0] sm:$0xff] %vm16_vm0, %v11048_v54  ;;  %5274 = vst.msk [vmem:[#allocation2 + $0x7b8] sm:$0xff] %vm16_vm0, %v11049_v55  ;;  %v11110_v53 = vld [vmem:[%s16583_s0 + $0x794] sm:$0xff]   ;;  %v11111_v54 = vld [vmem:[%s16583_s0 + $0x79c] ss:$0 sps:$4 sm:$0xff]  }
 0x1c8   :  { %5275 = vst.msk [vmem:[#allocation2 + $0x7c0] sm:$0xff] %vm16_vm0, %v11050_v56  ;;  %5278 = vst.msk [vmem:[#allocation2 + $0x7d8] sm:$0xff] %vm16_vm0, %v11053_v59  ;;  %v11112_v55 = vld [vmem:[%s16583_s0 + $0x7a0] ss:$0 sps:$4 sm:$0xff]   ;;  %v11113_v56 = vld [vmem:[%s16583_s0 + $0x7a4] sm:$0xff]  }
 0x1c9   :  { %5276 = vst.msk [vmem:[#allocation2 + $0x7c8] sm:$0xf] %vm5035_vm2, %v11051_v57  ;;  %5281 = vst.msk [vmem:[#allocation2 + $0x7f0] sm:$0xf] %vm5035_vm2, %v11056_v62  ;;  %v11114_v57 = vld [vmem:[%s16583_s0 + $0x7ac] sm:$0xff]   ;;  %v11115_v58 = vld [vmem:[%s16583_s0 + $0x7b4] sm:$0xff]  }
 0x1ca   :  { %5279 = vst.msk [vmem:[#allocation2 + $0x7e0] sm:$0xff] %vm16_vm0, %v11054_v60  ;;  %5280 = vst.msk [vmem:[#allocation2 + $0x7e8] sm:$0xff] %vm16_vm0, %v11055_v61  ;;  %v11116_v59 = vld [vmem:[%s16583_s0 + $0x7bc] ss:$0 sps:$4 sm:$0xff]   ;;  %v11117_v60 = vld [vmem:[%s16583_s0 + $0x7c0] ss:$0 sps:$4 sm:$0xff]  }
 0x1cb   :  { %5282 = vst.msk [vmem:[#allocation2 + $0x7f8] sm:$0xf0] %vm5030_vm1, %v11057_v63  ;;  %5287 = vst.msk [vmem:[#allocation2 + $0x820] sm:$0xf0] %vm5030_vm1, %v11062_v5  ;;  %v11118_v61 = vld [vmem:[%s16583_s0 + $0x7c4] sm:$0xff]   ;;  %v11119_v62 = vld [vmem:[%s16583_s0 + $0x7cc] sm:$0xff]  }
 0x1cc   :  { %5283 = vst.msk [vmem:[#allocation2 + $0x800] sm:$0xff] %vm16_vm0, %v11058_v1  ;;  %5284 = vst.msk [vmem:[#allocation2 + $0x808] sm:$0xff] %vm16_vm0, %v11059_v2  ;;  %v11120_v63 = vld [vmem:[%s16583_s0 + $0x7d4] sm:$0xff]   ;;  %v11121_v1 = vld [vmem:[%s16583_s0 + $0x7dc] ss:$0 sps:$4 sm:$0xff]  }
 0x1cd   :  { %5285 = vst.msk [vmem:[#allocation2 + $0x810] sm:$0xff] %vm16_vm0, %v11060_v3  ;;  %5288 = vst.msk [vmem:[#allocation2 + $0x828] sm:$0xff] %vm16_vm0, %v11063_v6  ;;  %v11122_v2 = vld [vmem:[%s16583_s0 + $0x7e0] ss:$0 sps:$4 sm:$0xff]   ;;  %v11123_v3 = vld [vmem:[%s16583_s0 + $0x7e4] sm:$0xff]  }
 0x1ce   :  { %5286 = vst.msk [vmem:[#allocation2 + $0x818] sm:$0xf] %vm5035_vm2, %v11061_v4  ;;  %5291 = vst.msk [vmem:[#allocation2 + $0x840] sm:$0xf] %vm5035_vm2, %v11066_v9  ;;  %v11124_v4 = vld [vmem:[%s16583_s0 + $0x7ec] sm:$0xff]   ;;  %v11125_v5 = vld [vmem:[%s16583_s0 + $0x7f4] sm:$0xff]  }
 0x1cf   :  { %5289 = vst.msk [vmem:[#allocation2 + $0x830] sm:$0xff] %vm16_vm0, %v11064_v7  ;;  %5290 = vst.msk [vmem:[#allocation2 + $0x838] sm:$0xff] %vm16_vm0, %v11065_v8  ;;  %v11126_v6 = vld [vmem:[%s16583_s0 + $0x7fc] ss:$0 sps:$4 sm:$0xff]   ;;  %v11127_v7 = vld [vmem:[%s16583_s0 + $0x800] ss:$0 sps:$4 sm:$0xff]  }
 0x1d0   :  { %5292 = vst.msk [vmem:[#allocation2 + $0x848] sm:$0xf0] %vm5030_vm1, %v11067_v10  ;;  %5297 = vst.msk [vmem:[#allocation2 + $0x870] sm:$0xf0] %vm5030_vm1, %v11072_v15  ;;  %v11128_v8 = vld [vmem:[%s16583_s0 + $0x804] sm:$0xff]   ;;  %v11129_v9 = vld [vmem:[%s16583_s0 + $0x80c] sm:$0xff]  }
 0x1d1   :  { %5293 = vst.msk [vmem:[#allocation2 + $0x850] sm:$0xff] %vm16_vm0, %v11068_v11  ;;  %5294 = vst.msk [vmem:[#allocation2 + $0x858] sm:$0xff] %vm16_vm0, %v11069_v12  ;;  %v11130_v10 = vld [vmem:[%s16583_s0 + $0x814] sm:$0xff]   ;;  %v11131_v11 = vld [vmem:[%s16583_s0 + $0x81c] ss:$0 sps:$4 sm:$0xff]  }
 0x1d2   :  { %5295 = vst.msk [vmem:[#allocation2 + $0x860] sm:$0xff] %vm16_vm0, %v11070_v13  ;;  %5298 = vst.msk [vmem:[#allocation2 + $0x878] sm:$0xff] %vm16_vm0, %v11073_v16  ;;  %v11132_v12 = vld [vmem:[%s16583_s0 + $0x820] ss:$0 sps:$4 sm:$0xff]   ;;  %v11133_v13 = vld [vmem:[%s16583_s0 + $0x824] sm:$0xff]  }
 0x1d3   :  { %5296 = vst.msk [vmem:[#allocation2 + $0x868] sm:$0xf] %vm5035_vm2, %v11071_v14  ;;  %5301 = vst.msk [vmem:[#allocation2 + $0x890] sm:$0xf] %vm5035_vm2, %v11076_v19  ;;  %v11134_v14 = vld [vmem:[%s16583_s0 + $0x82c] sm:$0xff]   ;;  %v11135_v15 = vld [vmem:[%s16583_s0 + $0x834] sm:$0xff]  }
 0x1d4   :  { %5299 = vst.msk [vmem:[#allocation2 + $0x880] sm:$0xff] %vm16_vm0, %v11074_v17  ;;  %5300 = vst.msk [vmem:[#allocation2 + $0x888] sm:$0xff] %vm16_vm0, %v11075_v18  ;;  %v11136_v16 = vld [vmem:[%s16583_s0 + $0x83c] ss:$0 sps:$4 sm:$0xff]   ;;  %v11137_v17 = vld [vmem:[%s16583_s0 + $0x840] ss:$0 sps:$4 sm:$0xff]  }
 0x1d5   :  { %5302 = vst.msk [vmem:[#allocation2 + $0x898] sm:$0xf0] %vm5030_vm1, %v11077_v20  ;;  %5307 = vst.msk [vmem:[#allocation2 + $0x8c0] sm:$0xf0] %vm5030_vm1, %v11082_v25  ;;  %v11138_v18 = vld [vmem:[%s16583_s0 + $0x844] sm:$0xff]   ;;  %v11139_v19 = vld [vmem:[%s16583_s0 + $0x84c] sm:$0xff]  }
 0x1d6   :  { %5303 = vst.msk [vmem:[#allocation2 + $0x8a0] sm:$0xff] %vm16_vm0, %v11078_v21  ;;  %5304 = vst.msk [vmem:[#allocation2 + $0x8a8] sm:$0xff] %vm16_vm0, %v11079_v22  ;;  %v11140_v20 = vld [vmem:[%s16583_s0 + $0x854] sm:$0xff]   ;;  %v11141_v21 = vld [vmem:[%s16583_s0 + $0x85c] ss:$0 sps:$4 sm:$0xff]  }
 0x1d7   :  { %5305 = vst.msk [vmem:[#allocation2 + $0x8b0] sm:$0xff] %vm16_vm0, %v11080_v23  ;;  %5308 = vst.msk [vmem:[#allocation2 + $0x8c8] sm:$0xff] %vm16_vm0, %v11083_v26  ;;  %v11142_v22 = vld [vmem:[%s16583_s0 + $0x860] ss:$0 sps:$4 sm:$0xff]   ;;  %v11143_v23 = vld [vmem:[%s16583_s0 + $0x864] sm:$0xff]  }
 0x1d8   :  { %5306 = vst.msk [vmem:[#allocation2 + $0x8b8] sm:$0xf] %vm5035_vm2, %v11081_v24  ;;  %5311 = vst.msk [vmem:[#allocation2 + $0x8e0] sm:$0xf] %vm5035_vm2, %v11086_v29  ;;  %v11144_v24 = vld [vmem:[%s16583_s0 + $0x86c] sm:$0xff]   ;;  %v11145_v25 = vld [vmem:[%s16583_s0 + $0x874] sm:$0xff]  }
 0x1d9   :  { %5309 = vst.msk [vmem:[#allocation2 + $0x8d0] sm:$0xff] %vm16_vm0, %v11084_v27  ;;  %5310 = vst.msk [vmem:[#allocation2 + $0x8d8] sm:$0xff] %vm16_vm0, %v11085_v28  ;;  %v11146_v26 = vld [vmem:[%s16583_s0 + $0x87c] ss:$0 sps:$4 sm:$0xff]   ;;  %v11147_v27 = vld [vmem:[%s16583_s0 + $0x880] ss:$0 sps:$4 sm:$0xff]  }
 0x1da   :  { %5312 = vst.msk [vmem:[#allocation2 + $0x8e8] sm:$0xf0] %vm5030_vm1, %v11087_v30  ;;  %5317 = vst.msk [vmem:[#allocation2 + $0x910] sm:$0xf0] %vm5030_vm1, %v11092_v35  ;;  %v11148_v28 = vld [vmem:[%s16583_s0 + $0x884] sm:$0xff]   ;;  %v11149_v29 = vld [vmem:[%s16583_s0 + $0x88c] sm:$0xff]  }
 0x1db   :  { %5313 = vst.msk [vmem:[#allocation2 + $0x8f0] sm:$0xff] %vm16_vm0, %v11088_v31  ;;  %5314 = vst.msk [vmem:[#allocation2 + $0x8f8] sm:$0xff] %vm16_vm0, %v11089_v32  ;;  %v11150_v30 = vld [vmem:[%s16583_s0 + $0x894] sm:$0xff]   ;;  %v11151_v31 = vld [vmem:[%s16583_s0 + $0x89c] ss:$0 sps:$4 sm:$0xff]  }
 0x1dc   :  { %5315 = vst.msk [vmem:[#allocation2 + $0x900] sm:$0xff] %vm16_vm0, %v11090_v33  ;;  %5318 = vst.msk [vmem:[#allocation2 + $0x918] sm:$0xff] %vm16_vm0, %v11093_v36  ;;  %v11152_v32 = vld [vmem:[%s16583_s0 + $0x8a0] ss:$0 sps:$4 sm:$0xff]   ;;  %v11153_v33 = vld [vmem:[%s16583_s0 + $0x8a4] sm:$0xff]  }
 0x1dd   :  { %5316 = vst.msk [vmem:[#allocation2 + $0x908] sm:$0xf] %vm5035_vm2, %v11091_v34  ;;  %5321 = vst.msk [vmem:[#allocation2 + $0x930] sm:$0xf] %vm5035_vm2, %v11096_v39  ;;  %v11154_v34 = vld [vmem:[%s16583_s0 + $0x8ac] sm:$0xff]   ;;  %v11155_v35 = vld [vmem:[%s16583_s0 + $0x8b4] sm:$0xff]  }
 0x1de   :  { %5319 = vst.msk [vmem:[#allocation2 + $0x920] sm:$0xff] %vm16_vm0, %v11094_v37  ;;  %5320 = vst.msk [vmem:[#allocation2 + $0x928] sm:$0xff] %vm16_vm0, %v11095_v38  ;;  %v11156_v36 = vld [vmem:[%s16583_s0 + $0x8bc] ss:$0 sps:$4 sm:$0xff]   ;;  %v11157_v37 = vld [vmem:[%s16583_s0 + $0x8c0] ss:$0 sps:$4 sm:$0xff]  }
 0x1df   :  { %5322 = vst.msk [vmem:[#allocation2 + $0x938] sm:$0xf0] %vm5030_vm1, %v11097_v40  ;;  %5327 = vst.msk [vmem:[#allocation2 + $0x960] sm:$0xf0] %vm5030_vm1, %v11102_v45  ;;  %v11158_v38 = vld [vmem:[%s16583_s0 + $0x8c4] sm:$0xff]   ;;  %v11159_v39 = vld [vmem:[%s16583_s0 + $0x8cc] sm:$0xff]  }
 0x1e0   :  { %5323 = vst.msk [vmem:[#allocation2 + $0x940] sm:$0xff] %vm16_vm0, %v11098_v41  ;;  %5324 = vst.msk [vmem:[#allocation2 + $0x948] sm:$0xff] %vm16_vm0, %v11099_v42  ;;  %v11160_v40 = vld [vmem:[%s16583_s0 + $0x8d4] sm:$0xff]   ;;  %v11161_v41 = vld [vmem:[%s16583_s0 + $0x8dc] ss:$0 sps:$4 sm:$0xff]  }
 0x1e1   :  { %5325 = vst.msk [vmem:[#allocation2 + $0x950] sm:$0xff] %vm16_vm0, %v11100_v43  ;;  %5328 = vst.msk [vmem:[#allocation2 + $0x968] sm:$0xff] %vm16_vm0, %v11103_v46  ;;  %v11162_v42 = vld [vmem:[%s16583_s0 + $0x8e0] ss:$0 sps:$4 sm:$0xff]   ;;  %v11163_v43 = vld [vmem:[%s16583_s0 + $0x8e4] sm:$0xff]  }
 0x1e2   :  { %5326 = vst.msk [vmem:[#allocation2 + $0x958] sm:$0xf] %vm5035_vm2, %v11101_v44  ;;  %5331 = vst.msk [vmem:[#allocation2 + $0x980] sm:$0xf] %vm5035_vm2, %v11106_v49  ;;  %v11164_v44 = vld [vmem:[%s16583_s0 + $0x8ec] sm:$0xff]   ;;  %v11165_v45 = vld [vmem:[%s16583_s0 + $0x8f4] sm:$0xff]  }
 0x1e3   :  { %5329 = vst.msk [vmem:[#allocation2 + $0x970] sm:$0xff] %vm16_vm0, %v11104_v47  ;;  %5330 = vst.msk [vmem:[#allocation2 + $0x978] sm:$0xff] %vm16_vm0, %v11105_v48  ;;  %v11166_v46 = vld [vmem:[%s16583_s0 + $0x8fc] ss:$0 sps:$4 sm:$0xff]   ;;  %v11167_v47 = vld [vmem:[%s16583_s0 + $0x900] ss:$0 sps:$4 sm:$0xff]  }
 0x1e4   :  { %5332 = vst.msk [vmem:[#allocation2 + $0x988] sm:$0xf0] %vm5030_vm1, %v11107_v50  ;;  %5337 = vst.msk [vmem:[#allocation2 + $0x9b0] sm:$0xf0] %vm5030_vm1, %v11112_v55  ;;  %v11168_v48 = vld [vmem:[%s16583_s0 + $0x904] sm:$0xff]   ;;  %v11169_v49 = vld [vmem:[%s16583_s0 + $0x90c] sm:$0xff]  }
 0x1e5   :  { %5333 = vst.msk [vmem:[#allocation2 + $0x990] sm:$0xff] %vm16_vm0, %v11108_v51  ;;  %5334 = vst.msk [vmem:[#allocation2 + $0x998] sm:$0xff] %vm16_vm0, %v11109_v52  ;;  %v11170_v50 = vld [vmem:[%s16583_s0 + $0x914] sm:$0xff]   ;;  %v11171_v51 = vld [vmem:[%s16583_s0 + $0x91c] ss:$0 sps:$4 sm:$0xff]  }
 0x1e6   :  { %5335 = vst.msk [vmem:[#allocation2 + $0x9a0] sm:$0xff] %vm16_vm0, %v11110_v53  ;;  %5338 = vst.msk [vmem:[#allocation2 + $0x9b8] sm:$0xff] %vm16_vm0, %v11113_v56  ;;  %v11172_v52 = vld [vmem:[%s16583_s0 + $0x920] ss:$0 sps:$4 sm:$0xff]   ;;  %v11173_v53 = vld [vmem:[%s16583_s0 + $0x924] sm:$0xff]  }
 0x1e7   :  { %5336 = vst.msk [vmem:[#allocation2 + $0x9a8] sm:$0xf] %vm5035_vm2, %v11111_v54  ;;  %5341 = vst.msk [vmem:[#allocation2 + $0x9d0] sm:$0xf] %vm5035_vm2, %v11116_v59  ;;  %v11174_v54 = vld [vmem:[%s16583_s0 + $0x92c] sm:$0xff]   ;;  %v11175_v55 = vld [vmem:[%s16583_s0 + $0x934] sm:$0xff]  }
 0x1e8   :  { %5339 = vst.msk [vmem:[#allocation2 + $0x9c0] sm:$0xff] %vm16_vm0, %v11114_v57  ;;  %5340 = vst.msk [vmem:[#allocation2 + $0x9c8] sm:$0xff] %vm16_vm0, %v11115_v58  ;;  %v11176_v56 = vld [vmem:[%s16583_s0 + $0x93c] ss:$0 sps:$4 sm:$0xff]   ;;  %v11177_v57 = vld [vmem:[%s16583_s0 + $0x940] ss:$0 sps:$4 sm:$0xff]  }
 0x1e9   :  { %5342 = vst.msk [vmem:[#allocation2 + $0x9d8] sm:$0xf0] %vm5030_vm1, %v11117_v60  ;;  %5347 = vst.msk [vmem:[#allocation2 + $0xa00] sm:$0xf0] %vm5030_vm1, %v11122_v2  ;;  %v11178_v58 = vld [vmem:[%s16583_s0 + $0x944] sm:$0xff]   ;;  %v11179_v59 = vld [vmem:[%s16583_s0 + $0x94c] sm:$0xff]  }
 0x1ea   :  { %5343 = vst.msk [vmem:[#allocation2 + $0x9e0] sm:$0xff] %vm16_vm0, %v11118_v61  ;;  %5344 = vst.msk [vmem:[#allocation2 + $0x9e8] sm:$0xff] %vm16_vm0, %v11119_v62  ;;  %v11180_v60 = vld [vmem:[%s16583_s0 + $0x954] sm:$0xff]   ;;  %v11181_v61 = vld [vmem:[%s16583_s0 + $0x95c] ss:$0 sps:$4 sm:$0xff]  }
 0x1eb   :  { %5345 = vst.msk [vmem:[#allocation2 + $0x9f0] sm:$0xff] %vm16_vm0, %v11120_v63  ;;  %5348 = vst.msk [vmem:[#allocation2 + $0xa08] sm:$0xff] %vm16_vm0, %v11123_v3  ;;  %v11182_v62 = vld [vmem:[%s16583_s0 + $0x960] ss:$0 sps:$4 sm:$0xff]   ;;  %v11183_v63 = vld [vmem:[%s16583_s0 + $0x964] sm:$0xff]  }
 0x1ec   :  { %5346 = vst.msk [vmem:[#allocation2 + $0x9f8] sm:$0xf] %vm5035_vm2, %v11121_v1  ;;  %5351 = vst.msk [vmem:[#allocation2 + $0xa20] sm:$0xf] %vm5035_vm2, %v11126_v6  ;;  %v11184_v1 = vld [vmem:[%s16583_s0 + $0x96c] sm:$0xff]   ;;  %v11185_v2 = vld [vmem:[%s16583_s0 + $0x974] sm:$0xff]  }
 0x1ed   :  { %5349 = vst.msk [vmem:[#allocation2 + $0xa10] sm:$0xff] %vm16_vm0, %v11124_v4  ;;  %5350 = vst.msk [vmem:[#allocation2 + $0xa18] sm:$0xff] %vm16_vm0, %v11125_v5  ;;  %v11186_v3 = vld [vmem:[%s16583_s0 + $0x97c] ss:$0 sps:$4 sm:$0xff]   ;;  %v11187_v4 = vld [vmem:[%s16583_s0 + $0x980] ss:$0 sps:$4 sm:$0xff]  }
 0x1ee   :  { %5352 = vst.msk [vmem:[#allocation2 + $0xa78] sm:$0xf0] %vm5030_vm1, %v11127_v7  ;;  %5357 = vst.msk [vmem:[#allocation2 + $0xaa0] sm:$0xf0] %vm5030_vm1, %v11132_v12  ;;  %v11188_v5 = vld [vmem:[%s16583_s0 + $0x984] sm:$0xff]   ;;  %v11189_v6 = vld [vmem:[%s16583_s0 + $0x98c] sm:$0xff]  }
 0x1ef   :  { %5353 = vst.msk [vmem:[#allocation2 + $0xa80] sm:$0xff] %vm16_vm0, %v11128_v8  ;;  %5354 = vst.msk [vmem:[#allocation2 + $0xa88] sm:$0xff] %vm16_vm0, %v11129_v9  ;;  %v11190_v7 = vld [vmem:[%s16583_s0 + $0x994] sm:$0xff]   ;;  %v11191_v8 = vld [vmem:[%s16583_s0 + $0x99c] ss:$0 sps:$4 sm:$0xff]  }
 0x1f0   :  { %5355 = vst.msk [vmem:[#allocation2 + $0xa90] sm:$0xff] %vm16_vm0, %v11130_v10  ;;  %5358 = vst.msk [vmem:[#allocation2 + $0xaa8] sm:$0xff] %vm16_vm0, %v11133_v13  ;;  %v11192_v9 = vld [vmem:[%s16583_s0 + $0x9a0] ss:$0 sps:$4 sm:$0xff]   ;;  %v11193_v10 = vld [vmem:[%s16583_s0 + $0x9a4] sm:$0xff]  }
 0x1f1   :  { %5356 = vst.msk [vmem:[#allocation2 + $0xa98] sm:$0xf] %vm5035_vm2, %v11131_v11  ;;  %5361 = vst.msk [vmem:[#allocation2 + $0xac0] sm:$0xf] %vm5035_vm2, %v11136_v16  ;;  %v11194_v11 = vld [vmem:[%s16583_s0 + $0x9ac] sm:$0xff]   ;;  %v11195_v12 = vld [vmem:[%s16583_s0 + $0x9b4] sm:$0xff]  }
 0x1f2   :  { %5359 = vst.msk [vmem:[#allocation2 + $0xab0] sm:$0xff] %vm16_vm0, %v11134_v14  ;;  %5360 = vst.msk [vmem:[#allocation2 + $0xab8] sm:$0xff] %vm16_vm0, %v11135_v15  ;;  %v11196_v13 = vld [vmem:[%s16583_s0 + $0x9bc] ss:$0 sps:$4 sm:$0xff]   ;;  %v11197_v14 = vld [vmem:[%s16583_s0 + $0x9c0] ss:$0 sps:$4 sm:$0xff]  }
 0x1f3   :  { %5362 = vst.msk [vmem:[#allocation2 + $0xac8] sm:$0xf0] %vm5030_vm1, %v11137_v17  ;;  %5367 = vst.msk [vmem:[#allocation2 + $0xaf0] sm:$0xf0] %vm5030_vm1, %v11142_v22  ;;  %v11198_v15 = vld [vmem:[%s16583_s0 + $0x9c4] sm:$0xff]   ;;  %v11199_v16 = vld [vmem:[%s16583_s0 + $0x9cc] sm:$0xff]  }
 0x1f4   :  { %5363 = vst.msk [vmem:[#allocation2 + $0xad0] sm:$0xff] %vm16_vm0, %v11138_v18  ;;  %5364 = vst.msk [vmem:[#allocation2 + $0xad8] sm:$0xff] %vm16_vm0, %v11139_v19  ;;  %v11200_v17 = vld [vmem:[%s16583_s0 + $0x9d4] sm:$0xff]   ;;  %v11201_v18 = vld [vmem:[%s16583_s0 + $0x9dc] ss:$0 sps:$4 sm:$0xff]  }
 0x1f5   :  { %5365 = vst.msk [vmem:[#allocation2 + $0xae0] sm:$0xff] %vm16_vm0, %v11140_v20  ;;  %5368 = vst.msk [vmem:[#allocation2 + $0xaf8] sm:$0xff] %vm16_vm0, %v11143_v23  ;;  %v11202_v19 = vld [vmem:[%s16583_s0 + $0x9e0] ss:$0 sps:$4 sm:$0xff]   ;;  %v11203_v20 = vld [vmem:[%s16583_s0 + $0x9e4] sm:$0xff]  }
 0x1f6   :  { %5366 = vst.msk [vmem:[#allocation2 + $0xae8] sm:$0xf] %vm5035_vm2, %v11141_v21  ;;  %5371 = vst.msk [vmem:[#allocation2 + $0xb10] sm:$0xf] %vm5035_vm2, %v11146_v26  ;;  %v11204_v21 = vld [vmem:[%s16583_s0 + $0x9ec] sm:$0xff]   ;;  %v11205_v22 = vld [vmem:[%s16583_s0 + $0x9f4] sm:$0xff]  }
 0x1f7   :  { %5369 = vst.msk [vmem:[#allocation2 + $0xb00] sm:$0xff] %vm16_vm0, %v11144_v24  ;;  %5370 = vst.msk [vmem:[#allocation2 + $0xb08] sm:$0xff] %vm16_vm0, %v11145_v25  ;;  %v11206_v23 = vld [vmem:[%s16583_s0 + $0x9fc] ss:$0 sps:$4 sm:$0xff]   ;;  %v11207_v24 = vld [vmem:[%s16583_s0 + $0xa00] ss:$0 sps:$4 sm:$0xff]  }
 0x1f8   :  { %5372 = vst.msk [vmem:[#allocation2 + $0xb18] sm:$0xf0] %vm5030_vm1, %v11147_v27  ;;  %5377 = vst.msk [vmem:[#allocation2 + $0xb40] sm:$0xf0] %vm5030_vm1, %v11152_v32  ;;  %v11208_v25 = vld [vmem:[%s16583_s0 + $0xa04] sm:$0xff]   ;;  %v11209_v26 = vld [vmem:[%s16583_s0 + $0xa0c] sm:$0xff]  }
 0x1f9   :  { %5373 = vst.msk [vmem:[#allocation2 + $0xb20] sm:$0xff] %vm16_vm0, %v11148_v28  ;;  %5374 = vst.msk [vmem:[#allocation2 + $0xb28] sm:$0xff] %vm16_vm0, %v11149_v29  ;;  %v11210_v27 = vld [vmem:[%s16583_s0 + $0xa14] sm:$0xff]   ;;  %v11211_v28 = vld [vmem:[%s16583_s0 + $0xa1c] ss:$0 sps:$4 sm:$0xff]  }
 0x1fa   :  { %5375 = vst.msk [vmem:[#allocation2 + $0xb30] sm:$0xff] %vm16_vm0, %v11150_v30  ;;  %5378 = vst.msk [vmem:[#allocation2 + $0xb48] sm:$0xff] %vm16_vm0, %v11153_v33  ;;  %v11212_v29 = vld [vmem:[%s16583_s0 + $0xa20] ss:$0 sps:$4 sm:$0xff]   ;;  %v11213_v30 = vld [vmem:[%s16583_s0 + $0xa24] sm:$0xff]  }
 0x1fb   :  { %5376 = vst.msk [vmem:[#allocation2 + $0xb38] sm:$0xf] %vm5035_vm2, %v11151_v31  ;;  %5381 = vst.msk [vmem:[#allocation2 + $0xb60] sm:$0xf] %vm5035_vm2, %v11156_v36  ;;  %v11214_v31 = vld [vmem:[%s16583_s0 + $0xa2c] sm:$0xff]   ;;  %v11215_v32 = vld [vmem:[%s16583_s0 + $0xa34] sm:$0xff]  }
 0x1fc   :  { %5379 = vst.msk [vmem:[#allocation2 + $0xb50] sm:$0xff] %vm16_vm0, %v11154_v34  ;;  %5380 = vst.msk [vmem:[#allocation2 + $0xb58] sm:$0xff] %vm16_vm0, %v11155_v35  ;;  %v11216_v33 = vld [vmem:[%s16583_s0 + $0xa3c] ss:$0 sps:$4 sm:$0xff]   ;;  %v11217_v34 = vld [vmem:[%s16583_s0 + $0xa40] ss:$0 sps:$4 sm:$0xff]  }
 0x1fd   :  { %5382 = vst.msk [vmem:[#allocation2 + $0xb68] sm:$0xf0] %vm5030_vm1, %v11157_v37  ;;  %5387 = vst.msk [vmem:[#allocation2 + $0xb90] sm:$0xf0] %vm5030_vm1, %v11162_v42  ;;  %v11218_v35 = vld [vmem:[%s16583_s0 + $0xa44] sm:$0xff]   ;;  %v11219_v36 = vld [vmem:[%s16583_s0 + $0xa4c] sm:$0xff]  }
 0x1fe   :  { %5383 = vst.msk [vmem:[#allocation2 + $0xb70] sm:$0xff] %vm16_vm0, %v11158_v38  ;;  %5384 = vst.msk [vmem:[#allocation2 + $0xb78] sm:$0xff] %vm16_vm0, %v11159_v39  ;;  %v11220_v37 = vld [vmem:[%s16583_s0 + $0xa54] sm:$0xff]   ;;  %v11221_v38 = vld [vmem:[%s16583_s0 + $0xa5c] ss:$0 sps:$4 sm:$0xff]  }
 0x1ff   :  { %5385 = vst.msk [vmem:[#allocation2 + $0xb80] sm:$0xff] %vm16_vm0, %v11160_v40  ;;  %5388 = vst.msk [vmem:[#allocation2 + $0xb98] sm:$0xff] %vm16_vm0, %v11163_v43  ;;  %v11222_v39 = vld [vmem:[%s16583_s0 + $0xa60] ss:$0 sps:$4 sm:$0xff]   ;;  %v11223_v40 = vld [vmem:[%s16583_s0 + $0xa64] sm:$0xff]  }
 0x200   :  { %5386 = vst.msk [vmem:[#allocation2 + $0xb88] sm:$0xf] %vm5035_vm2, %v11161_v41  ;;  %5391 = vst.msk [vmem:[#allocation2 + $0xbb0] sm:$0xf] %vm5035_vm2, %v11166_v46  ;;  %v11224_v41 = vld [vmem:[%s16583_s0 + $0xa6c] sm:$0xff]   ;;  %v11225_v42 = vld [vmem:[%s16583_s0 + $0xa74] sm:$0xff]  }
 0x201   :  { %5389 = vst.msk [vmem:[#allocation2 + $0xba0] sm:$0xff] %vm16_vm0, %v11164_v44  ;;  %5390 = vst.msk [vmem:[#allocation2 + $0xba8] sm:$0xff] %vm16_vm0, %v11165_v45  ;;  %v11226_v43 = vld [vmem:[%s16583_s0 + $0xa7c] ss:$0 sps:$4 sm:$0xff]   ;;  %v11227_v44 = vld [vmem:[%s16583_s0 + $0xa80] ss:$0 sps:$4 sm:$0xff]  }
 0x202   :  { %5392 = vst.msk [vmem:[#allocation2 + $0xbb8] sm:$0xf0] %vm5030_vm1, %v11167_v47  ;;  %5397 = vst.msk [vmem:[#allocation2 + $0xbe0] sm:$0xf0] %vm5030_vm1, %v11172_v52  ;;  %v11228_v45 = vld [vmem:[%s16583_s0 + $0xa84] sm:$0xff]   ;;  %v11229_v46 = vld [vmem:[%s16583_s0 + $0xa8c] sm:$0xff]  }
 0x203   :  { %5393 = vst.msk [vmem:[#allocation2 + $0xbc0] sm:$0xff] %vm16_vm0, %v11168_v48  ;;  %5394 = vst.msk [vmem:[#allocation2 + $0xbc8] sm:$0xff] %vm16_vm0, %v11169_v49  ;;  %v11230_v47 = vld [vmem:[%s16583_s0 + $0xa94] sm:$0xff]   ;;  %v11231_v48 = vld [vmem:[%s16583_s0 + $0xa9c] ss:$0 sps:$4 sm:$0xff]  }
 0x204   :  { %5395 = vst.msk [vmem:[#allocation2 + $0xbd0] sm:$0xff] %vm16_vm0, %v11170_v50  ;;  %5398 = vst.msk [vmem:[#allocation2 + $0xbe8] sm:$0xff] %vm16_vm0, %v11173_v53  ;;  %v11232_v49 = vld [vmem:[%s16583_s0 + $0xaa0] ss:$0 sps:$4 sm:$0xff]   ;;  %v11233_v50 = vld [vmem:[%s16583_s0 + $0xaa4] sm:$0xff]  }
 0x205   :  { %5396 = vst.msk [vmem:[#allocation2 + $0xbd8] sm:$0xf] %vm5035_vm2, %v11171_v51  ;;  %5401 = vst.msk [vmem:[#allocation2 + $0xc00] sm:$0xf] %vm5035_vm2, %v11176_v56  ;;  %v11234_v51 = vld [vmem:[%s16583_s0 + $0xaac] sm:$0xff]   ;;  %v11235_v52 = vld [vmem:[%s16583_s0 + $0xab4] sm:$0xff]  }
 0x206   :  { %5399 = vst.msk [vmem:[#allocation2 + $0xbf0] sm:$0xff] %vm16_vm0, %v11174_v54  ;;  %5400 = vst.msk [vmem:[#allocation2 + $0xbf8] sm:$0xff] %vm16_vm0, %v11175_v55  ;;  %v11236_v53 = vld [vmem:[%s16583_s0 + $0xabc] ss:$0 sps:$4 sm:$0xff]   ;;  %v11237_v54 = vld [vmem:[%s16583_s0 + $0xac0] ss:$0 sps:$4 sm:$0xff]  }
 0x207   :  { %5402 = vst.msk [vmem:[#allocation2 + $0xc08] sm:$0xf0] %vm5030_vm1, %v11177_v57  ;;  %5407 = vst.msk [vmem:[#allocation2 + $0xc30] sm:$0xf0] %vm5030_vm1, %v11182_v62  ;;  %v11238_v55 = vld [vmem:[%s16583_s0 + $0xac4] sm:$0xff]   ;;  %v11239_v56 = vld [vmem:[%s16583_s0 + $0xacc] sm:$0xff]  }
 0x208   :  { %5403 = vst.msk [vmem:[#allocation2 + $0xc10] sm:$0xff] %vm16_vm0, %v11178_v58  ;;  %5404 = vst.msk [vmem:[#allocation2 + $0xc18] sm:$0xff] %vm16_vm0, %v11179_v59  ;;  %v11240_v57 = vld [vmem:[%s16583_s0 + $0xad4] sm:$0xff]   ;;  %v11241_v58 = vld [vmem:[%s16583_s0 + $0xadc] ss:$0 sps:$4 sm:$0xff]  }
 0x209   :  { %5405 = vst.msk [vmem:[#allocation2 + $0xc20] sm:$0xff] %vm16_vm0, %v11180_v60  ;;  %5408 = vst.msk [vmem:[#allocation2 + $0xc38] sm:$0xff] %vm16_vm0, %v11183_v63  ;;  %v11242_v59 = vld [vmem:[%s16583_s0 + $0xae0] ss:$0 sps:$4 sm:$0xff]   ;;  %v11243_v60 = vld [vmem:[%s16583_s0 + $0xae4] sm:$0xff]  }
 0x20a   :  { %5406 = vst.msk [vmem:[#allocation2 + $0xc28] sm:$0xf] %vm5035_vm2, %v11181_v61  ;;  %5411 = vst.msk [vmem:[#allocation2 + $0xc50] sm:$0xf] %vm5035_vm2, %v11186_v3  ;;  %v11244_v61 = vld [vmem:[%s16583_s0 + $0xaec] sm:$0xff]   ;;  %v11245_v62 = vld [vmem:[%s16583_s0 + $0xaf4] sm:$0xff]  }
 0x20b   :  { %5409 = vst.msk [vmem:[#allocation2 + $0xc40] sm:$0xff] %vm16_vm0, %v11184_v1  ;;  %5410 = vst.msk [vmem:[#allocation2 + $0xc48] sm:$0xff] %vm16_vm0, %v11185_v2  ;;  %v11246_v63 = vld [vmem:[%s16583_s0 + $0xafc] ss:$0 sps:$4 sm:$0xff]   ;;  %v11247_v1 = vld [vmem:[%s16583_s0 + $0xb00] ss:$0 sps:$4 sm:$0xff]  }
 0x20c   :  { %5412 = vst.msk [vmem:[#allocation2 + $0xc58] sm:$0xf0] %vm5030_vm1, %v11187_v4  ;;  %5417 = vst.msk [vmem:[#allocation2 + $0xc80] sm:$0xf0] %vm5030_vm1, %v11192_v9  ;;  %v11248_v2 = vld [vmem:[%s16583_s0 + $0xb04] sm:$0xff]   ;;  %v11249_v3 = vld [vmem:[%s16583_s0 + $0xb0c] sm:$0xff]  }
 0x20d   :  { %5413 = vst.msk [vmem:[#allocation2 + $0xc60] sm:$0xff] %vm16_vm0, %v11188_v5  ;;  %5414 = vst.msk [vmem:[#allocation2 + $0xc68] sm:$0xff] %vm16_vm0, %v11189_v6  ;;  %v11250_v4 = vld [vmem:[%s16583_s0 + $0xb14] sm:$0xff]   ;;  %v11251_v5 = vld [vmem:[%s16583_s0 + $0xb1c] ss:$0 sps:$4 sm:$0xff]  }
 0x20e   :  { %5415 = vst.msk [vmem:[#allocation2 + $0xc70] sm:$0xff] %vm16_vm0, %v11190_v7  ;;  %5418 = vst.msk [vmem:[#allocation2 + $0xc88] sm:$0xff] %vm16_vm0, %v11193_v10  ;;  %v11252_v6 = vld [vmem:[%s16583_s0 + $0xb20] ss:$0 sps:$4 sm:$0xff]   ;;  %v11253_v7 = vld [vmem:[%s16583_s0 + $0xb24] sm:$0xff]  }
 0x20f   :  { %5416 = vst.msk [vmem:[#allocation2 + $0xc78] sm:$0xf] %vm5035_vm2, %v11191_v8  ;;  %5421 = vst.msk [vmem:[#allocation2 + $0xca0] sm:$0xf] %vm5035_vm2, %v11196_v13  ;;  %v11254_v8 = vld [vmem:[%s16583_s0 + $0xb2c] sm:$0xff]   ;;  %v11255_v9 = vld [vmem:[%s16583_s0 + $0xb34] sm:$0xff]  }
 0x210   :  { %5419 = vst.msk [vmem:[#allocation2 + $0xc90] sm:$0xff] %vm16_vm0, %v11194_v11  ;;  %5420 = vst.msk [vmem:[#allocation2 + $0xc98] sm:$0xff] %vm16_vm0, %v11195_v12  ;;  %v11256_v10 = vld [vmem:[%s16583_s0 + $0xb3c] ss:$0 sps:$4 sm:$0xff]   ;;  %v11257_v11 = vld [vmem:[%s16583_s0 + $0xb40] ss:$0 sps:$4 sm:$0xff]  }
 0x211   :  { %5422 = vst.msk [vmem:[#allocation2 + $0xca8] sm:$0xf0] %vm5030_vm1, %v11197_v14  ;;  %5427 = vst.msk [vmem:[#allocation2 + $0xcd0] sm:$0xf0] %vm5030_vm1, %v11202_v19  ;;  %v11258_v12 = vld [vmem:[%s16583_s0 + $0xb44] sm:$0xff]   ;;  %v11259_v13 = vld [vmem:[%s16583_s0 + $0xb4c] sm:$0xff]  }
 0x212   :  { %5423 = vst.msk [vmem:[#allocation2 + $0xcb0] sm:$0xff] %vm16_vm0, %v11198_v15  ;;  %5424 = vst.msk [vmem:[#allocation2 + $0xcb8] sm:$0xff] %vm16_vm0, %v11199_v16  ;;  %v11260_v14 = vld [vmem:[%s16583_s0 + $0xb54] sm:$0xff]   ;;  %v11261_v15 = vld [vmem:[%s16583_s0 + $0xb5c] ss:$0 sps:$4 sm:$0xff]  }
 0x213   :  { %5425 = vst.msk [vmem:[#allocation2 + $0xcc0] sm:$0xff] %vm16_vm0, %v11200_v17  ;;  %5428 = vst.msk [vmem:[#allocation2 + $0xcd8] sm:$0xff] %vm16_vm0, %v11203_v20  ;;  %v11262_v16 = vld [vmem:[%s16583_s0 + $0xb60] ss:$0 sps:$4 sm:$0xff]   ;;  %v11263_v17 = vld [vmem:[%s16583_s0 + $0xb64] sm:$0xff]  }
 0x214   :  { %5426 = vst.msk [vmem:[#allocation2 + $0xcc8] sm:$0xf] %vm5035_vm2, %v11201_v18  ;;  %5431 = vst.msk [vmem:[#allocation2 + $0xcf0] sm:$0xf] %vm5035_vm2, %v11206_v23  ;;  %v11264_v18 = vld [vmem:[%s16583_s0 + $0xb6c] sm:$0xff]   ;;  %v11265_v19 = vld [vmem:[%s16583_s0 + $0xb74] sm:$0xff]  }
 0x215   :  { %5429 = vst.msk [vmem:[#allocation2 + $0xce0] sm:$0xff] %vm16_vm0, %v11204_v21  ;;  %5430 = vst.msk [vmem:[#allocation2 + $0xce8] sm:$0xff] %vm16_vm0, %v11205_v22  ;;  %v11266_v20 = vld [vmem:[%s16583_s0 + $0xb7c] ss:$0 sps:$4 sm:$0xff]   ;;  %v11267_v21 = vld [vmem:[%s16583_s0 + $0xb80] ss:$0 sps:$4 sm:$0xff]  }
 0x216   :  { %5432 = vst.msk [vmem:[#allocation2 + $0xcf8] sm:$0xf0] %vm5030_vm1, %v11207_v24  ;;  %5437 = vst.msk [vmem:[#allocation2 + $0xd20] sm:$0xf0] %vm5030_vm1, %v11212_v29  ;;  %v11268_v22 = vld [vmem:[%s16583_s0 + $0xb84] sm:$0xff]   ;;  %v11269_v23 = vld [vmem:[%s16583_s0 + $0xb8c] sm:$0xff]  }
 0x217   :  { %5433 = vst.msk [vmem:[#allocation2 + $0xd00] sm:$0xff] %vm16_vm0, %v11208_v25  ;;  %5434 = vst.msk [vmem:[#allocation2 + $0xd08] sm:$0xff] %vm16_vm0, %v11209_v26  ;;  %v11270_v24 = vld [vmem:[%s16583_s0 + $0xb94] sm:$0xff]   ;;  %v11271_v25 = vld [vmem:[%s16583_s0 + $0xb9c] ss:$0 sps:$4 sm:$0xff]  }
 0x218   :  { %5435 = vst.msk [vmem:[#allocation2 + $0xd10] sm:$0xff] %vm16_vm0, %v11210_v27  ;;  %5438 = vst.msk [vmem:[#allocation2 + $0xd28] sm:$0xff] %vm16_vm0, %v11213_v30  ;;  %v11272_v26 = vld [vmem:[%s16583_s0 + $0xba0] ss:$0 sps:$4 sm:$0xff]   ;;  %v11273_v27 = vld [vmem:[%s16583_s0 + $0xba4] sm:$0xff]  }
 0x219   :  { %5436 = vst.msk [vmem:[#allocation2 + $0xd18] sm:$0xf] %vm5035_vm2, %v11211_v28  ;;  %5441 = vst.msk [vmem:[#allocation2 + $0xd40] sm:$0xf] %vm5035_vm2, %v11216_v33  ;;  %v11274_v28 = vld [vmem:[%s16583_s0 + $0xbac] sm:$0xff]   ;;  %v11275_v29 = vld [vmem:[%s16583_s0 + $0xbb4] sm:$0xff]  }
 0x21a   :  { %5439 = vst.msk [vmem:[#allocation2 + $0xd30] sm:$0xff] %vm16_vm0, %v11214_v31  ;;  %5440 = vst.msk [vmem:[#allocation2 + $0xd38] sm:$0xff] %vm16_vm0, %v11215_v32  ;;  %v11276_v30 = vld [vmem:[%s16583_s0 + $0xbbc] ss:$0 sps:$4 sm:$0xff]   ;;  %v11277_v31 = vld [vmem:[%s16583_s0 + $0xbc0] ss:$0 sps:$4 sm:$0xff]  }
 0x21b   :  { %5442 = vst.msk [vmem:[#allocation2 + $0xd48] sm:$0xf0] %vm5030_vm1, %v11217_v34  ;;  %5447 = vst.msk [vmem:[#allocation2 + $0xd70] sm:$0xf0] %vm5030_vm1, %v11222_v39  ;;  %v11278_v32 = vld [vmem:[%s16583_s0 + $0xbc4] sm:$0xff]   ;;  %v11279_v33 = vld [vmem:[%s16583_s0 + $0xbcc] sm:$0xff]  }
 0x21c   :  { %5443 = vst.msk [vmem:[#allocation2 + $0xd50] sm:$0xff] %vm16_vm0, %v11218_v35  ;;  %5444 = vst.msk [vmem:[#allocation2 + $0xd58] sm:$0xff] %vm16_vm0, %v11219_v36  ;;  %v11280_v34 = vld [vmem:[%s16583_s0 + $0xbd4] sm:$0xff]   ;;  %v11281_v35 = vld [vmem:[%s16583_s0 + $0xbdc] ss:$0 sps:$4 sm:$0xff]  }
 0x21d   :  { %5445 = vst.msk [vmem:[#allocation2 + $0xd60] sm:$0xff] %vm16_vm0, %v11220_v37  ;;  %5448 = vst.msk [vmem:[#allocation2 + $0xd78] sm:$0xff] %vm16_vm0, %v11223_v40  ;;  %v11282_v36 = vld [vmem:[%s16583_s0 + $0xbe0] ss:$0 sps:$4 sm:$0xff]   ;;  %v11283_v37 = vld [vmem:[%s16583_s0 + $0xbe4] sm:$0xff]  }
 0x21e   :  { %5446 = vst.msk [vmem:[#allocation2 + $0xd68] sm:$0xf] %vm5035_vm2, %v11221_v38  ;;  %5451 = vst.msk [vmem:[#allocation2 + $0xd90] sm:$0xf] %vm5035_vm2, %v11226_v43  ;;  %v11284_v38 = vld [vmem:[%s16583_s0 + $0xbec] sm:$0xff]   ;;  %v11285_v39 = vld [vmem:[%s16583_s0 + $0xbf4] sm:$0xff]  }
 0x21f   :  { %5449 = vst.msk [vmem:[#allocation2 + $0xd80] sm:$0xff] %vm16_vm0, %v11224_v41  ;;  %5450 = vst.msk [vmem:[#allocation2 + $0xd88] sm:$0xff] %vm16_vm0, %v11225_v42  ;;  %v11286_v40 = vld [vmem:[%s16583_s0 + $0xbfc] ss:$0 sps:$4 sm:$0xff]   ;;  %v11287_v41 = vld [vmem:[%s16583_s0 + $0xc00] ss:$0 sps:$4 sm:$0xff]  }
 0x220   :  { %5452 = vst.msk [vmem:[#allocation2 + $0xd98] sm:$0xf0] %vm5030_vm1, %v11227_v44  ;;  %5457 = vst.msk [vmem:[#allocation2 + $0xdc0] sm:$0xf0] %vm5030_vm1, %v11232_v49  ;;  %v11288_v42 = vld [vmem:[%s16583_s0 + $0xc04] sm:$0xff]   ;;  %v11289_v43 = vld [vmem:[%s16583_s0 + $0xc0c] sm:$0xff]  }
 0x221   :  { %5453 = vst.msk [vmem:[#allocation2 + $0xda0] sm:$0xff] %vm16_vm0, %v11228_v45  ;;  %5454 = vst.msk [vmem:[#allocation2 + $0xda8] sm:$0xff] %vm16_vm0, %v11229_v46  ;;  %v11290_v44 = vld [vmem:[%s16583_s0 + $0xc14] sm:$0xff]   ;;  %v11291_v45 = vld [vmem:[%s16583_s0 + $0xc1c] ss:$0 sps:$4 sm:$0xff]  }
 0x222   :  { %5455 = vst.msk [vmem:[#allocation2 + $0xdb0] sm:$0xff] %vm16_vm0, %v11230_v47  ;;  %5458 = vst.msk [vmem:[#allocation2 + $0xdc8] sm:$0xff] %vm16_vm0, %v11233_v50  ;;  %v11292_v46 = vld [vmem:[%s16583_s0 + $0xc20] ss:$0 sps:$4 sm:$0xff]   ;;  %v11293_v47 = vld [vmem:[%s16583_s0 + $0xc24] sm:$0xff]  }
 0x223   :  { %5456 = vst.msk [vmem:[#allocation2 + $0xdb8] sm:$0xf] %vm5035_vm2, %v11231_v48  ;;  %5461 = vst.msk [vmem:[#allocation2 + $0xde0] sm:$0xf] %vm5035_vm2, %v11236_v53  ;;  %v11294_v48 = vld [vmem:[%s16583_s0 + $0xc2c] sm:$0xff]   ;;  %v11295_v49 = vld [vmem:[%s16583_s0 + $0xc34] sm:$0xff]  }
 0x224   :  { %5459 = vst.msk [vmem:[#allocation2 + $0xdd0] sm:$0xff] %vm16_vm0, %v11234_v51  ;;  %5460 = vst.msk [vmem:[#allocation2 + $0xdd8] sm:$0xff] %vm16_vm0, %v11235_v52  ;;  %v11296_v50 = vld [vmem:[%s16583_s0 + $0xc3c] ss:$0 sps:$4 sm:$0xff]   ;;  %v11297_v51 = vld [vmem:[%s16583_s0 + $0xc40] ss:$0 sps:$4 sm:$0xff]  }
 0x225   :  { %5462 = vst.msk [vmem:[#allocation2 + $0xde8] sm:$0xf0] %vm5030_vm1, %v11237_v54  ;;  %5467 = vst.msk [vmem:[#allocation2 + $0xe10] sm:$0xf0] %vm5030_vm1, %v11242_v59  ;;  %v11298_v52 = vld [vmem:[%s16583_s0 + $0xc44] sm:$0xff]   ;;  %v11299_v53 = vld [vmem:[%s16583_s0 + $0xc4c] sm:$0xff]  }
 0x226   :  { %5463 = vst.msk [vmem:[#allocation2 + $0xdf0] sm:$0xff] %vm16_vm0, %v11238_v55  ;;  %5464 = vst.msk [vmem:[#allocation2 + $0xdf8] sm:$0xff] %vm16_vm0, %v11239_v56  ;;  %v11300_v54 = vld [vmem:[%s16583_s0 + $0xc54] sm:$0xff]   ;;  %v11301_v55 = vld [vmem:[%s16583_s0 + $0xc5c] ss:$0 sps:$4 sm:$0xff]  }
 0x227   :  { %5465 = vst.msk [vmem:[#allocation2 + $0xe00] sm:$0xff] %vm16_vm0, %v11240_v57  ;;  %5468 = vst.msk [vmem:[#allocation2 + $0xe18] sm:$0xff] %vm16_vm0, %v11243_v60  ;;  %v11302_v56 = vld [vmem:[%s16583_s0 + $0xc60] ss:$0 sps:$4 sm:$0xff]   ;;  %v11303_v57 = vld [vmem:[%s16583_s0 + $0xc64] sm:$0xff]  }
 0x228   :  { %5466 = vst.msk [vmem:[#allocation2 + $0xe08] sm:$0xf] %vm5035_vm2, %v11241_v58  ;;  %5471 = vst.msk [vmem:[#allocation2 + $0xe30] sm:$0xf] %vm5035_vm2, %v11246_v63  ;;  %v11304_v58 = vld [vmem:[%s16583_s0 + $0xc6c] sm:$0xff]   ;;  %v11305_v59 = vld [vmem:[%s16583_s0 + $0xc74] sm:$0xff]  }
 0x229   :  { %5469 = vst.msk [vmem:[#allocation2 + $0xe20] sm:$0xff] %vm16_vm0, %v11244_v61  ;;  %5470 = vst.msk [vmem:[#allocation2 + $0xe28] sm:$0xff] %vm16_vm0, %v11245_v62  ;;  %v11306_v60 = vld [vmem:[%s16583_s0 + $0xc7c] ss:$0 sps:$4 sm:$0xff]   ;;  %v11307_v61 = vld [vmem:[%s16583_s0 + $0xc80] ss:$0 sps:$4 sm:$0xff]  }
 0x22a   :  { %5472 = vst.msk [vmem:[#allocation2 + $0xe38] sm:$0xf0] %vm5030_vm1, %v11247_v1  ;;  %5477 = vst.msk [vmem:[#allocation2 + $0xe60] sm:$0xf0] %vm5030_vm1, %v11252_v6  ;;  %v11308_v62 = vld [vmem:[%s16583_s0 + $0xc84] sm:$0xff]   ;;  %v11309_v63 = vld [vmem:[%s16583_s0 + $0xc8c] sm:$0xff]  }
 0x22b   :  { %5473 = vst.msk [vmem:[#allocation2 + $0xe40] sm:$0xff] %vm16_vm0, %v11248_v2  ;;  %5474 = vst.msk [vmem:[#allocation2 + $0xe48] sm:$0xff] %vm16_vm0, %v11249_v3  ;;  %v11310_v1 = vld [vmem:[%s16583_s0 + $0xc94] sm:$0xff]   ;;  %v11311_v2 = vld [vmem:[%s16583_s0 + $0xc9c] ss:$0 sps:$4 sm:$0xff]  }
 0x22c   :  { %5475 = vst.msk [vmem:[#allocation2 + $0xe50] sm:$0xff] %vm16_vm0, %v11250_v4  ;;  %5478 = vst.msk [vmem:[#allocation2 + $0xe68] sm:$0xff] %vm16_vm0, %v11253_v7  ;;  %v11312_v3 = vld [vmem:[%s16583_s0 + $0xca0] ss:$0 sps:$4 sm:$0xff]   ;;  %v11313_v4 = vld [vmem:[%s16583_s0 + $0xca4] sm:$0xff]  }
 0x22d   :  { %5476 = vst.msk [vmem:[#allocation2 + $0xe58] sm:$0xf] %vm5035_vm2, %v11251_v5  ;;  %5481 = vst.msk [vmem:[#allocation2 + $0xe80] sm:$0xf] %vm5035_vm2, %v11256_v10  ;;  %v11314_v5 = vld [vmem:[%s16583_s0 + $0xcac] sm:$0xff]   ;;  %v11315_v6 = vld [vmem:[%s16583_s0 + $0xcb4] sm:$0xff]  }
 0x22e   :  { %5479 = vst.msk [vmem:[#allocation2 + $0xe70] sm:$0xff] %vm16_vm0, %v11254_v8  ;;  %5480 = vst.msk [vmem:[#allocation2 + $0xe78] sm:$0xff] %vm16_vm0, %v11255_v9  ;;  %v11316_v7 = vld [vmem:[%s16583_s0 + $0xcbc] ss:$0 sps:$4 sm:$0xff]   ;;  %v11317_v8 = vld [vmem:[%s16583_s0 + $0xcc0] ss:$0 sps:$4 sm:$0xff]  }
 0x22f   :  { %5482 = vst.msk [vmem:[#allocation2 + $0xe88] sm:$0xf0] %vm5030_vm1, %v11257_v11  ;;  %5487 = vst.msk [vmem:[#allocation2 + $0xeb0] sm:$0xf0] %vm5030_vm1, %v11262_v16  ;;  %v11318_v9 = vld [vmem:[%s16583_s0 + $0xcc4] sm:$0xff]   ;;  %v11319_v10 = vld [vmem:[%s16583_s0 + $0xccc] sm:$0xff]  }
 0x230   :  { %5483 = vst.msk [vmem:[#allocation2 + $0xe90] sm:$0xff] %vm16_vm0, %v11258_v12  ;;  %5484 = vst.msk [vmem:[#allocation2 + $0xe98] sm:$0xff] %vm16_vm0, %v11259_v13  ;;  %v11320_v11 = vld [vmem:[%s16583_s0 + $0xcd4] sm:$0xff]   ;;  %v11321_v12 = vld [vmem:[%s16583_s0 + $0xcdc] ss:$0 sps:$4 sm:$0xff]  }
 0x231   :  { %5485 = vst.msk [vmem:[#allocation2 + $0xea0] sm:$0xff] %vm16_vm0, %v11260_v14  ;;  %5488 = vst.msk [vmem:[#allocation2 + $0xeb8] sm:$0xff] %vm16_vm0, %v11263_v17  ;;  %v11322_v13 = vld [vmem:[%s16583_s0 + $0xce0] ss:$0 sps:$4 sm:$0xff]   ;;  %v11323_v14 = vld [vmem:[%s16583_s0 + $0xce4] sm:$0xff]  }
 0x232   :  { %5486 = vst.msk [vmem:[#allocation2 + $0xea8] sm:$0xf] %vm5035_vm2, %v11261_v15  ;;  %5491 = vst.msk [vmem:[#allocation2 + $0xed0] sm:$0xf] %vm5035_vm2, %v11266_v20  ;;  %v11324_v15 = vld [vmem:[%s16583_s0 + $0xcec] sm:$0xff]   ;;  %v11325_v16 = vld [vmem:[%s16583_s0 + $0xcf4] sm:$0xff]  }
 0x233   :  { %5489 = vst.msk [vmem:[#allocation2 + $0xec0] sm:$0xff] %vm16_vm0, %v11264_v18  ;;  %5490 = vst.msk [vmem:[#allocation2 + $0xec8] sm:$0xff] %vm16_vm0, %v11265_v19  ;;  %v11326_v17 = vld [vmem:[%s16583_s0 + $0xcfc] ss:$0 sps:$4 sm:$0xff]   ;;  %v11327_v18 = vld [vmem:[%s16583_s0 + $0xd00] ss:$0 sps:$4 sm:$0xff]  }
 0x234   :  { %5492 = vst.msk [vmem:[#allocation2 + $0xed8] sm:$0xf0] %vm5030_vm1, %v11267_v21  ;;  %5497 = vst.msk [vmem:[#allocation2 + $0xf00] sm:$0xf0] %vm5030_vm1, %v11272_v26  ;;  %v11328_v19 = vld [vmem:[%s16583_s0 + $0xd04] sm:$0xff]   ;;  %v11329_v20 = vld [vmem:[%s16583_s0 + $0xd0c] sm:$0xff]  }
 0x235   :  { %5493 = vst.msk [vmem:[#allocation2 + $0xee0] sm:$0xff] %vm16_vm0, %v11268_v22  ;;  %5494 = vst.msk [vmem:[#allocation2 + $0xee8] sm:$0xff] %vm16_vm0, %v11269_v23  ;;  %v11330_v21 = vld [vmem:[%s16583_s0 + $0xd14] sm:$0xff]   ;;  %v11331_v22 = vld [vmem:[%s16583_s0 + $0xd1c] ss:$0 sps:$4 sm:$0xff]  }
 0x236   :  { %5495 = vst.msk [vmem:[#allocation2 + $0xef0] sm:$0xff] %vm16_vm0, %v11270_v24  ;;  %5498 = vst.msk [vmem:[#allocation2 + $0xf08] sm:$0xff] %vm16_vm0, %v11273_v27  ;;  %v11332_v23 = vld [vmem:[%s16583_s0 + $0xd20] ss:$0 sps:$4 sm:$0xff]   ;;  %v11333_v24 = vld [vmem:[%s16583_s0 + $0xd24] sm:$0xff]  }
 0x237   :  { %5496 = vst.msk [vmem:[#allocation2 + $0xef8] sm:$0xf] %vm5035_vm2, %v11271_v25  ;;  %5501 = vst.msk [vmem:[#allocation2 + $0xf20] sm:$0xf] %vm5035_vm2, %v11276_v30  ;;  %v11334_v25 = vld [vmem:[%s16583_s0 + $0xd2c] sm:$0xff]   ;;  %v11335_v26 = vld [vmem:[%s16583_s0 + $0xd34] sm:$0xff]  }
 0x238   :  { %5499 = vst.msk [vmem:[#allocation2 + $0xf10] sm:$0xff] %vm16_vm0, %v11274_v28  ;;  %5500 = vst.msk [vmem:[#allocation2 + $0xf18] sm:$0xff] %vm16_vm0, %v11275_v29  ;;  %v11336_v27 = vld [vmem:[%s16583_s0 + $0xd3c] ss:$0 sps:$4 sm:$0xff]   ;;  %v11337_v28 = vld [vmem:[%s16583_s0 + $0xd40] ss:$0 sps:$4 sm:$0xff]  }
 0x239   :  { %5502 = vst.msk [vmem:[#allocation2 + $0xf28] sm:$0xf0] %vm5030_vm1, %v11277_v31  ;;  %5507 = vst.msk [vmem:[#allocation2 + $0xf50] sm:$0xf0] %vm5030_vm1, %v11282_v36  ;;  %v11338_v29 = vld [vmem:[%s16583_s0 + $0xd44] sm:$0xff]   ;;  %v11339_v30 = vld [vmem:[%s16583_s0 + $0xd4c] sm:$0xff]  }
 0x23a   :  { %5503 = vst.msk [vmem:[#allocation2 + $0xf30] sm:$0xff] %vm16_vm0, %v11278_v32  ;;  %5504 = vst.msk [vmem:[#allocation2 + $0xf38] sm:$0xff] %vm16_vm0, %v11279_v33  ;;  %v11340_v31 = vld [vmem:[%s16583_s0 + $0xd54] sm:$0xff]   ;;  %v11341_v32 = vld [vmem:[%s16583_s0 + $0xd5c] ss:$0 sps:$4 sm:$0xff]  }
 0x23b   :  { %5505 = vst.msk [vmem:[#allocation2 + $0xf40] sm:$0xff] %vm16_vm0, %v11280_v34  ;;  %5508 = vst.msk [vmem:[#allocation2 + $0xf58] sm:$0xff] %vm16_vm0, %v11283_v37  ;;  %v11342_v33 = vld [vmem:[%s16583_s0 + $0xd60] ss:$0 sps:$4 sm:$0xff]   ;;  %v11343_v34 = vld [vmem:[%s16583_s0 + $0xd64] sm:$0xff]  }
 0x23c   :  { %5506 = vst.msk [vmem:[#allocation2 + $0xf48] sm:$0xf] %vm5035_vm2, %v11281_v35  ;;  %5511 = vst.msk [vmem:[#allocation2 + $0xf70] sm:$0xf] %vm5035_vm2, %v11286_v40  ;;  %v11344_v35 = vld [vmem:[%s16583_s0 + $0xd6c] sm:$0xff]   ;;  %v11345_v36 = vld [vmem:[%s16583_s0 + $0xd74] sm:$0xff]  }
 0x23d   :  { %5509 = vst.msk [vmem:[#allocation2 + $0xf60] sm:$0xff] %vm16_vm0, %v11284_v38  ;;  %5510 = vst.msk [vmem:[#allocation2 + $0xf68] sm:$0xff] %vm16_vm0, %v11285_v39  ;;  %v11346_v37 = vld [vmem:[%s16583_s0 + $0xd7c] ss:$0 sps:$4 sm:$0xff]   ;;  %v11347_v38 = vld [vmem:[%s16583_s0 + $0xd80] ss:$0 sps:$4 sm:$0xff]  }
 0x23e   :  { %5512 = vst.msk [vmem:[#allocation2 + $0xf78] sm:$0xf0] %vm5030_vm1, %v11287_v41  ;;  %5517 = vst.msk [vmem:[#allocation2 + $0xfa0] sm:$0xf0] %vm5030_vm1, %v11292_v46  ;;  %v11348_v39 = vld [vmem:[%s16583_s0 + $0xd84] sm:$0xff]   ;;  %v11349_v40 = vld [vmem:[%s16583_s0 + $0xd8c] sm:$0xff]  }
 0x23f   :  { %5513 = vst.msk [vmem:[#allocation2 + $0xf80] sm:$0xff] %vm16_vm0, %v11288_v42  ;;  %5514 = vst.msk [vmem:[#allocation2 + $0xf88] sm:$0xff] %vm16_vm0, %v11289_v43  ;;  %v11350_v41 = vld [vmem:[%s16583_s0 + $0xd94] sm:$0xff]   ;;  %v11351_v42 = vld [vmem:[%s16583_s0 + $0xd9c] ss:$0 sps:$4 sm:$0xff]  }
 0x240   :  { %5515 = vst.msk [vmem:[#allocation2 + $0xf90] sm:$0xff] %vm16_vm0, %v11290_v44  ;;  %5518 = vst.msk [vmem:[#allocation2 + $0xfa8] sm:$0xff] %vm16_vm0, %v11293_v47  ;;  %v11352_v43 = vld [vmem:[%s16583_s0 + $0xda0] ss:$0 sps:$4 sm:$0xff]   ;;  %v11353_v44 = vld [vmem:[%s16583_s0 + $0xda4] sm:$0xff]  }
 0x241   :  { %5516 = vst.msk [vmem:[#allocation2 + $0xf98] sm:$0xf] %vm5035_vm2, %v11291_v45  ;;  %5521 = vst.msk [vmem:[#allocation2 + $0xfc0] sm:$0xf] %vm5035_vm2, %v11296_v50  ;;  %v11354_v45 = vld [vmem:[%s16583_s0 + $0xdac] sm:$0xff]   ;;  %v11355_v46 = vld [vmem:[%s16583_s0 + $0xdb4] sm:$0xff]  }
 0x242   :  { %5519 = vst.msk [vmem:[#allocation2 + $0xfb0] sm:$0xff] %vm16_vm0, %v11294_v48  ;;  %5520 = vst.msk [vmem:[#allocation2 + $0xfb8] sm:$0xff] %vm16_vm0, %v11295_v49  ;;  %v11356_v47 = vld [vmem:[%s16583_s0 + $0xdbc] ss:$0 sps:$4 sm:$0xff]   ;;  %v11357_v48 = vld [vmem:[%s16583_s0 + $0xdc0] ss:$0 sps:$4 sm:$0xff]  }
 0x243   :  { %5522 = vst.msk [vmem:[#allocation2 + $0xfc8] sm:$0xf0] %vm5030_vm1, %v11297_v51  ;;  %5527 = vst.msk [vmem:[#allocation2 + $0xff0] sm:$0xf0] %vm5030_vm1, %v11302_v56  ;;  %v11358_v49 = vld [vmem:[%s16583_s0 + $0xdc4] sm:$0xff]   ;;  %v11359_v50 = vld [vmem:[%s16583_s0 + $0xdcc] sm:$0xff]  }
 0x244   :  { %5523 = vst.msk [vmem:[#allocation2 + $0xfd0] sm:$0xff] %vm16_vm0, %v11298_v52  ;;  %5524 = vst.msk [vmem:[#allocation2 + $0xfd8] sm:$0xff] %vm16_vm0, %v11299_v53  ;;  %v11360_v51 = vld [vmem:[%s16583_s0 + $0xdd4] sm:$0xff]   ;;  %v11361_v52 = vld [vmem:[%s16583_s0 + $0xddc] ss:$0 sps:$4 sm:$0xff]  }
 0x245   :  { %5525 = vst.msk [vmem:[#allocation2 + $0xfe0] sm:$0xff] %vm16_vm0, %v11300_v54  ;;  %5528 = vst.msk [vmem:[#allocation2 + $0xff8] sm:$0xff] %vm16_vm0, %v11303_v57  ;;  %v11362_v53 = vld [vmem:[%s16583_s0 + $0xde0] ss:$0 sps:$4 sm:$0xff]   ;;  %v11363_v54 = vld [vmem:[%s16583_s0 + $0xde4] sm:$0xff]  }
 0x246   :  { %5526 = vst.msk [vmem:[#allocation2 + $0xfe8] sm:$0xf] %vm5035_vm2, %v11301_v55  ;;  %5531 = vst.msk [vmem:[#allocation2 + $0x1010] sm:$0xf] %vm5035_vm2, %v11306_v60  ;;  %v11364_v55 = vld [vmem:[%s16583_s0 + $0xdec] sm:$0xff]   ;;  %v11365_v56 = vld [vmem:[%s16583_s0 + $0xdf4] sm:$0xff]  }
 0x247   :  { %5529 = vst.msk [vmem:[#allocation2 + $0x1000] sm:$0xff] %vm16_vm0, %v11304_v58  ;;  %5530 = vst.msk [vmem:[#allocation2 + $0x1008] sm:$0xff] %vm16_vm0, %v11305_v59  ;;  %v11366_v57 = vld [vmem:[%s16583_s0 + $0xdfc] ss:$0 sps:$4 sm:$0xff]   ;;  %v11367_v58 = vld [vmem:[%s16583_s0 + $0xe00] ss:$0 sps:$4 sm:$0xff]  }
 0x248   :  { %5532 = vst.msk [vmem:[#allocation2 + $0x1018] sm:$0xf0] %vm5030_vm1, %v11307_v61  ;;  %5537 = vst.msk [vmem:[#allocation2 + $0x1040] sm:$0xf0] %vm5030_vm1, %v11312_v3  ;;  %v11368_v59 = vld [vmem:[%s16583_s0 + $0xe04] sm:$0xff]   ;;  %v11369_v60 = vld [vmem:[%s16583_s0 + $0xe0c] sm:$0xff]  }
 0x249   :  { %5533 = vst.msk [vmem:[#allocation2 + $0x1020] sm:$0xff] %vm16_vm0, %v11308_v62  ;;  %5534 = vst.msk [vmem:[#allocation2 + $0x1028] sm:$0xff] %vm16_vm0, %v11309_v63  ;;  %v11370_v61 = vld [vmem:[%s16583_s0 + $0xe14] sm:$0xff]   ;;  %v11371_v62 = vld [vmem:[%s16583_s0 + $0xe1c] ss:$0 sps:$4 sm:$0xff]  }
 0x24a   :  { %5535 = vst.msk [vmem:[#allocation2 + $0x1030] sm:$0xff] %vm16_vm0, %v11310_v1  ;;  %5538 = vst.msk [vmem:[#allocation2 + $0x1048] sm:$0xff] %vm16_vm0, %v11313_v4  ;;  %v11372_v63 = vld [vmem:[%s16583_s0 + $0xe20] ss:$0 sps:$4 sm:$0xff]   ;;  %v11373_v1 = vld [vmem:[%s16583_s0 + $0xe24] sm:$0xff]  }
 0x24b   :  { %5536 = vst.msk [vmem:[#allocation2 + $0x1038] sm:$0xf] %vm5035_vm2, %v11311_v2  ;;  %5541 = vst.msk [vmem:[#allocation2 + $0x1060] sm:$0xf] %vm5035_vm2, %v11316_v7  ;;  %v11374_v2 = vld [vmem:[%s16583_s0 + $0xe2c] sm:$0xff]   ;;  %v11375_v3 = vld [vmem:[%s16583_s0 + $0xe34] sm:$0xff]  }
 0x24c   :  { %5539 = vst.msk [vmem:[#allocation2 + $0x1050] sm:$0xff] %vm16_vm0, %v11314_v5  ;;  %5540 = vst.msk [vmem:[#allocation2 + $0x1058] sm:$0xff] %vm16_vm0, %v11315_v6  ;;  %v11376_v4 = vld [vmem:[%s16583_s0 + $0xe3c] ss:$0 sps:$4 sm:$0xff]   ;;  %v11377_v5 = vld [vmem:[%s16583_s0 + $0xe40] ss:$0 sps:$4 sm:$0xff]  }
 0x24d   :  { %5542 = vst.msk [vmem:[#allocation2 + $0x1068] sm:$0xf0] %vm5030_vm1, %v11317_v8  ;;  %5547 = vst.msk [vmem:[#allocation2 + $0x1090] sm:$0xf0] %vm5030_vm1, %v11322_v13  ;;  %v11378_v6 = vld [vmem:[%s16583_s0 + $0xe44] sm:$0xff]   ;;  %v11379_v7 = vld [vmem:[%s16583_s0 + $0xe4c] sm:$0xff]  }
 0x24e   :  { %5543 = vst.msk [vmem:[#allocation2 + $0x1070] sm:$0xff] %vm16_vm0, %v11318_v9  ;;  %5544 = vst.msk [vmem:[#allocation2 + $0x1078] sm:$0xff] %vm16_vm0, %v11319_v10  ;;  %v11380_v8 = vld [vmem:[%s16583_s0 + $0xe54] sm:$0xff]   ;;  %v11381_v9 = vld [vmem:[%s16583_s0 + $0xe5c] ss:$0 sps:$4 sm:$0xff]  }
 0x24f   :  { %5545 = vst.msk [vmem:[#allocation2 + $0x1080] sm:$0xff] %vm16_vm0, %v11320_v11  ;;  %5548 = vst.msk [vmem:[#allocation2 + $0x1098] sm:$0xff] %vm16_vm0, %v11323_v14  ;;  %v11382_v10 = vld [vmem:[%s16583_s0 + $0xe60] ss:$0 sps:$4 sm:$0xff]   ;;  %v11383_v11 = vld [vmem:[%s16583_s0 + $0xe64] sm:$0xff]  }
 0x250   :  { %5546 = vst.msk [vmem:[#allocation2 + $0x1088] sm:$0xf] %vm5035_vm2, %v11321_v12  ;;  %5551 = vst.msk [vmem:[#allocation2 + $0x10b0] sm:$0xf] %vm5035_vm2, %v11326_v17  ;;  %v11384_v12 = vld [vmem:[%s16583_s0 + $0xe6c] sm:$0xff]   ;;  %v11385_v13 = vld [vmem:[%s16583_s0 + $0xe74] sm:$0xff]  }
 0x251   :  { %5549 = vst.msk [vmem:[#allocation2 + $0x10a0] sm:$0xff] %vm16_vm0, %v11324_v15  ;;  %5550 = vst.msk [vmem:[#allocation2 + $0x10a8] sm:$0xff] %vm16_vm0, %v11325_v16  ;;  %v11386_v14 = vld [vmem:[%s16583_s0 + $0xe7c] ss:$0 sps:$4 sm:$0xff]   ;;  %v11387_v15 = vld [vmem:[%s16583_s0 + $0xe80] ss:$0 sps:$4 sm:$0xff]  }
 0x252   :  { %5552 = vst.msk [vmem:[#allocation2 + $0x10b8] sm:$0xf0] %vm5030_vm1, %v11327_v18  ;;  %5557 = vst.msk [vmem:[#allocation2 + $0x10e0] sm:$0xf0] %vm5030_vm1, %v11332_v23  ;;  %v11388_v16 = vld [vmem:[%s16583_s0 + $0xe84] sm:$0xff]   ;;  %v11389_v17 = vld [vmem:[%s16583_s0 + $0xe8c] sm:$0xff]  }
 0x253   :  { %5553 = vst.msk [vmem:[#allocation2 + $0x10c0] sm:$0xff] %vm16_vm0, %v11328_v19  ;;  %5554 = vst.msk [vmem:[#allocation2 + $0x10c8] sm:$0xff] %vm16_vm0, %v11329_v20  ;;  %v11390_v18 = vld [vmem:[%s16583_s0 + $0xe94] sm:$0xff]   ;;  %v11391_v19 = vld [vmem:[%s16583_s0 + $0xe9c] ss:$0 sps:$4 sm:$0xff]  }
 0x254   :  { %5555 = vst.msk [vmem:[#allocation2 + $0x10d0] sm:$0xff] %vm16_vm0, %v11330_v21  ;;  %5558 = vst.msk [vmem:[#allocation2 + $0x10e8] sm:$0xff] %vm16_vm0, %v11333_v24  ;;  %v11392_v20 = vld [vmem:[%s16583_s0 + $0xea0] ss:$0 sps:$4 sm:$0xff]   ;;  %v11393_v21 = vld [vmem:[%s16583_s0 + $0xea4] sm:$0xff]  }
 0x255   :  { %5556 = vst.msk [vmem:[#allocation2 + $0x10d8] sm:$0xf] %vm5035_vm2, %v11331_v22  ;;  %5561 = vst.msk [vmem:[#allocation2 + $0x1100] sm:$0xf] %vm5035_vm2, %v11336_v27  ;;  %v11394_v22 = vld [vmem:[%s16583_s0 + $0xeac] sm:$0xff]   ;;  %v11395_v23 = vld [vmem:[%s16583_s0 + $0xeb4] sm:$0xff]  }
 0x256   :  { %5559 = vst.msk [vmem:[#allocation2 + $0x10f0] sm:$0xff] %vm16_vm0, %v11334_v25  ;;  %5560 = vst.msk [vmem:[#allocation2 + $0x10f8] sm:$0xff] %vm16_vm0, %v11335_v26  ;;  %v11396_v24 = vld [vmem:[%s16583_s0 + $0xebc] ss:$0 sps:$4 sm:$0xff]   ;;  %v11397_v25 = vld [vmem:[%s16583_s0 + $0xec0] ss:$0 sps:$4 sm:$0xff]  }
 0x257   :  { %5562 = vst.msk [vmem:[#allocation2 + $0x1108] sm:$0xf0] %vm5030_vm1, %v11337_v28  ;;  %5567 = vst.msk [vmem:[#allocation2 + $0x1130] sm:$0xf0] %vm5030_vm1, %v11342_v33  ;;  %v11398_v26 = vld [vmem:[%s16583_s0 + $0xec4] sm:$0xff]   ;;  %v11399_v27 = vld [vmem:[%s16583_s0 + $0xecc] sm:$0xff]  }
 0x258   :  { %5563 = vst.msk [vmem:[#allocation2 + $0x1110] sm:$0xff] %vm16_vm0, %v11338_v29  ;;  %5564 = vst.msk [vmem:[#allocation2 + $0x1118] sm:$0xff] %vm16_vm0, %v11339_v30  ;;  %v11400_v28 = vld [vmem:[%s16583_s0 + $0xed4] sm:$0xff]   ;;  %v11401_v29 = vld [vmem:[%s16583_s0 + $0xedc] ss:$0 sps:$4 sm:$0xff]  }
 0x259   :  { %5565 = vst.msk [vmem:[#allocation2 + $0x1120] sm:$0xff] %vm16_vm0, %v11340_v31  ;;  %5568 = vst.msk [vmem:[#allocation2 + $0x1138] sm:$0xff] %vm16_vm0, %v11343_v34  ;;  %v11402_v30 = vld [vmem:[%s16583_s0 + $0xee0] ss:$0 sps:$4 sm:$0xff]   ;;  %v11403_v31 = vld [vmem:[%s16583_s0 + $0xee4] sm:$0xff]  }
 0x25a   :  { %5566 = vst.msk [vmem:[#allocation2 + $0x1128] sm:$0xf] %vm5035_vm2, %v11341_v32  ;;  %5571 = vst.msk [vmem:[#allocation2 + $0x1150] sm:$0xf] %vm5035_vm2, %v11346_v37  ;;  %v11404_v32 = vld [vmem:[%s16583_s0 + $0xeec] sm:$0xff]   ;;  %v11405_v33 = vld [vmem:[%s16583_s0 + $0xef4] sm:$0xff]  }
 0x25b   :  { %5569 = vst.msk [vmem:[#allocation2 + $0x1140] sm:$0xff] %vm16_vm0, %v11344_v35  ;;  %5570 = vst.msk [vmem:[#allocation2 + $0x1148] sm:$0xff] %vm16_vm0, %v11345_v36  ;;  %v11406_v34 = vld [vmem:[%s16583_s0 + $0xefc] ss:$0 sps:$4 sm:$0xff]   ;;  %v11407_v35 = vld [vmem:[%s16583_s0 + $0xf00] ss:$0 sps:$4 sm:$0xff]  }
 0x25c   :  { %5572 = vst.msk [vmem:[#allocation2 + $0x1158] sm:$0xf0] %vm5030_vm1, %v11347_v38  ;;  %5577 = vst.msk [vmem:[#allocation2 + $0x1180] sm:$0xf0] %vm5030_vm1, %v11352_v43  ;;  %v11408_v36 = vld [vmem:[%s16583_s0 + $0xf04] sm:$0xff]   ;;  %v11409_v37 = vld [vmem:[%s16583_s0 + $0xf0c] sm:$0xff]  }
 0x25d   :  { %5573 = vst.msk [vmem:[#allocation2 + $0x1160] sm:$0xff] %vm16_vm0, %v11348_v39  ;;  %5574 = vst.msk [vmem:[#allocation2 + $0x1168] sm:$0xff] %vm16_vm0, %v11349_v40  ;;  %v11410_v38 = vld [vmem:[%s16583_s0 + $0xf14] sm:$0xff]   ;;  %v11411_v39 = vld [vmem:[%s16583_s0 + $0xf1c] ss:$0 sps:$4 sm:$0xff]  }
 0x25e   :  { %5575 = vst.msk [vmem:[#allocation2 + $0x1170] sm:$0xff] %vm16_vm0, %v11350_v41  ;;  %5578 = vst.msk [vmem:[#allocation2 + $0x1188] sm:$0xff] %vm16_vm0, %v11353_v44  ;;  %v11412_v40 = vld [vmem:[%s16583_s0 + $0xf20] ss:$0 sps:$4 sm:$0xff]   ;;  %v11413_v41 = vld [vmem:[%s16583_s0 + $0xf24] sm:$0xff]  }
 0x25f   :  { %5576 = vst.msk [vmem:[#allocation2 + $0x1178] sm:$0xf] %vm5035_vm2, %v11351_v42  ;;  %5581 = vst.msk [vmem:[#allocation2 + $0x11a0] sm:$0xf] %vm5035_vm2, %v11356_v47  ;;  %v11414_v42 = vld [vmem:[%s16583_s0 + $0xf2c] sm:$0xff]   ;;  %v11415_v43 = vld [vmem:[%s16583_s0 + $0xf34] sm:$0xff]  }
 0x260   :  { %5579 = vst.msk [vmem:[#allocation2 + $0x1190] sm:$0xff] %vm16_vm0, %v11354_v45  ;;  %5580 = vst.msk [vmem:[#allocation2 + $0x1198] sm:$0xff] %vm16_vm0, %v11355_v46  ;;  %v11416_v44 = vld [vmem:[%s16583_s0 + $0xf3c] ss:$0 sps:$4 sm:$0xff]   ;;  %v11417_v45 = vld [vmem:[%s16583_s0 + $0xf40] ss:$0 sps:$4 sm:$0xff]  }
 0x261   :  { %5582 = vst.msk [vmem:[#allocation2 + $0x11a8] sm:$0xf0] %vm5030_vm1, %v11357_v48  ;;  %5587 = vst.msk [vmem:[#allocation2 + $0x11d0] sm:$0xf0] %vm5030_vm1, %v11362_v53  ;;  %v11418_v46 = vld [vmem:[%s16583_s0 + $0xf44] sm:$0xff]   ;;  %v11419_v47 = vld [vmem:[%s16583_s0 + $0xf4c] sm:$0xff]  }
 0x262   :  { %5583 = vst.msk [vmem:[#allocation2 + $0x11b0] sm:$0xff] %vm16_vm0, %v11358_v49  ;;  %5584 = vst.msk [vmem:[#allocation2 + $0x11b8] sm:$0xff] %vm16_vm0, %v11359_v50  ;;  %v11420_v48 = vld [vmem:[%s16583_s0 + $0xf54] sm:$0xff]   ;;  %v11421_v49 = vld [vmem:[%s16583_s0 + $0xf5c] ss:$0 sps:$4 sm:$0xff]  }
 0x263   :  { %5585 = vst.msk [vmem:[#allocation2 + $0x11c0] sm:$0xff] %vm16_vm0, %v11360_v51  ;;  %5588 = vst.msk [vmem:[#allocation2 + $0x11d8] sm:$0xff] %vm16_vm0, %v11363_v54  ;;  %v11422_v50 = vld [vmem:[%s16583_s0 + $0xf60] ss:$0 sps:$4 sm:$0xff]   ;;  %v11423_v51 = vld [vmem:[%s16583_s0 + $0xf64] sm:$0xff]  }
 0x264   :  { %5586 = vst.msk [vmem:[#allocation2 + $0x11c8] sm:$0xf] %vm5035_vm2, %v11361_v52  ;;  %5591 = vst.msk [vmem:[#allocation2 + $0x11f0] sm:$0xf] %vm5035_vm2, %v11366_v57  ;;  %v11424_v52 = vld [vmem:[%s16583_s0 + $0xf6c] sm:$0xff]   ;;  %v11425_v53 = vld [vmem:[%s16583_s0 + $0xf74] sm:$0xff]  }
 0x265   :  { %5589 = vst.msk [vmem:[#allocation2 + $0x11e0] sm:$0xff] %vm16_vm0, %v11364_v55  ;;  %5590 = vst.msk [vmem:[#allocation2 + $0x11e8] sm:$0xff] %vm16_vm0, %v11365_v56  ;;  %v11426_v54 = vld [vmem:[%s16583_s0 + $0xf7c] ss:$0 sps:$4 sm:$0xff]   ;;  %v11427_v55 = vld [vmem:[%s16583_s0 + $0xf80] ss:$0 sps:$4 sm:$0xff]  }
 0x266   :  { %5592 = vst.msk [vmem:[#allocation2 + $0x11f8] sm:$0xf0] %vm5030_vm1, %v11367_v58  ;;  %5597 = vst.msk [vmem:[#allocation2 + $0x1220] sm:$0xf0] %vm5030_vm1, %v11372_v63  ;;  %v11428_v56 = vld [vmem:[%s16583_s0 + $0xf84] sm:$0xff]   ;;  %v11429_v57 = vld [vmem:[%s16583_s0 + $0xf8c] sm:$0xff]  }
 0x267   :  { %5593 = vst.msk [vmem:[#allocation2 + $0x1200] sm:$0xff] %vm16_vm0, %v11368_v59  ;;  %5594 = vst.msk [vmem:[#allocation2 + $0x1208] sm:$0xff] %vm16_vm0, %v11369_v60  ;;  %v11430_v58 = vld [vmem:[%s16583_s0 + $0xf94] sm:$0xff]   ;;  %v11431_v59 = vld [vmem:[%s16583_s0 + $0xf9c] ss:$0 sps:$4 sm:$0xff]  }
 0x268   :  { %5595 = vst.msk [vmem:[#allocation2 + $0x1210] sm:$0xff] %vm16_vm0, %v11370_v61  ;;  %5598 = vst.msk [vmem:[#allocation2 + $0x1228] sm:$0xff] %vm16_vm0, %v11373_v1  ;;  %v11432_v60 = vld [vmem:[%s16583_s0 + $0xfa0] ss:$0 sps:$4 sm:$0xff]   ;;  %v11433_v61 = vld [vmem:[%s16583_s0 + $0xfa4] sm:$0xff]  }
 0x269   :  { %5596 = vst.msk [vmem:[#allocation2 + $0x1218] sm:$0xf] %vm5035_vm2, %v11371_v62  ;;  %5601 = vst.msk [vmem:[#allocation2 + $0x1240] sm:$0xf] %vm5035_vm2, %v11376_v4  ;;  %v11434_v62 = vld [vmem:[%s16583_s0 + $0xfac] sm:$0xff]   ;;  %v11435_v63 = vld [vmem:[%s16583_s0 + $0xfb4] sm:$0xff]  }
 0x26a   :  { %5599 = vst.msk [vmem:[#allocation2 + $0x1230] sm:$0xff] %vm16_vm0, %v11374_v2  ;;  %5600 = vst.msk [vmem:[#allocation2 + $0x1238] sm:$0xff] %vm16_vm0, %v11375_v3  ;;  %v11436_v1 = vld [vmem:[%s16583_s0 + $0xfbc] ss:$0 sps:$4 sm:$0xff]   ;;  %v11437_v2 = vld [vmem:[%s16583_s0 + $0xfc0] ss:$0 sps:$4 sm:$0xff]  }
 0x26b   :  { %5602 = vst.msk [vmem:[#allocation2 + $0x1248] sm:$0xf0] %vm5030_vm1, %v11377_v5  ;;  %5607 = vst.msk [vmem:[#allocation2 + $0x1270] sm:$0xf0] %vm5030_vm1, %v11382_v10  ;;  %v11438_v3 = vld [vmem:[%s16583_s0 + $0xfc4] sm:$0xff]   ;;  %v11439_v4 = vld [vmem:[%s16583_s0 + $0xfcc] sm:$0xff]  }
 0x26c   :  { %5603 = vst.msk [vmem:[#allocation2 + $0x1250] sm:$0xff] %vm16_vm0, %v11378_v6  ;;  %5604 = vst.msk [vmem:[#allocation2 + $0x1258] sm:$0xff] %vm16_vm0, %v11379_v7  ;;  %v11440_v5 = vld [vmem:[%s16583_s0 + $0xfd4] sm:$0xff]   ;;  %v11441_v6 = vld [vmem:[%s16583_s0 + $0xfdc] ss:$0 sps:$4 sm:$0xff]  }
 0x26d   :  { %5605 = vst.msk [vmem:[#allocation2 + $0x1260] sm:$0xff] %vm16_vm0, %v11380_v8  ;;  %5608 = vst.msk [vmem:[#allocation2 + $0x1278] sm:$0xff] %vm16_vm0, %v11383_v11  ;;  %v11442_v7 = vld [vmem:[%s16583_s0 + $0xfe0] ss:$0 sps:$4 sm:$0xff]   ;;  %v11443_v8 = vld [vmem:[%s16583_s0 + $0xfe4] sm:$0xff]  }
 0x26e   :  { %5606 = vst.msk [vmem:[#allocation2 + $0x1268] sm:$0xf] %vm5035_vm2, %v11381_v9  ;;  %5611 = vst.msk [vmem:[#allocation2 + $0x1290] sm:$0xf] %vm5035_vm2, %v11386_v14  ;;  %v11444_v9 = vld [vmem:[%s16583_s0 + $0xfec] sm:$0xff]   ;;  %v11445_v10 = vld [vmem:[%s16583_s0 + $0xff4] sm:$0xff]  }
 0x26f   :  { %5609 = vst.msk [vmem:[#allocation2 + $0x1280] sm:$0xff] %vm16_vm0, %v11384_v12  ;;  %5610 = vst.msk [vmem:[#allocation2 + $0x1288] sm:$0xff] %vm16_vm0, %v11385_v13  ;;  %v11446_v11 = vld [vmem:[%s16583_s0 + $0xffc] ss:$0 sps:$4 sm:$0xff]  }
 0x270   :  { %5612 = vst.msk [vmem:[#allocation2 + $0x1298] sm:$0xf0] %vm5030_vm1, %v11387_v15  ;;  %5617 = vst.msk [vmem:[#allocation2 + $0x12c0] sm:$0xf0] %vm5030_vm1, %v11392_v20 }
 0x271   :  { %5613 = vst.msk [vmem:[#allocation2 + $0x12a0] sm:$0xff] %vm16_vm0, %v11388_v16  ;;  %5614 = vst.msk [vmem:[#allocation2 + $0x12a8] sm:$0xff] %vm16_vm0, %v11389_v17 }
 0x272   :  { %5615 = vst.msk [vmem:[#allocation2 + $0x12b0] sm:$0xff] %vm16_vm0, %v11390_v18  ;;  %5618 = vst.msk [vmem:[#allocation2 + $0x12c8] sm:$0xff] %vm16_vm0, %v11393_v21 }
 0x273   :  { %5616 = vst.msk [vmem:[#allocation2 + $0x12b8] sm:$0xf] %vm5035_vm2, %v11391_v19  ;;  %5621 = vst.msk [vmem:[#allocation2 + $0x12e0] sm:$0xf] %vm5035_vm2, %v11396_v24 }
 0x274   :  { %5619 = vst.msk [vmem:[#allocation2 + $0x12d0] sm:$0xff] %vm16_vm0, %v11394_v22  ;;  %5620 = vst.msk [vmem:[#allocation2 + $0x12d8] sm:$0xff] %vm16_vm0, %v11395_v23 }
 0x275   :  { %5622 = vst.msk [vmem:[#allocation2 + $0x12e8] sm:$0xf0] %vm5030_vm1, %v11397_v25  ;;  %5627 = vst.msk [vmem:[#allocation2 + $0x1310] sm:$0xf0] %vm5030_vm1, %v11402_v30 }
 0x276   :  { %5623 = vst.msk [vmem:[#allocation2 + $0x12f0] sm:$0xff] %vm16_vm0, %v11398_v26  ;;  %5624 = vst.msk [vmem:[#allocation2 + $0x12f8] sm:$0xff] %vm16_vm0, %v11399_v27 }
 0x277   :  { %5625 = vst.msk [vmem:[#allocation2 + $0x1300] sm:$0xff] %vm16_vm0, %v11400_v28  ;;  %5628 = vst.msk [vmem:[#allocation2 + $0x1318] sm:$0xff] %vm16_vm0, %v11403_v31 }
 0x278   :  { %5626 = vst.msk [vmem:[#allocation2 + $0x1308] sm:$0xf] %vm5035_vm2, %v11401_v29  ;;  %5631 = vst.msk [vmem:[#allocation2 + $0x1330] sm:$0xf] %vm5035_vm2, %v11406_v34 }
 0x279   :  { %5629 = vst.msk [vmem:[#allocation2 + $0x1320] sm:$0xff] %vm16_vm0, %v11404_v32  ;;  %5630 = vst.msk [vmem:[#allocation2 + $0x1328] sm:$0xff] %vm16_vm0, %v11405_v33 }
 0x27a   :  { %5632 = vst.msk [vmem:[#allocation2 + $0x1338] sm:$0xf0] %vm5030_vm1, %v11407_v35  ;;  %5637 = vst.msk [vmem:[#allocation2 + $0x1360] sm:$0xf0] %vm5030_vm1, %v11412_v40 }
 0x27b   :  { %5633 = vst.msk [vmem:[#allocation2 + $0x1340] sm:$0xff] %vm16_vm0, %v11408_v36  ;;  %5634 = vst.msk [vmem:[#allocation2 + $0x1348] sm:$0xff] %vm16_vm0, %v11409_v37 }
 0x27c   :  { %5635 = vst.msk [vmem:[#allocation2 + $0x1350] sm:$0xff] %vm16_vm0, %v11410_v38  ;;  %5638 = vst.msk [vmem:[#allocation2 + $0x1368] sm:$0xff] %vm16_vm0, %v11413_v41 }
 0x27d   :  { %5636 = vst.msk [vmem:[#allocation2 + $0x1358] sm:$0xf] %vm5035_vm2, %v11411_v39  ;;  %5641 = vst.msk [vmem:[#allocation2 + $0x1380] sm:$0xf] %vm5035_vm2, %v11416_v44 }
 0x27e   :  { %5639 = vst.msk [vmem:[#allocation2 + $0x1370] sm:$0xff] %vm16_vm0, %v11414_v42  ;;  %5640 = vst.msk [vmem:[#allocation2 + $0x1378] sm:$0xff] %vm16_vm0, %v11415_v43 }
 0x27f   :  { %5642 = vst.msk [vmem:[#allocation2 + $0x1388] sm:$0xf0] %vm5030_vm1, %v11417_v45  ;;  %5647 = vst.msk [vmem:[#allocation2 + $0x13b0] sm:$0xf0] %vm5030_vm1, %v11422_v50 }
 0x280   :  { %5643 = vst.msk [vmem:[#allocation2 + $0x1390] sm:$0xff] %vm16_vm0, %v11418_v46  ;;  %5644 = vst.msk [vmem:[#allocation2 + $0x1398] sm:$0xff] %vm16_vm0, %v11419_v47 }
 0x281   :  { %5645 = vst.msk [vmem:[#allocation2 + $0x13a0] sm:$0xff] %vm16_vm0, %v11420_v48  ;;  %5648 = vst.msk [vmem:[#allocation2 + $0x13b8] sm:$0xff] %vm16_vm0, %v11423_v51 }
 0x282   :  { %5646 = vst.msk [vmem:[#allocation2 + $0x13a8] sm:$0xf] %vm5035_vm2, %v11421_v49  ;;  %5651 = vst.msk [vmem:[#allocation2 + $0x13d0] sm:$0xf] %vm5035_vm2, %v11426_v54 }
 0x283   :  { %5649 = vst.msk [vmem:[#allocation2 + $0x13c0] sm:$0xff] %vm16_vm0, %v11424_v52  ;;  %5650 = vst.msk [vmem:[#allocation2 + $0x13c8] sm:$0xff] %vm16_vm0, %v11425_v53 }
 0x284   :  { %5652 = vst.msk [vmem:[#allocation2 + $0x13d8] sm:$0xf0] %vm5030_vm1, %v11427_v55  ;;  %5657 = vst.msk [vmem:[#allocation2 + $0x1400] sm:$0xf0] %vm5030_vm1, %v11432_v60 }
 0x285   :  { %5653 = vst.msk [vmem:[#allocation2 + $0x13e0] sm:$0xff] %vm16_vm0, %v11428_v56  ;;  %5654 = vst.msk [vmem:[#allocation2 + $0x13e8] sm:$0xff] %vm16_vm0, %v11429_v57 }
 0x286   :  { %5655 = vst.msk [vmem:[#allocation2 + $0x13f0] sm:$0xff] %vm16_vm0, %v11430_v58  ;;  %5658 = vst.msk [vmem:[#allocation2 + $0x1408] sm:$0xff] %vm16_vm0, %v11433_v61 }
 0x287   :  { %5656 = vst.msk [vmem:[#allocation2 + $0x13f8] sm:$0xf] %vm5035_vm2, %v11431_v59  ;;  %5661 = vst.msk [vmem:[#allocation2 + $0x1420] sm:$0xf] %vm5035_vm2, %v11436_v1 }
 0x288   :  { %5659 = vst.msk [vmem:[#allocation2 + $0x1410] sm:$0xff] %vm16_vm0, %v11434_v62  ;;  %5660 = vst.msk [vmem:[#allocation2 + $0x1418] sm:$0xff] %vm16_vm0, %v11435_v63 }
 0x289   :  { %5662 = vst.msk [vmem:[#allocation2 + $0x1428] sm:$0xf0] %vm5030_vm1, %v11437_v2  ;;  %5667 = vst.msk [vmem:[#allocation2 + $0x1450] sm:$0xf0] %vm5030_vm1, %v11442_v7 }
 0x28a   :  { %5663 = vst.msk [vmem:[#allocation2 + $0x1430] sm:$0xff] %vm16_vm0, %v11438_v3  ;;  %5664 = vst.msk [vmem:[#allocation2 + $0x1438] sm:$0xff] %vm16_vm0, %v11439_v4 }
 0x28b   :  { %5665 = vst.msk [vmem:[#allocation2 + $0x1440] sm:$0xff] %vm16_vm0, %v11440_v5  ;;  %5668 = vst.msk [vmem:[#allocation2 + $0x1458] sm:$0xff] %vm16_vm0, %v11443_v8 }
 0x28c   :  { %5666 = vst.msk [vmem:[#allocation2 + $0x1448] sm:$0xf] %vm5035_vm2, %v11441_v6  ;;  %5671 = vst.msk [vmem:[#allocation2 + $0x1470] sm:$0xf] %vm5035_vm2, %v11446_v11 }
 0x28d   :  { %5669 = vst.msk [vmem:[#allocation2 + $0x1460] sm:$0xff] %vm16_vm0, %v11444_v9  ;;  %5670 = vst.msk [vmem:[#allocation2 + $0x1468] sm:$0xff] %vm16_vm0, %v11445_v10 }
 0x28e LB: > { %vm5935_vm3 = vcmask 1041408   ;;  %v9860_v12 = vld [vmem:[%s16584_s1 + $0x8] sm:$0x3]  ;;  %v5886_v13 = vld [vmem:[%s16584_s1] sm:$0x3]  ;;  %s10001_s12 = smul.u32 80, %s11483_s6  ;;  %s11483_s6 = sphi %s15394_s6, %s5678_s6  }
 0x28f   : > { %10789 = vmatprep.subr.msk.bf16.mxu0 %vm5935_vm3, %v9860_v12  ;;  %v15407_v14 = vsel %vm5935_vm3, %v9860_v12, 0  ;;  %10785 = vmatprep.subr.msk.bf16.mxu1 %vm5935_vm3, %v5886_v13  ;;  %v5937_v15 = vsel %vm5935_vm3, %v5886_v13, 0  ;;  %v9787_v16 = vld [vmem:[%s16584_s1 + $0x2] sm:$0x3]  ;;  %v9877_v17 = vld [vmem:[%s16584_s1 + $0xa] sm:$0x3] }
 0x290   : > { %16663 = vst [vmem:[#allocation7_spill] sm:$0xff] %v15407_v14  ;;  %10326 = vmatpush3.bf16.msra.mxu0 %v15407_v14  ;;  %10190 = vmatpush3.bf16.msra.mxu1 %v5937_v15  ;;  %vm6152_vm4 = vcmask 1043456   ;;  %s15421_s14 = scalar_lea.vmem [#allocation2], %s10001_s12  ;;  %vm5709_vm5 = vsmask.f32 4352  ;;  %v15433_v21 = vsel %vm5935_vm3, %v9787_v16, 0 }
 0x291   : > { %10786 = vmatprep.subr.msk.bf16.mxu1 %vm5935_vm3, %v9787_v16  ;;  %10791 = vmatprep.subr.msk.bf16.mxu0 %vm5935_vm3, %v9877_v17  ;;  %v7633_v27 = vsel %vm5935_vm3, %v9877_v17, 0  ;;  %v15488_v49 = vld [vmem:[%s16584_s1 + $0xc] sm:$0x3]  ;;  %v15540_v15 = vld [vmem:[%s16584_s1 + $0x4] sm:$0x3]  ;;  %s10035_s27 = sshll.u32 %s11483_s6, 6 }
 0x292   : > { %vm6435_vm6 = vsmask.f32 3328  ;;  %vm9061_vm7 = vcmask 519168   ;;  %s16471_s28 = scalar_lea.vmem [#allocation3], %s10035_s27  ;;  %s5678_s6 = sadd.s32 1, %s11483_s6  }
 0x293   : > { %p5675_p0 = scmp.ge.s32.totalorder %s5678_s6, 32  }
 0x294   : > { %v15424_v18 = vld [vmem:[%s15421_s14 + $0x28] sm:$0xff]  ;;  %v15427_v19 = vld [vmem:[%s15421_s14 + $0x30] sm:$0xff]  ;;  %v15430_v20 = vld [vmem:[%s15421_s14 + $0x38] sm:$0xff]  ;;  %s11486_s29 = smov (%p5675_p0), [#allocation3]  }
 0x295   : > { %v6783_v22 = vshrl.u32 %v15424_v18, 16  ;;  %v6786_v23 = vshll.u32 %v15424_v18, 16  ;;  %v6791_v24 = vshrl.u32 %v15427_v19, 16  ;;  %v15439_v25 = vld [vmem:[%s15421_s14] sm:$0xff]  ;;  %v15442_v26 = vld [vmem:[%s15421_s14 + $0x8] sm:$0xff]  ;;  %v6794_v28 = vshll.u32 %v15427_v19, 16 }
 0x296   : > { %v7224_v29 = vrot.slane %v15424_v18, 4  ;;  %v7225_v30 = vrot.slane %v15427_v19, 4  ;;  %v6800_v31 = vshrl.u32 %v15430_v20, 16  ;;  %v15450_v32 = vld [vmem:[%s15421_s14 + $0x10] sm:$0xff]  ;;  %v7227_v33 = vrot.slane %v15430_v20, 4  ;;  %v15457_v37 = vld [vmem:[%s15421_s14 + $0x40] sm:$0xff] }
 0x297   : > { %v16606_v34 = vshrl.u32 %v15439_v25, 16  ;;  %v16604_v35 = vshll.u32 %v15439_v25, 16  ;;  %v16602_v36 = vshrl.u32 %v15442_v26, 16  ;;  %v16601_v39 = vshll.u32 %v15442_v26, 16  ;;  %v15466_v42 = vld [vmem:[%s15421_s14 + $0x48] sm:$0xff]  ;;  %v15469_v43 = vld [vmem:[%s15421_s14 + $0x18] sm:$0xff] }
 0x298   : > { %v15460_v38 = vsel %vm6152_vm4, %v7224_v29, %v7225_v30  ;;  %v16600_v40 = vshrl.u32 %v15450_v32, 16  ;;  %v16599_v41 = vshll.u32 %v15450_v32, 16  ;;  %v15474_v44 = vsel %vm6152_vm4, %v7225_v30, %v7227_v33  ;;  %v15483_v48 = vld [vmem:[%s15421_s14 + $0x20] sm:$0xff]  ;;  %v15503_v58 = vld [vmem:[%s15421_s14 + $0x50] sm:$0xff]  ;;  %v15510_v63 = vld [vmem:[%s15421_s14 + $0x58] sm:$0xff]  ;;  %s9099_s30 = sshll.u32 (%p5675_p0), %s11486_s29, 4  ;;  %s9100_s30 = int_to_ptr.vmem [resolvable:$true] %s9099_s30 }
 0x299   : > { %10327 = vmatprep.mubr.msk.bf16.mxu0 %vm16_vm0, %v15460_v38  ;;  %v5713_v45 = vrot.slane %v16606_v34, 3  ;;  %v5716_v46 = vrot.slane %v16604_v35, 4  ;;  %v5721_v47 = vrot.slane %v16602_v36, 3  ;;  %v5724_v50 = vrot.slane %v16601_v39, 4  ;;  %v15535_v13 = vld [vmem:[%s15421_s14 + $0x60] sm:$0xff]  ;;  %v15552_v30 = vld [vmem:[%s15421_s14 + $0x68] sm:$0xff]  ;;  %p11458_p2 = scmp.lt.s32.totalorder (%p5675_p0), %s9100_s30, %s9100_s30 }
 0x29a   : > { %10328 = vmatmul.mubr.msk.bf16.vlgmr.msra.gmra.mrb[0].mxu0 %vm16_vm0, %v15474_v44  ;;  %v5730_v51 = vrot.slane %v16600_v40, 3  ;;  %v5733_v52 = vrot.slane %v16599_v41, 4  ;;  %v7229_v53 = vrot.slane %v15457_v37, 4  ;;  %v7231_v55 = vrot.slane %v15466_v42, 4  ;;  %v15760_v0 = vld [vmem:[%s15421_s14 + $0xa98] sm:$0xff]  ;;  %s11453_s4 = scalar_lea.vmem (%p5675_p0), %s9100_s30, 65536 }
 0x29b   : > { %v5717_v54 = vor.u32 %v5716_v46, %v5713_v45  ;;  %10360 = vmatpush3.bf16.msra.mxu0 %v7633_v27  ;;  %v16598_v56 = vshrl.u32 %v15469_v43, 16  ;;  %v16597_v57 = vshll.u32 %v15469_v43, 16  ;;  %v5725_v59 = vor.u32 %v5724_v50, %v5721_v47  ;;  %p11454_p1 = scmp.ne.s32.totalorder (%p5675_p0), %s9100_s30, %s11453_s4  ;;  %p11459_p3 = scmp.lt.s32.totalorder (%p5675_p0), %s11453_s4, %s11453_s4 }
 0x29c   : > { %v5734_v60 = vor.u32 %v5733_v52, %v5730_v51  ;;  %v15506_v61 = vsel %vm6152_vm4, %v7227_v33, %v7229_v53  ;;  %v16596_v62 = vshrl.u32 %v15483_v48, 16  ;;  %10792 = vmatprep.subr.msk.bf16.mxu0 %vm5935_vm3, %v15488_v49  ;;  %v6803_v1 = vshll.u32 %v15430_v20, 16 }
 0x29d   : > { %10331 = vmatprep.mubr.msk.bf16.mxu0 %vm16_vm0, %v15506_v61  ;;  %v5739_v2 = vrot.slane %v16598_v56, 3  ;;  %v5742_v3 = vrot.slane %v16597_v57, 4  ;;  %v16595_v4 = vshll.u32 %v15483_v48, 16  ;;  %v5726_v5 = vsel %vm5709_vm5, %v5717_v54, %v5725_v59  ;;  %v15700_v57 = vld [vmem:[%s16584_s1 + $0xe] sm:$0x3]  ;;  %p11460_p4 = por (%p5675_p0), %p11459_p3, %p11458_p2 }
 0x29e   : > { %v5735_v6 = vsel %vm5709_vm5, %v5725_v59, %v5734_v60  ;;  %v5748_v7 = vrot.slane %v16596_v62, 3  ;;  %v7233_v8 = vrot.slane %v15503_v58, 4  ;;  %10191 = vmatprep.mubr.msk.bf16.mxu1 %vm16_vm0, %v5726_v5  ;;  %v15529_v9 = vsel %vm6152_vm4, %v7229_v53, %v7231_v55 }
 0x29f   : > { %v5743_v10 = vor.u32 %v5742_v3, %v5739_v2  ;;  %v5751_v11 = vrot.slane %v16595_v4, 4  ;;  %v7234_v12 = vrot.slane %v15510_v63, 4  ;;  %10192 = vmatmul.mubr.msk.bf16.vlgmr.msra.gmra.mrb[0].mxu1 %vm16_vm0, %v5735_v6  ;;  %v5757_v16 = vrot.slane %v6783_v22, 3  ;;  %p11461_p5 = pnand (%p5675_p0), %p11460_p4, %p11454_p1 }
 0x2a0   : > { %v5760_v17 = vrot.slane %v6786_v23, 4  ;;  %v5765_v27 = vrot.slane %v6791_v24, 3  ;;  %v5768_v29 = vrot.slane %v6794_v28, 4  ;;  %10224 = vmatpush3.bf16.msra.mxu1 %v15433_v21  ;;  %v7236_v47 = vrot.slane %v15535_v13, 4 }
 0x2a1   : > { %v5744_v33 = vsel %vm5709_vm5, %v5734_v60, %v5743_v10  ;;  %v5752_v45 = vor.u32 %v5751_v11, %v5748_v7  ;;  %v7235_v46 = vsel %vm6152_vm4, %v7233_v8, %v7234_v12  ;;  %v5774_v21 = vrot.slane %v6800_v31, 3  ;;  %10787 = vmatprep.subr.msk.bf16.mxu1 %vm5935_vm3, %v15540_v15 }
 0x2a2   : > { %10332 = vmatmul.mubr.msk.bf16.gmra.mrb[4].mxu0 %vm16_vm0, %v15529_v9  ;;  %10195 = vmatprep.mubr.msk.bf16.mxu1 %vm16_vm0, %v5744_v33  ;;  %v5761_v50 = vor.u32 %v5760_v17, %v5757_v16  ;;  %v5769_v51 = vor.u32 %v5768_v29, %v5765_v27  ;;  %v5777_v52 = vrot.slane %v6803_v1, 4  ;;  %v7238_v53 = vrot.slane %v15552_v30, 4  ;;  %v15580_v16 = vld [vmem:[%s15421_s14 + $0xa50] sm:$0xff] }
 0x2a3   : > { %10335 = vmatprep.mubr.msk.bf16.mxu0 %vm16_vm0, %v7235_v46  ;;  %v5781_v54 = vshrl.u32 %v15457_v37, 16  ;;  %v5784_v55 = vshll.u32 %v15457_v37, 16  ;;  %v5753_v59 = vsel %vm5709_vm5, %v5743_v10, %v5752_v45  ;;  %v7237_v2 = vsel %vm6152_vm4, %v7234_v12, %v7236_v47  ;;  %v15583_v37 = vld [vmem:[%s15421_s14 + $0xa58] sm:$0xff]  ;;  %v15587_v10 = vld [vmem:[%s15421_s14 + $0x70] sm:$0xff] }
 0x2a4   : > { %v15574_v3 = vsel %vm5709_vm5, %v5761_v50, %v5769_v51  ;;  %v5778_v6 = vor.u32 %v5777_v52, %v5774_v21  ;;  %v7239_v7 = vsel %vm6152_vm4, %v7236_v47, %v7238_v53  ;;  %v5790_v8 = vshrl.u32 %v15466_v42, 16 }
 0x2a5   : > { %v5783_v60 = vrot.slane %v5781_v54, 3  ;;  %v5786_v5 = vrot.slane %v5784_v55, 4  ;;  %v5793_v11 = vshll.u32 %v15466_v42, 16  ;;  %v7506_v12 = vrot.slane %v6783_v22, 4 }
 0x2a6   : > { %v7507_v17 = vrot.slane %v6786_v23, 5  ;;  %v7509_v27 = vrot.slane %v6791_v24, 4  ;;  %v7510_v42 = vrot.slane %v6794_v28, 5  ;;  %v16594_v33 = vshrl.u32 %v15580_v16, 16  ;;  %v15604_v23 = vld [vmem:[%s15421_s14 + $0xa60] sm:$0xff] }
 0x2a7   : > { %10196 = vmatmul.mubr.msk.bf16.gmra.mrb[4].mxu1 %vm16_vm0, %v5753_v59  ;;  %v5787_v29 = vor.u32 %v5786_v5, %v5783_v60  ;;  %v16591_v22 = vshll.u32 %v15580_v16, 16  ;;  %v16590_v18 = vshrl.u32 %v15583_v37, 16  ;;  %v7240_v19 = vrot.slane %v15587_v10, 4 }
 0x2a8   : > { %10199 = vmatprep.mubr.msk.bf16.mxu1 %vm16_vm0, %v15574_v3  ;;  %v5792_v24 = vrot.slane %v5790_v8, 3  ;;  %v5795_v28 = vrot.slane %v5793_v11, 4  ;;  %v16587_v45 = vshll.u32 %v15583_v37, 16  ;;  %v15610_v46 = vsel %vm5709_vm5, %v5769_v51, %v5778_v6 }
 0x2a9   : > { %16664 = vst [vmem:[#allocation8_spill] sm:$0xff] %v15610_v46  ;;  %v7508_v47 = vor.u32 %v7507_v17, %v7506_v12  ;;  %v7511_v50 = vor.u32 %v7510_v42, %v7509_v27  ;;  %v7513_v21 = vrot.slane %v6800_v31, 4  ;;  %v15615_v52 = vsel %vm5709_vm5, %v5778_v6, %v5787_v29  ;;  %v15631_v17 = vld [vmem:[%s15421_s14 + $0xa68] sm:$0xff] }
 0x2aa   : > { %10336 = vmatmul.mubr.msk.bf16.gmra.mrb[8].mxu0 %vm16_vm0, %v7237_v2  ;;  %16665 = vst [vmem:[#allocation9_spill] sm:$0xff] %v15615_v52  ;;  %v7514_v59 = vrot.slane %v6803_v1, 5  ;;  %v16589_v60 = vshrl.u32 %v15604_v23, 16  ;;  %v16588_v2 = vshll.u32 %v15604_v23, 16  ;;  %v5801_v51 = vrot.slane %v16594_v33, 3 }
 0x2ab   : > { %10339 = vmatprep.mubr.msk.bf16.mxu0 %vm16_vm0, %v7239_v7  ;;  %v5804_v5 = vrot.slane %v16591_v22, 4  ;;  %v5809_v7 = vrot.slane %v16590_v18, 3  ;;  %v5812_v31 = vrot.slane %v16587_v45, 4  ;;  %v7241_v6 = vsel %vm6152_vm4, %v7238_v53, %v7240_v19  ;;  %v15671_v18 = vld [vmem:[%s15421_s14 + $0xa78] sm:$0xff]  ;;  %v15674_v22 = vld [vmem:[%s15421_s14 + $0xa80] sm:$0xff] }
 0x2ac   : > { %v5796_v20 = vor.u32 %v5795_v28, %v5792_v24  ;;  %v7517_v1 = vrot.slane %v5781_v54, 4  ;;  %v7518_v12 = vrot.slane %v5784_v55, 5  ;;  %v15636_v27 = vsel %vm6435_vm6, %v7508_v47, %v7511_v50 }
 0x2ad   : > { %v7515_v42 = vor.u32 %v7514_v59, %v7513_v21  ;;  %v5818_v45 = vrot.slane %v16589_v60, 3  ;;  %v5821_v53 = vrot.slane %v16588_v2, 4  ;;  %v5805_v54 = vor.u32 %v5804_v5, %v5801_v51  ;;  %v15655_v59 = vld [vmem:[%s15421_s14 + $0xa70] sm:$0xff] }
 0x2ae   : > { %v5813_v55 = vor.u32 %v5812_v31, %v5809_v7  ;;  %v16593_v19 = vshrl.u32 %v15631_v17, 16  ;;  %v16592_v24 = vshll.u32 %v15631_v17, 16  ;;  %v15648_v28 = vsel %vm5709_vm5, %v5787_v29, %v5796_v20 }
 0x2af   : > { %10200 = vmatmul.mubr.msk.bf16.gmra.mrb[8].mxu1 %vm16_vm0, %v15610_v46  ;;  %16666 = vst [vmem:[#allocation10_spill] sm:$0xff] %v15648_v28  ;;  %v8079_v47 = vsel %vm5935_vm3, %v15488_v49, 0  ;;  %v7519_v21 = vor.u32 %v7518_v12, %v7517_v1  ;;  %v16614_v51 = vshrl.u32 %v15503_v58, 16  ;;  %v16613_v5 = vshll.u32 %v15503_v58, 16 }
 0x2b0   : > { %10203 = vmatprep.mubr.msk.bf16.mxu1 %vm16_vm0, %v15615_v52  ;;  %v16610_v7 = vshrl.u32 %v15510_v63, 16  ;;  %v16607_v29 = vshll.u32 %v15510_v63, 16  ;;  %v15662_v31 = vsel %vm6435_vm6, %v7511_v50, %v7515_v42  ;;  %v7521_v20 = vrot.slane %v5790_v8, 4 }
 0x2b1   : > { %v7522_v2 = vrot.slane %v5793_v11, 5  ;;  %v5814_v49 = vsel %vm5709_vm5, %v5805_v54, %v5813_v55  ;;  %v5827_v1 = vrot.slane %v16593_v19, 3  ;;  %v5830_v12 = vrot.slane %v16592_v24, 4 }
 0x2b2   : > { %10340 = vmatmul.mubr.msk.bf16.gmra.mrb[12].mxu0 %vm16_vm0, %v7241_v6  ;;  %v5822_v6 = vor.u32 %v5821_v53, %v5818_v45  ;;  %v16603_v60 = vshrl.u32 %v15655_v59, 16  ;;  %v15677_v50 = vsel %vm6435_vm6, %v7515_v42, %v7519_v21  ;;  %v16605_v8 = vshll.u32 %v15655_v59, 16 }
 0x2b3   : > { %10361 = vmatprep.mubr.msk.bf16.mxu0 %vm16_vm0, %v15636_v27  ;;  %v16608_v11 = vshrl.u32 %v15535_v13, 16  ;;  %v16609_v45 = vshll.u32 %v15535_v13, 16  ;;  %v7525_v53 = vrot.slane %v16614_v51, 4  ;;  %v7526_v54 = vrot.slane %v16613_v5, 5 }
 0x2b4   : > { %v7528_v24 = vrot.slane %v16610_v7, 4  ;;  %v7529_v42 = vrot.slane %v16607_v29, 5  ;;  %v5843_v19 = vshrl.u32 %v15671_v18, 16  ;;  %v5846_v33 = vshll.u32 %v15671_v18, 16  ;;  %v15721_v29 = vld [vmem:[%s15421_s14 + $0xa88] sm:$0xff] }
 0x2b5   : > { %v5851_v4 = vshrl.u32 %v15674_v22, 16  ;;  %v5854_v62 = vshll.u32 %v15674_v22, 16  ;;  %v5823_v56 = vsel %vm5709_vm5, %v5813_v55, %v5822_v6  ;;  %v7523_v41 = vor.u32 %v7522_v2, %v7521_v20 }
 0x2b6   : > { %v5836_v40 = vrot.slane %v16603_v60, 3  ;;  %v5839_v39 = vrot.slane %v16605_v8, 4  ;;  %v7532_v36 = vrot.slane %v16608_v11, 4  ;;  %v7533_v55 = vrot.slane %v16609_v45, 5 }
 0x2b7   : > { %10204 = vmatmul.mubr.msk.bf16.gmra.mrb[12].mxu1 %vm16_vm0, %v15648_v28  ;;  %v7527_v2 = vor.u32 %v7526_v54, %v7525_v53  ;;  %v7530_v20 = vor.u32 %v7529_v42, %v7528_v24  ;;  %v5848_v60 = vrot.slane %v5846_v33, 4  ;;  %v5853_v35 = vrot.slane %v5851_v4, 3  ;;  %v15727_v24 = vld [vmem:[%s15421_s14 + $0xa90] sm:$0xff] }
 0x2b8   : > { %10207 = vmatprep.mubr.msk.bf16.mxu1 %vm16_vm0, %v5814_v49  ;;  %v5831_v49 = vor.u32 %v5830_v12, %v5827_v1  ;;  %v16611_v1 = vshll.u32 %v15552_v30, 16  ;;  %v5845_v12 = vrot.slane %v5843_v19, 3  ;;  %v5856_v8 = vrot.slane %v5854_v62, 4 }
 0x2b9   : > { %v15724_v11 = vsel %vm6435_vm6, %v7519_v21, %v7523_v41  ;;  %v5840_v53 = vor.u32 %v5839_v39, %v5836_v40  ;;  %v15731_v54 = vsel %vm6435_vm6, %v7527_v2, %v7530_v20  ;;  %v7534_v42 = vor.u32 %v7533_v55, %v7532_v36 }
 0x2ba   : > { %10362 = vmatmul.mubr.msk.bf16.vlgmr.msra.gmra.mrb[0].mxu0 %vm16_vm0, %v15662_v31  ;;  %v5832_v34 = vsel %vm5709_vm5, %v5822_v6, %v5831_v49  ;;  %16667 = vst [vmem:[#allocation11_spill] sm:$0xff] %v15731_v54  ;;  %v7537_v6 = vrot.slane %v16611_v1, 5  ;;  %v5849_v7 = vor.u32 %v5848_v60, %v5845_v12  ;;  %v5857_v41 = vor.u32 %v5856_v8, %v5853_v35 }
 0x2bb   : > { %10394 = vmatpush3.bf16.msra.mxu0 %v8079_v47  ;;  %10365 = vmatprep.mubr.msk.bf16.mxu0 %vm16_vm0, %v15677_v50  ;;  %v16612_v47 = vshrl.u32 %v15552_v30, 16  ;;  %v5860_v39 = vshrl.u32 %v15721_v29, 16  ;;  %v5863_v40 = vshll.u32 %v15721_v29, 16  ;;  %v16616_v36 = vshrl.u32 %v15587_v10, 16 }
 0x2bc   : > { %10793 = vmatprep.subr.msk.bf16.mxu0 %vm5935_vm3, %v15700_v57  ;;  %v5869_v21 = vshrl.u32 %v15727_v24, 16  ;;  %v5872_v55 = vshll.u32 %v15727_v24, 16  ;;  %v15750_v60 = vsel %vm6435_vm6, %v7530_v20, %v7534_v42  ;;  %v15753_v8 = vsel %vm5709_vm5, %v5849_v7, %v5857_v41 }
 0x2bd   : > { %v7536_v45 = vrot.slane %v16612_v47, 4  ;;  %16668 = vst [vmem:[#allocation12_spill] sm:$0xff] %v15750_v60  ;;  %16669 = vst [vmem:[#allocation13_spill] sm:$0xff] %v15753_v8  ;;  %v5862_v2 = vrot.slane %v5860_v39, 3  ;;  %v5865_v12 = vrot.slane %v5863_v40, 4  ;;  %v7540_v1 = vrot.slane %v16616_v36, 4 }
 0x2be   : > { %v5871_v5 = vrot.slane %v5869_v21, 3  ;;  %v5874_v51 = vrot.slane %v5872_v55, 4  ;;  %v16620_v20 = vrot.slane %v15450_v32, 4  ;;  %v7548_v36 = vrot.slane %v5854_v62, 5 }
 0x2bf   : > { %10208 = vmatmul.mubr.msk.bf16.gmra.mrb[16].mxu1 %vm16_vm0, %v5823_v56  ;;  %v16618_v56 = vshll.u32 %v15587_v10, 16  ;;  %v7538_v35 = vor.u32 %v7537_v6, %v7536_v45  ;;  %v7545_v45 = vrot.slane %v5846_v33, 5  ;;  %v7547_v6 = vrot.slane %v5851_v4, 4 }
 0x2c0   : > { %10211 = vmatprep.mubr.msk.bf16.mxu1 %vm16_vm0, %v5832_v34  ;;  %v5841_v34 = vsel %vm5709_vm5, %v5831_v49, %v5840_v53  ;;  %v7544_v49 = vrot.slane %v5843_v19, 4  ;;  %v6158_v53 = vrot.slane %v15469_v43, 4  ;;  %v5878_v19 = vshrl.u32 %v15760_v0, 16 }
 0x2c1   : > { %v7541_v47 = vrot.slane %v16618_v56, 5  ;;  %v15766_v7 = vsel %vm6435_vm6, %v7534_v42, %v7538_v35  ;;  %v5866_v56 = vor.u32 %v5865_v12, %v5862_v2  ;;  %v5881_v33 = vshll.u32 %v15760_v0, 16 }
 0x2c2   : > { %10366 = vmatmul.mubr.msk.bf16.gmra.mrb[4].mxu0 %vm16_vm0, %v15724_v11  ;;  %16670 = vst [vmem:[#allocation14_spill] sm:$0xff] %v15766_v7  ;;  %v15776_v28 = vsel %vm6152_vm4, %v16620_v20, %v6158_v53  ;;  %v5875_v4 = vor.u32 %v5874_v51, %v5871_v5  ;;  %v7549_v2 = vor.u32 %v7548_v36, %v7547_v6  ;;  %v5880_v20 = vrot.slane %v5878_v19, 3 }
 0x2c3   : > { %10369 = vmatprep.mubr.msk.bf16.mxu0 %vm16_vm0, %v15731_v54  ;;  %v6160_v54 = vrot.slane %v15483_v48, 4  ;;  %v7542_v42 = vor.u32 %v7541_v47, %v7540_v1  ;;  %v15786_v12 = vsel %vm5709_vm5, %v5857_v41, %v5866_v56  ;;  %v7551_v5 = vrot.slane %v5860_v39, 4  ;;  %v15800_v41 = vld [vmem:[%s15421_s14 + $0xaa0] sm:$0xff] }
 0x2c4   : > { %16671 = vst [vmem:[#allocation15_spill] sm:$0xff] %v15786_v12  ;;  %v15789_v52 = vsel %vm5709_vm5, %v5866_v56, %v5875_v4  ;;  %v7555_v1 = vrot.slane %v5869_v21, 4  ;;  %v7556_v36 = vrot.slane %v5872_v55, 5  ;;  %v6153_v39 = vrot.slane %v15439_v25, 4 }
 0x2c5   : > { %v15781_v62 = vsel %vm6152_vm4, %v6158_v53, %v6160_v54  ;;  %16672 = vst [vmem:[#allocation16_spill] sm:$0xff] %v15789_v52  ;;  %v15792_v51 = vsel %vm6435_vm6, %v7538_v35, %v7542_v42  ;;  %v7552_v54 = vrot.slane %v5863_v40, 5  ;;  %v6154_v40 = vrot.slane %v15442_v26, 4 }
 0x2c6   : > { %16673 = vst [vmem:[#allocation17_spill] sm:$0xff] %v15792_v51  ;;  %v6171_v35 = vrot.slane %v15580_v16, 4  ;;  %v6172_v21 = vrot.slane %v15583_v37, 4  ;;  %v7557_v53 = vor.u32 %v7556_v36, %v7555_v1  ;;  %v7559_v1 = vrot.slane %v5878_v19, 4 }
 0x2c7   : > { %10212 = vmatmul.mubr.msk.bf16.gmra.mrb[20].mxu1 %vm16_vm0, %v5841_v34  ;;  %v7546_v34 = vor.u32 %v7545_v45, %v7544_v49  ;;  %v15805_v49 = vld [vmem:[%s15421_s14 + $0xaa8] sm:$0xff]  ;;  %v7553_v55 = vor.u32 %v7552_v54, %v7551_v5  ;;  %v16626_v45 = vshrl.u32 %v15800_v41, 16  ;;  %v6176_v54 = vrot.slane %v15631_v17, 4 }
 0x2c8   : > { %10215 = vmatprep.mubr.msk.bf16.mxu1 %vm16_vm0, %v15753_v8  ;;  %v5883_v8 = vrot.slane %v5881_v33, 4  ;;  %v7560_v36 = vrot.slane %v5881_v33, 5  ;;  %v6178_v6 = vrot.slane %v15655_v59, 4  ;;  %v16676_v33 = vshrl.u32 %v15805_v49, 16 }
 0x2c9   : > { %v15797_v47 = vsel %vm6435_vm6, %v7546_v34, %v7549_v2  ;;  %v15821_v34 = vsel %vm6152_vm4, %v6171_v35, %v6172_v21  ;;  %v15833_v42 = vsel %vm6435_vm6, %v7549_v2, %v7553_v55  ;;  %v7563_v35 = vrot.slane %v16626_v45, 4 }
 0x2ca   : > { %10370 = vmatmul.mubr.msk.bf16.gmra.mrb[8].mxu0 %vm16_vm0, %v15750_v60  ;;  %v5884_v56 = vor.u32 %v5883_v8, %v5880_v20  ;;  %v6174_v20 = vrot.slane %v15604_v23, 4  ;;  %v6155_v8 = vsel %vm6152_vm4, %v6153_v39, %v6154_v40  ;;  %v15845_v19 = vsel %vm6435_vm6, %v7553_v55, %v7557_v53 }
 0x2cb   : > { %10373 = vmatprep.mubr.msk.bf16.mxu0 %vm16_vm0, %v15766_v7  ;;  %v7566_v39 = vrot.slane %v16676_v33, 4  ;;  %v16677_v2 = vshll.u32 %v15805_v49, 16  ;;  %v15855_v45 = vsel %vm6152_vm4, %v6176_v54, %v6178_v6  ;;  %v7561_v55 = vor.u32 %v7560_v36, %v7559_v1 }
 0x2cc   : > { %v15827_v5 = vsel %vm6152_vm4, %v6172_v21, %v6174_v20  ;;  %v15840_v21 = vsel %vm6152_vm4, %v6174_v20, %v6176_v54  ;;  %v15859_v20 = vld [vmem:[%s15421_s14 + $0xab8] sm:$0xff]  ;;  %v6181_v33 = vrot.slane %v15674_v22, 4  ;;  %v16679_v22 = vrot.slane %v15450_v32, 4 }
 0x2cd   : > { %v16629_v7 = vshrl.u32 %v15859_v20, 16  ;;  %v6187_v1 = vrot.slane %v15760_v0, 4  ;;  %v8317_v60 = vrot.slane %v15859_v20, 4  ;;  %v16718_v14 = vshll.u32 %v15439_v25, 16 }
 0x2ce   : > { %v6157_v36 = vsel %vm6152_vm4, %v6154_v40, %v16679_v22  ;;  %v15895_v40 = vld [vmem:[%s16584_s1 + $0x6] sm:$0x3] }
 0x2cf   : > { %10216 = vmatmul.mubr.msk.bf16.gmra.mrb[24].mxu1 %vm16_vm0, %v15786_v12  ;;  %v15852_v12 = vld [vmem:[%s15421_s14 + $0xab0] sm:$0xff] }
 0x2d0   : > { %10219 = vmatprep.mubr.msk.bf16.mxu1 %vm16_vm0, %v15789_v52  ;;  %v7567_v52 = vrot.slane %v16677_v2, 5  ;;  %v16631_v6 = vshll.u32 %v15852_v12, 16 }
 0x2d2   : > { %10374 = vmatmul.mubr.msk.bf16.gmra.mrb[12].mxu0 %vm16_vm0, %v15792_v51  ;;  %v15824_v51 = vsel %vm5709_vm5, %v5875_v4, %v5884_v56  ;;  %v16675_v4 = vshll.u32 %v15800_v41, 16  ;;  %v7568_v54 = vor.u32 %v7567_v52, %v7566_v39  ;;  %v6185_v52 = vrot.slane %v15727_v24, 4 }
 0x2d3   : > { %10377 = vmatprep.mubr.msk.bf16.mxu0 %vm16_vm0, %v15797_v47  ;;  %16674 = vst [vmem:[#allocation18_spill] sm:$0xff] %v15824_v51  ;;  %v7574_v24 = vrot.slane %v16629_v7, 4 }
 0x2d4   : > { %v7564_v56 = vrot.slane %v16675_v4, 5  ;;  %v6180_v4 = vrot.slane %v15671_v18, 4  ;;  %v15914_v22 = vsel %vm6152_vm4, %v6185_v52, %v6187_v1 }
 0x2d5   : > { %16684 = vst [vmem:[#allocation23_spill] sm:$0xff] %v15914_v22 }
 0x2d6   : > { %v7565_v2 = vor.u32 %v7564_v56, %v7563_v35  ;;  %v15873_v18 = vsel %vm6152_vm4, %v6180_v4, %v6181_v33  ;;  %v6563_v56 = vsel %vm5935_vm3, %v15540_v15, 0  ;;  %v7571_v4 = vrot.slane %v16631_v6, 5 }
 0x2d7   : > { %10220 = vmatmul.mubr.msk.bf16.gmra.mrb[28].mxu1 %vm16_vm0, %v15824_v51  ;;  %v16633_v51 = vshrl.u32 %v15852_v12, 16  ;;  %16678 = vst [vmem:[#allocation19_spill] sm:$0xff] %v15873_v18 }
 0x2d8   : > { %10225 = vmatprep.mubr.msk.bf16.mxu1 %vm16_vm0, %v6155_v8  ;;  %v6183_v8 = vrot.slane %v15721_v29, 4  ;;  %v15885_v29 = vsel %vm6435_vm6, %v7557_v53, %v7561_v55  ;;  %v15899_v15 = vsel %vm6435_vm6, %v7565_v2, %v7568_v54  ;;  %v16682_v53 = vshll.u32 %v15859_v20, 16 }
 0x2d9   : > { %v7570_v39 = vrot.slane %v16633_v51, 4  ;;  %16681 = vst [vmem:[#allocation21_spill] sm:$0xff] %v15899_v15  ;;  %v16695_v51 = vshll.u32 %v15552_v30, 16 }
 0x2da   : > { %10378 = vmatmul.mubr.msk.bf16.gmra.mrb[16].mxu0 %vm16_vm0, %v15833_v42  ;;  %v15879_v35 = vsel %vm6152_vm4, %v6181_v33, %v6183_v8  ;;  %v7575_v55 = vrot.slane %v16682_v53, 5  ;;  %v15906_v33 = vld [vmem:[%s15421_s14 + $0xac0] sm:$0xff]  ;;  %v15909_v0 = vsel %vm6152_vm4, %v6183_v8, %v6185_v52  ;;  %v16686_v53 = vshrl.u32 %v15503_v58, 16 }
 0x2db   : > { %10381 = vmatprep.mubr.msk.bf16.mxu0 %vm16_vm0, %v15845_v19  ;;  %16680 = vst [vmem:[#allocation20_spill] sm:$0xff] %v15879_v35  ;;  %16683 = vst [vmem:[#allocation22_spill] sm:$0xff] %v15909_v0  ;;  %v7572_v2 = vor.u32 %v7571_v4, %v7570_v39  ;;  %v16630_v8 = vshrl.u32 %v15906_v33, 16  ;;  %v16688_v4 = vshll.u32 %v15503_v58, 16 }
 0x2dc   : > { %v7855_v7 = vrot.slane %v16686_v53, 3  ;;  %v16691_v53 = vshrl.u32 %v15535_v13, 16 }
 0x2dd   : > { %v7578_v1 = vrot.slane %v16630_v8, 4  ;;  %v16690_v8 = vshll.u32 %v15510_v63, 16 }
 0x2df   : > { %10226 = vmatmul.mubr.msk.bf16.vlgmr.msra.gmra.mrb[0].mxu1 %vm16_vm0, %v6157_v36  ;;  %v16632_v36 = vshll.u32 %v15906_v33, 16  ;;  %v7866_v6 = vrot.slane %v16690_v8, 4  ;;  %v16693_v8 = vshll.u32 %v15535_v13, 16 }
 0x2e0   : > { %10258 = vmatpush3.bf16.msra.mxu1 %v6563_v56  ;;  %10229 = vmatprep.mubr.msk.bf16.mxu1 %vm16_vm0, %v15776_v28  ;;  %v7576_v56 = vor.u32 %v7575_v55, %v7574_v24  ;;  %v15925_v28 = vsel %vm6435_vm6, %v7568_v54, %v7572_v2  ;;  %v7858_v24 = vrot.slane %v16688_v4, 4  ;;  %v16689_v54 = vshrl.u32 %v15510_v63, 16 }
 0x2e1   : > { %10788 = vmatprep.subr.msk.bf16.mxu1 %vm5935_vm3, %v15895_v40  ;;  %16685 = vst [vmem:[#allocation24_spill] sm:$0xff] %v15925_v28  ;;  %v7579_v52 = vrot.slane %v16632_v36, 5  ;;  %v7872_v4 = vrot.slane %v16691_v53, 3 }
 0x2e2   : > { %10382 = vmatmul.mubr.msk.bf16.gmra.mrb[20].mxu0 %vm16_vm0, %v15885_v29  ;;  %v15936_v39 = vsel %vm6435_vm6, %v7572_v2, %v7576_v56  ;;  %v7863_v55 = vrot.slane %v16689_v54, 3  ;;  %v7859_v58 = vor.u32 %v7858_v24, %v7855_v7  ;;  %v7875_v54 = vrot.slane %v16693_v8, 4  ;;  %v16005_v8 = vld [vmem:[%s15421_s14 + $0x88] sm:$0xff] }
 0x2e3   : > { %10385 = vmatprep.mubr.msk.bf16.mxu0 %vm16_vm0, %v15899_v15  ;;  %16687 = vst [vmem:[#allocation25_spill] sm:$0xff] %v15936_v39 }
 0x2e4   : > { %v7867_v2 = vor.u32 %v7866_v6, %v7863_v55  ;;  %v15969_v6 = vld [vmem:[%s15421_s14 + $0x78] sm:$0xff]  ;;  %v7876_v13 = vor.u32 %v7875_v54, %v7872_v4  ;;  %v16698_v55 = vshll.u32 %v15587_v10, 16 }
 0x2e6   : > { %v15964_v7 = vsel %vm5709_vm5, %v7859_v58, %v7867_v2  ;;  %v15987_v58 = vsel %vm5709_vm5, %v7867_v2, %v7876_v13 }
 0x2e7   : > { %10230 = vmatmul.mubr.msk.bf16.gmra.mrb[4].mxu1 %vm16_vm0, %v15781_v62  ;;  %v7580_v62 = vor.u32 %v7579_v52, %v7578_v1  ;;  %16696 = vst [vmem:[#allocation27_spill] sm:$0xff] %v15964_v7  ;;  %v16697_v52 = vshrl.u32 %v15587_v10, 16  ;;  %16699 = vst [vmem:[#allocation28_spill] sm:$0xff] %v15987_v58 }
 0x2e8   : > { %10233 = vmatprep.mubr.msk.bf16.mxu1 %vm16_vm0, %v15460_v38  ;;  %v16694_v38 = vshrl.u32 %v15552_v30, 16 }
 0x2e9   : > { %v15953_v63 = vsel %vm6435_vm6, %v7576_v56, %v7580_v62  ;;  %v15972_v56 = vld [vmem:[%s15421_s14 + $0x80] sm:$0xff]  ;;  %v7890_v24 = vrot.slane %v16697_v52, 3  ;;  %v7893_v62 = vrot.slane %v16698_v55, 4  ;;  %v8306_v55 = vrot.slane %v16005_v8, 4 }
 0x2ea   : > { %10386 = vmatmul.mubr.msk.bf16.gmra.mrb[24].mxu0 %vm16_vm0, %v15925_v28  ;;  %16692 = vst [vmem:[#allocation26_spill] sm:$0xff] %v15953_v63  ;;  %v7881_v36 = vrot.slane %v16694_v38, 3  ;;  %v7884_v28 = vrot.slane %v16695_v51, 4  ;;  %v16637_v51 = vshll.u32 %v15969_v6, 16  ;;  %v16635_v1 = vshll.u32 %v15972_v56, 16 }
 0x2eb   : > { %10389 = vmatprep.mubr.msk.bf16.mxu0 %vm16_vm0, %v15936_v39  ;;  %v7894_v54 = vor.u32 %v7893_v62, %v7890_v24  ;;  %v8303_v38 = vrot.slane %v15969_v6, 4  ;;  %v8304_v52 = vrot.slane %v15972_v56, 4  ;;  %v16029_v62 = vld [vmem:[%s15421_s14 + $0x98] sm:$0xff] }
 0x2ec   : > { %v7885_v30 = vor.u32 %v7884_v28, %v7881_v36  ;;  %v8381_v36 = vsel %vm5935_vm3, %v15700_v57, 0  ;;  %v7902_v4 = vrot.slane %v16637_v51, 4  ;;  %v7910_v2 = vrot.slane %v16635_v1, 4  ;;  %v16010_v57 = vld [vmem:[%s15421_s14 + $0x90] sm:$0xff] }
 0x2ed   : > { %v8310_v51 = vrot.slane %v16029_v62, 4  ;;  %v16706_v39 = vshll.u32 %v16029_v62, 16 }
 0x2ee   : > { %v15992_v28 = vsel %vm5709_vm5, %v7876_v13, %v7885_v30  ;;  %v16040_v13 = vsel %vm5709_vm5, %v7885_v30, %v7894_v54  ;;  %v16703_v30 = vshrl.u32 %v16010_v57, 16 }
 0x2ef   : > { %10234 = vmatmul.mubr.msk.bf16.gmra.mrb[8].mxu1 %vm16_vm0, %v15474_v44  ;;  %v16638_v44 = vshrl.u32 %v15969_v6, 16  ;;  %16700 = vst [vmem:[#allocation29_spill] sm:$0xff] %v15992_v28  ;;  %16701 = vst [vmem:[#allocation30_spill] sm:$0xff] %v16040_v13  ;;  %v7937_v15 = vrot.slane %v16706_v39, 4 }
 0x2f0   : > { %10237 = vmatprep.mubr.msk.bf16.mxu1 %vm16_vm0, %v15506_v61  ;;  %v16636_v61 = vshrl.u32 %v15972_v56, 16  ;;  %v7925_v54 = vrot.slane %v16703_v30, 3 }
 0x2f1   : > { %v7899_v53 = vrot.slane %v16638_v44, 3  ;;  %v16037_v44 = vsel %vm6152_vm4, %v8304_v52, %v8306_v55 }
 0x2f2   : > { %10390 = vmatmul.mubr.msk.bf16.gmra.mrb[28].mxu0 %vm16_vm0, %v15953_v63  ;;  %v7907_v10 = vrot.slane %v16636_v61, 3 }
 0x2f3   : > { %10395 = vmatprep.mubr.msk.bf16.mxu0 %vm16_vm0, %v15964_v7  ;;  %v7903_v1 = vor.u32 %v7902_v4, %v7899_v53  ;;  %v8308_v53 = vrot.slane %v16010_v57, 4 }
 0x2f4   : > { %v7911_v61 = vor.u32 %v7910_v2, %v7907_v10  ;;  %v16702_v10 = vshll.u32 %v16005_v8, 16 }
 0x2f5   : > { %v16063_v24 = vsel %vm6152_vm4, %v8308_v53, %v8310_v51 }
 0x2f6   : > { %v7919_v2 = vrot.slane %v16702_v10, 4 }
 0x2f7   : > { %10238 = vmatmul.mubr.msk.bf16.gmra.mrb[12].mxu1 %vm16_vm0, %v15529_v9  ;;  %v16015_v9 = vld [vmem:[%s16584_s1 + $0x10] sm:$0x3] }
 0x2f8   : > { %10241 = vmatprep.mubr.msk.bf16.mxu1 %vm16_vm0, %v15821_v34  ;;  %v16640_v34 = vshrl.u32 %v16005_v8, 16 }
 0x2fa   : > { %10396 = vmatmul.mubr.msk.bf16.vlgmr.msra.gmra.mrb[0].mxu0 %vm16_vm0, %v15987_v58  ;;  %v7916_v4 = vrot.slane %v16640_v34, 3  ;;  %v16057_v34 = vsel %vm6152_vm4, %v8306_v55, %v8308_v53  ;;  %v8315_v55 = vrot.slane %v15852_v12, 4  ;;  %v16705_v53 = vshrl.u32 %v16029_v62, 16 }
 0x2fb   : > { %10428 = vmatpush3.bf16.msra.mxu0 %v8381_v36  ;;  %10399 = vmatprep.mubr.msk.bf16.mxu0 %vm16_vm0, %v15992_v28  ;;  %v16034_v36 = vsel %vm6152_vm4, %v8303_v38, %v8304_v52  ;;  %v7912_v38 = vsel %vm5709_vm5, %v7903_v1, %v7911_v61  ;;  %v16704_v52 = vshll.u32 %v16010_v57, 16  ;;  %v8313_v1 = vrot.slane %v15805_v49, 4  ;;  %v16091_v28 = vld [vmem:[%s15421_s14 + $0xac8] sm:$0xff] }
 0x2fc   : > { %10794 = vmatprep.subr.msk.bf16.mxu0 %vm5935_vm3, %v16015_v9  ;;  %v7920_v30 = vor.u32 %v7919_v2, %v7916_v4  ;;  %v7934_v10 = vrot.slane %v16705_v53, 3  ;;  %v16707_v4 = vshrl.u32 %v15800_v41, 16  ;;  %v16094_v53 = vld [vmem:[%s15421_s14 + $0xad0] sm:$0xff]  ;;  %v16097_v39 = vsel %vm6152_vm4, %v8315_v55, %v8317_v60 }
 0x2fd   : > { %v7928_v63 = vrot.slane %v16704_v52, 4  ;;  %v16075_v51 = vsel %vm6152_vm4, %v8313_v1, %v8315_v55  ;;  %16710 = vst [vmem:[#allocation31_spill] sm:$0xff] %v16097_v39  ;;  %v8322_v7 = vrot.slane %v16094_v53, 4 }
 0x2fe   : > { %v7943_v2 = vrot.slane %v16707_v4, 3  ;;  %v7938_v55 = vor.u32 %v7937_v15, %v7934_v10  ;;  %v16715_v15 = vshrl.u32 %v15852_v12, 16 }
 0x2ff   : > { %10242 = vmatmul.mubr.msk.bf16.gmra.mrb[16].mxu1 %vm16_vm0, %v15827_v5  ;;  %v8312_v5 = vrot.slane %v15800_v41, 4  ;;  %v7929_v52 = vor.u32 %v7928_v63, %v7925_v54  ;;  %v7921_v54 = vsel %vm5709_vm5, %v7911_v61, %v7920_v30  ;;  %v16712_v61 = vshll.u32 %v15805_v49, 16 }
 0x300   : > { %10245 = vmatprep.mubr.msk.bf16.mxu1 %vm16_vm0, %v15840_v21  ;;  %v7960_v10 = vrot.slane %v16715_v15, 3  ;;  %v16720_v15 = vshll.u32 %v15442_v26, 16 }
 0x301   : > { %v16072_v21 = vsel %vm6152_vm4, %v8312_v5, %v8313_v1  ;;  %v16709_v5 = vshrl.u32 %v15805_v49, 16  ;;  %v7954_v4 = vrot.slane %v16712_v61, 4 }
 0x302   : > { %10400 = vmatmul.mubr.msk.bf16.gmra.mrb[4].mxu0 %vm16_vm0, %v16040_v13  ;;  %v8319_v13 = vrot.slane %v15906_v33, 4 }
 0x303   : > { %10403 = vmatprep.mubr.msk.bf16.mxu0 %vm16_vm0, %v7912_v38  ;;  %v16708_v38 = vshll.u32 %v15800_v41, 16  ;;  %v7951_v1 = vrot.slane %v16709_v5, 3  ;;  %v7930_v41 = vsel %vm5709_vm5, %v7920_v30, %v7929_v52  ;;  %v8321_v5 = vrot.slane %v16091_v28, 4  ;;  %v16124_v30 = vld [vmem:[%s15421_s14 + $0xae8] sm:$0xff] }
 0x304   : > { %v16100_v58 = vsel %vm6152_vm4, %v8317_v60, %v8319_v13  ;;  %v16121_v13 = vld [vmem:[%s15421_s14 + $0xae0] sm:$0xff] }
 0x305   : > { %v7946_v63 = vrot.slane %v16708_v38, 4  ;;  %16711 = vst [vmem:[#allocation32_spill] sm:$0xff] %v16100_v58  ;;  %v16108_v38 = vld [vmem:[%s15421_s14 + $0xad8] sm:$0xff]  ;;  %v7955_v58 = vor.u32 %v7954_v4, %v7951_v1  ;;  %v16719_v1 = vshrl.u32 %v15442_v26, 16 }
 0x306   : > { %v8324_v60 = vrot.slane %v16108_v38, 4 }
 0x307   : > { %10246 = vmatmul.mubr.msk.bf16.gmra.mrb[20].mxu1 %vm16_vm0, %v15855_v45  ;;  %v16117_v45 = vsel %vm6152_vm4, %v8321_v5, %v8322_v7  ;;  %v7947_v49 = vor.u32 %v7946_v63, %v7943_v2  ;;  %v7939_v5 = vsel %vm5709_vm5, %v7929_v52, %v7938_v55  ;;  %v16717_v63 = vshrl.u32 %v15439_v25, 16 }
 0x308   : > { %10249 = vmatprep.mubr.msk.bf16.mxu1 %vm16_vm0, %v15873_v18  ;;  %16713 = vst [vmem:[#allocation33_spill] sm:$0xff] %v16117_v45  ;;  %v16127_v61 = vsel %vm6152_vm4, %v8322_v7, %v8324_v60  ;;  %v8326_v18 = vrot.slane %v16121_v13, 4  ;;  %v6437_v7 = vrot.slane %v16718_v14, 5  ;;  %v6439_v4 = vrot.slane %v16719_v1, 4 }
 0x309   : > { %16714 = vst [vmem:[#allocation34_spill] sm:$0xff] %v16127_v61  ;;  %v6436_v45 = vrot.slane %v16717_v63, 4  ;;  %v6440_v61 = vrot.slane %v16720_v15, 5  ;;  %v16723_v14 = vshrl.u32 %v15859_v20, 16  ;;  %v16724_v1 = vshll.u32 %v15859_v20, 16 }
 0x30a   : > { %10404 = vmatmul.mubr.msk.bf16.gmra.mrb[8].mxu0 %vm16_vm0, %v7921_v54  ;;  %v8328_v54 = vrot.slane %v16124_v30, 4  ;;  %v16145_v46 = vsel %vm6152_vm4, %v8324_v60, %v8326_v18  ;;  %v16161_v26 = vsel %vm5709_vm5, %v7947_v49, %v7955_v58  ;;  %v16654_v15 = vshrl.u32 %v16091_v28, 16 }
 0x30b   : > { %10407 = vmatprep.mubr.msk.bf16.mxu0 %vm16_vm0, %v7930_v41  ;;  %v16716_v41 = vshll.u32 %v15852_v12, 16  ;;  %v16721_v12 = vshrl.u32 %v15450_v32, 16  ;;  %v7969_v25 = vrot.slane %v16723_v14, 3  ;;  %v7972_v39 = vrot.slane %v16724_v1, 4 }
 0x30c   : > { %v16148_v52 = vsel %vm6152_vm4, %v8326_v18, %v8328_v54  ;;  %v6438_v18 = vor.u32 %v6437_v7, %v6436_v45  ;;  %v16655_v49 = vshrl.u32 %v16094_v53, 16  ;;  %v16725_v14 = vshrl.u32 %v15906_v33, 16 }
 0x30d   : > { %v7963_v2 = vrot.slane %v16716_v41, 4  ;;  %v6443_v55 = vrot.slane %v16721_v12, 4  ;;  %v16722_v41 = vshll.u32 %v15450_v32, 16  ;;  %v6441_v32 = vor.u32 %v6440_v61, %v6439_v4 }
 0x30e   : > { %v7973_v20 = vor.u32 %v7972_v39, %v7969_v25  ;;  %v16653_v12 = vshll.u32 %v16091_v28, 16  ;;  %v7978_v1 = vrot.slane %v16725_v14, 3  ;;  %v16726_v45 = vshll.u32 %v15906_v33, 16 }
 0x30f   : > { %v6444_v63 = vrot.slane %v16722_v41, 5  ;;  %10250 = vmatmul.mubr.msk.bf16.gmra.mrb[24].mxu1 %vm16_vm0, %v15879_v35  ;;  %v7964_v60 = vor.u32 %v7963_v2, %v7960_v10  ;;  %v16656_v41 = vshll.u32 %v16094_v53, 16  ;;  %v7009_v10 = vsel %vm5935_vm3, %v15895_v40, 0 }
 0x310   : > { %10253 = vmatprep.mubr.msk.bf16.mxu1 %vm16_vm0, %v15909_v0  ;;  %v7981_v61 = vrot.slane %v16726_v45, 4  ;;  %v16727_v39 = vshrl.u32 %v15469_v43, 16  ;;  %v16728_v7 = vshll.u32 %v15469_v43, 16  ;;  %v7987_v33 = vrot.slane %v16654_v15, 3 }
 0x311   : > { %v6445_v54 = vor.u32 %v6444_v63, %v6443_v55  ;;  %v16184_v55 = vsel %vm5709_vm5, %v7955_v58, %v7964_v60  ;;  %v16188_v25 = vsel %vm5709_vm5, %v7964_v60, %v7973_v20  ;;  %v7990_v40 = vrot.slane %v16653_v12, 4 }
 0x312   : > { %10408 = vmatmul.mubr.msk.bf16.gmra.mrb[12].mxu0 %vm16_vm0, %v7939_v5  ;;  %v6442_v5 = vsel %vm6435_vm6, %v6438_v18, %v6441_v32  ;;  %v6447_v2 = vrot.slane %v16727_v39, 4  ;;  %v6448_v4 = vrot.slane %v16728_v7, 5  ;;  %16729 = vst [vmem:[#allocation35_spill] sm:$0xff] %v16184_v55  ;;  %16730 = vst [vmem:[#allocation36_spill] sm:$0xff] %v16188_v25  ;;  %v7995_v43 = vrot.slane %v16655_v49, 3 }
 0x313   : > { %10411 = vmatprep.mubr.msk.bf16.mxu0 %vm16_vm0, %v16161_v26  ;;  %v6446_v63 = vsel %vm6435_vm6, %v6441_v32, %v6445_v54  ;;  %v7998_v58 = vrot.slane %v16656_v41, 4  ;;  %v16731_v18 = vshrl.u32 %v15969_v6, 16  ;;  %v7982_v60 = vor.u32 %v7981_v61, %v7978_v1 }
 0x314   : > { %v16732_v14 = vshrl.u32 %v15483_v48, 16  ;;  %v16733_v39 = vshll.u32 %v15969_v6, 16  ;;  %v16734_v12 = vshrl.u32 %v15972_v56, 16  ;;  %v6449_v49 = vor.u32 %v6448_v4, %v6447_v2 }
 0x315   : > { %v8595_v32 = vrot.slane %v16731_v18, 4  ;;  %v8002_v41 = vshrl.u32 %v16108_v38, 16  ;;  %v16735_v18 = vshll.u32 %v15972_v56, 16  ;;  %v16736_v1 = vshrl.u32 %v16005_v8, 16 }
 0x316   : > { %v6451_v45 = vrot.slane %v16732_v14, 4  ;;  %v8596_v7 = vrot.slane %v16733_v39, 5  ;;  %v8598_v15 = vrot.slane %v16734_v12, 4  ;;  %v8005_v6 = vshll.u32 %v16108_v38, 16 }
 0x317   : > { %10254 = vmatmul.mubr.msk.bf16.gmra.mrb[28].mxu1 %vm16_vm0, %v15914_v22  ;;  %v8599_v22 = vrot.slane %v16735_v18, 5  ;;  %v8602_v61 = vrot.slane %v16736_v1, 4  ;;  %v16737_v14 = vshll.u32 %v16005_v8, 16  ;;  %v7991_v2 = vor.u32 %v7990_v40, %v7987_v33 }
 0x318   : > { %10259 = vmatprep.mubr.msk.bf16.mxu1 %vm16_vm0, %v6442_v5  ;;  %v8011_v5 = vshrl.u32 %v16121_v13, 16  ;;  %v8597_v12 = vor.u32 %v8596_v7, %v8595_v32  ;;  %v7999_v4 = vor.u32 %v7998_v58, %v7995_v43  ;;  %v8014_v0 = vshll.u32 %v16121_v13, 16 }
 0x319   : > { %v8603_v39 = vrot.slane %v16737_v14, 5  ;;  %v8600_v56 = vor.u32 %v8599_v22, %v8598_v15  ;;  %v16224_v18 = vsel %vm5709_vm5, %v7973_v20, %v7982_v60  ;;  %v16738_v1 = vshll.u32 %v15483_v48, 16 }
 0x31a   : > { %10412 = vmatmul.mubr.msk.bf16.gmra.mrb[16].mxu0 %vm16_vm0, %v16184_v55  ;;  %v16739_v38 = vshrl.u32 %v16010_v57, 16  ;;  %v6450_v32 = vsel %vm6435_vm6, %v6445_v54, %v6449_v49  ;;  %v8004_v7 = vrot.slane %v8002_v41, 3  ;;  %v16740_v33 = vshll.u32 %v16010_v57, 16 }
 0x31b   : > { %10415 = vmatprep.mubr.msk.bf16.mxu0 %vm16_vm0, %v16188_v25  ;;  %v6452_v35 = vrot.slane %v16738_v1, 5  ;;  %v8604_v25 = vor.u32 %v8603_v39, %v8602_v61  ;;  %v16232_v8 = vsel %vm6435_vm6, %v8597_v12, %v8600_v56  ;;  %v8007_v22 = vrot.slane %v8005_v6, 4 }
 0x31c   : > { %v8606_v55 = vrot.slane %v16739_v38, 4  ;;  %v8607_v40 = vrot.slane %v16740_v33, 5  ;;  %v16741_v48 = vshrl.u32 %v16029_v62, 16  ;;  %v16742_v43 = vshll.u32 %v16029_v62, 16 }
 0x31d   : > { %v16237_v20 = vsel %vm6435_vm6, %v8600_v56, %v8604_v25  ;;  %v8000_v54 = vsel %vm5709_vm5, %v7991_v2, %v7999_v4  ;;  %v8013_v60 = vrot.slane %v8011_v5, 3  ;;  %v8016_v61 = vrot.slane %v8014_v0, 4 }
 0x31e   : > { %v8610_v15 = vrot.slane %v16741_v48, 4  ;;  %v8611_v58 = vrot.slane %v16742_v43, 5  ;;  %v8608_v57 = vor.u32 %v8607_v40, %v8606_v55  ;;  %v6453_v12 = vor.u32 %v6452_v35, %v6451_v45 }
 0x31f   : > { %10260 = vmatmul.mubr.msk.bf16.vlgmr.msra.gmra.mrb[0].mxu1 %vm16_vm0, %v6446_v63  ;;  %v8020_v62 = vshrl.u32 %v16124_v30, 16  ;;  %v11447_v63 = vld [vmem:[%s16584_s1 + $0x8] sm:$0x3]  ;;  %v8023_v35 = vshll.u32 %v16124_v30, 16  ;;  %v8017_v45 = vor.u32 %v8016_v61, %v8013_v60  ;;  %v16743_v1 = vshrl.u32 %v16091_v28, 16  ;;  %v11449_v61 = vld [vmem:[%s15421_s14 + $0x58] sm:$0xff] }
 0x320   : > { %10292 = vmatpush3.bf16.msra.mxu1 %v7009_v10  ;;  %10263 = vmatprep.mubr.msk.bf16.mxu1 %vm16_vm0, %v6450_v32  ;;  %v8612_v14 = vor.u32 %v8611_v58, %v8610_v15  ;;  %v16256_v39 = vsel %vm6435_vm6, %v8604_v25, %v8608_v57  ;;  %v8008_v10 = vor.u32 %v8007_v22, %v8004_v7  ;;  %v16744_v32 = vshll.u32 %v16091_v28, 16 }
 0x321   : > { %10790 = vmatprep.subr.msk.bf16.mxu1 %vm5935_vm3, %v11447_v63  ;;  %v6454_v2 = vsel %vm6435_vm6, %v6449_v49, %v6453_v12  ;;  %v8022_v56 = vrot.slane %v8020_v62, 3  ;;  %v8633_v38 = vrot.slane %v16743_v1, 4  ;;  %v16745_v25 = vshrl.u32 %v16094_v53, 16 }
 0x322   : > { %10416 = vmatmul.mubr.msk.bf16.gmra.mrb[20].mxu0 %vm16_vm0, %v16224_v18  ;;  %v16261_v55 = vsel %vm6435_vm6, %v8608_v57, %v8612_v14  ;;  %v8634_v33 = vrot.slane %v16744_v32, 5  ;;  %v8009_v7 = vsel %vm5709_vm5, %v7999_v4, %v8008_v10  ;;  %v8025_v30 = vrot.slane %v8023_v35, 4 }
 0x323   : > { %10419 = vmatprep.mubr.msk.bf16.mxu0 %vm16_vm0, %v8000_v54  ;;  %v8636_v40 = vrot.slane %v16745_v25, 4  ;;  %v16746_v22 = vshll.u32 %v16094_v53, 16  ;;  %v8640_v15 = vrot.slane %v8002_v41, 4  ;;  %v8018_v49 = vsel %vm5709_vm5, %v8008_v10, %v8017_v45  ;;  %v11448_v41 = vld [vmem:[%s15421_s14 + $0x50] sm:$0xff] }
 0x324   : > { %v8635_v43 = vor.u32 %v8634_v33, %v8633_v38  ;;  %v8641_v58 = vrot.slane %v8005_v6, 5  ;;  %v8026_v4 = vor.u32 %v8025_v30, %v8022_v56  ;;  %v8294_v60 = vrot.slane %v11448_v41, 4 }
 0x325   : > { %v8637_v48 = vrot.slane %v16746_v22, 5  ;;  %v8295_v57 = vrot.slane %v11449_v61, 4  ;;  %v16747_v6 = vshrl.u32 %v15580_v16, 16  ;;  %v16748_v14 = vshll.u32 %v15580_v16, 16 }
 0x326   : > { %v8642_v54 = vor.u32 %v8641_v58, %v8640_v15  ;;  %v16749_v10 = vshrl.u32 %v15583_v37, 16  ;;  %v16750_v56 = vshll.u32 %v15583_v37, 16  ;;  %v8644_v38 = vrot.slane %v8011_v5, 4 }
 0x327   : > { %10264 = vmatmul.mubr.msk.bf16.gmra.mrb[4].mxu1 %vm16_vm0, %v6454_v2  ;;  %v8638_v28 = vor.u32 %v8637_v48, %v8636_v40  ;;  %v6475_v63 = vrot.slane %v16748_v14, 5  ;;  %v8645_v32 = vrot.slane %v8014_v0, 5  ;;  %v8027_v33 = vsel %vm5709_vm5, %v8017_v45, %v8026_v4  ;;  %v11451_v45 = vld [vmem:[%s15421_s14 + $0x68] sm:$0xff] }
 0x328   : > { %10267 = vmatprep.mubr.msk.bf16.mxu1 %vm16_vm0, %v15636_v27  ;;  %v6474_v27 = vrot.slane %v16747_v6, 4  ;;  %v6477_v2 = vrot.slane %v16749_v10, 4  ;;  %v6478_v1 = vrot.slane %v16750_v56, 5  ;;  %v8648_v25 = vrot.slane %v8020_v62, 4  ;;  %v11450_v62 = vld [vmem:[%s15421_s14 + $0x60] sm:$0xff] }
 0x329   : > { %v16280_v53 = vsel %vm6435_vm6, %v8635_v43, %v8638_v28  ;;  %v16285_v12 = vsel %vm6435_vm6, %v8638_v28, %v8642_v54  ;;  %v8649_v40 = vrot.slane %v8023_v35, 5  ;;  %v8296_v16 = vsel %vm6152_vm4, %v8294_v60, %v8295_v57 }
 0x32a   : > { %10420 = vmatmul.mubr.msk.bf16.gmra.mrb[24].mxu0 %vm16_vm0, %v8009_v7  ;;  %v8646_v7 = vor.u32 %v8645_v32, %v8644_v38  ;;  %v6476_v13 = vor.u32 %v6475_v63, %v6474_v27  ;;  %v6479_v5 = vor.u32 %v6478_v1, %v6477_v2  ;;  %v8297_v35 = vrot.slane %v11450_v62, 4  ;;  %v16767_v1 = vld [vmem:[#allocation29_spill] sm:$0xff]  ;;  %v16768_v38 = vld [vmem:[#allocation11_spill] sm:$0xff]  ;;  %v16769_v32 = vld [vmem:[#allocation30_spill] sm:$0xff] }
 0x32b   : > { %10423 = vmatprep.mubr.msk.bf16.mxu0 %vm16_vm0, %v8018_v49  ;;  %v8650_v37 = vor.u32 %v8649_v40, %v8648_v25  ;;  %v8299_v30 = vrot.slane %v11451_v45, 4  ;;  %v16751_v22 = vshrl.u32 %v15604_v23, 16  ;;  %v16752_v48 = vshll.u32 %v15604_v23, 16  ;;  %v16771_v25 = vld [vmem:[#allocation12_spill] sm:$0xff]  ;;  %v16773_v40 = vld [vmem:[#allocation15_spill] sm:$0xff]  ;;  %v16784_v62 = vld [vmem:[#allocation22_spill] sm:$0xff] }
 0x32c   : > { %v16305_v0 = vsel %vm6435_vm6, %v8642_v54, %v8646_v7  ;;  %v6480_v49 = vsel %vm6435_vm6, %v6476_v13, %v6479_v5  ;;  %v16753_v43 = vshrl.u32 %v15631_v17, 16  ;;  %v16754_v28 = vshll.u32 %v15631_v17, 16  ;;  %v11452_v17 = vld [vmem:[%s15421_s14 + $0x70] sm:$0xff] }
 0x32d   : > { %v6482_v15 = vrot.slane %v16752_v48, 5  ;;  %v8298_v4 = vsel %vm6152_vm4, %v8295_v57, %v8297_v35  ;;  %v8703_v41 = vsel %vm5935_vm3, %v16015_v9, 0  ;;  %v8300_v60 = vsel %vm6152_vm4, %v8297_v35, %v8299_v30  ;;  %v16778_v13 = vld [vmem:[#allocation36_spill] sm:$0xff] }
 0x32e   : > { %v6485_v58 = vrot.slane %v16753_v43, 4  ;;  %v6486_v54 = vrot.slane %v16754_v28, 5  ;;  %v8301_v6 = vrot.slane %v11452_v17, 4  ;;  %v16756_v9 = vshll.u32 %v15655_v59, 16  ;;  %v16787_v43 = vld [vmem:[#allocation6_spill] sm:$0xff] }
 0x32f   : > { %10268 = vmatmul.mubr.msk.bf16.gmra.mrb[8].mxu1 %vm16_vm0, %v15662_v31  ;;  %v16310_v31 = vsel %vm6435_vm6, %v8646_v7, %v8650_v37  ;;  %v16776_v7 = vld [vmem:[#allocation18_spill] sm:$0xff]  ;;  %v16777_v37 = vld [vmem:[#allocation35_spill] sm:$0xff] }
 0x330   : > { %10271 = vmatprep.mubr.msk.bf16.mxu1 %vm16_vm0, %v15677_v50  ;;  %v6481_v50 = vrot.slane %v16751_v22, 4  ;;  %v6487_v61 = vor.u32 %v6486_v54, %v6485_v58  ;;  %v6490_v14 = vrot.slane %v16756_v9, 5  ;;  %v8302_v10 = vsel %vm6152_vm4, %v8299_v30, %v8301_v6 }
 0x332   : > { %10424 = vmatmul.mubr.msk.bf16.gmra.mrb[28].mxu0 %vm16_vm0, %v8027_v33  ;;  %v6483_v23 = vor.u32 %v6482_v15, %v6481_v50  ;;  %v16770_v33 = vld [vmem:[#allocation13_spill] sm:$0xff] }
 0x333   : > { %10429 = vmatprep.mubr.msk.bf16.mxu0 %vm16_vm0, %v8296_v16  ;;  %v16774_v16 = vld [vmem:[#allocation16_spill] sm:$0xff] }
 0x334   : > { %v6484_v57 = vsel %vm6435_vm6, %v6479_v5, %v6483_v23  ;;  %v6488_v63 = vsel %vm6435_vm6, %v6483_v23, %v6487_v61  ;;  %v16783_v5 = vld [vmem:[#allocation20_spill] sm:$0xff] }
 0x337   : > { %10272 = vmatmul.mubr.msk.bf16.gmra.mrb[12].mxu1 %vm16_vm0, %v15724_v11  ;;  %v16755_v11 = vshrl.u32 %v15655_v59, 16  ;;  %v16757_v59 = vld [vmem:[#allocation31_spill] sm:$0xff] }
 0x338   : > { %10275 = vmatprep.mubr.msk.bf16.mxu1 %vm16_vm0, %v6480_v49 }
 0x339   : > { %v6489_v27 = vrot.slane %v16755_v11, 4 }
 0x33a   : > { %10430 = vmatmul.mubr.msk.bf16.vlgmr.msra.gmra.mrb[0].mxu0 %vm16_vm0, %v8298_v4 }
 0x33b   : > { %10462 = vmatpush3.bf16.msra.mxu0 %v8703_v41  ;;  %10433 = vmatprep.mubr.msk.bf16.mxu0 %vm16_vm0, %v8300_v60  ;;  %v6491_v2 = vor.u32 %v6490_v14, %v6489_v27 }
 0x33d   : > { %v6492_v56 = vsel %vm6435_vm6, %v6487_v61, %v6491_v2 }
 0x33f   : > { %10276 = vmatmul.mubr.msk.bf16.gmra.mrb[16].mxu1 %vm16_vm0, %v6484_v57 }
 0x340   : > { %10279 = vmatprep.mubr.msk.bf16.mxu1 %vm16_vm0, %v6488_v63 }
 0x342   : > { %10434 = vmatmul.mubr.msk.bf16.gmra.mrb[4].mxu0 %vm16_vm0, %v8302_v10 }
 0x343   : > { %10437 = vmatprep.mubr.msk.bf16.mxu0 %vm16_vm0, %v16034_v36  ;;  %v16766_v36 = vld [vmem:[#allocation28_spill] sm:$0xff] }
 0x347   : > { %10280 = vmatmul.mubr.msk.bf16.gmra.mrb[20].mxu1 %vm16_vm0, %v6492_v56 }
 0x348   : > { %10283 = vmatprep.mubr.msk.bf16.mxu1 %vm16_vm0, %v15797_v47  ;;  %v16758_v47 = vld [vmem:[#allocation8_spill] sm:$0xff] }
 0x34a   : > { %10438 = vmatmul.mubr.msk.bf16.gmra.mrb[8].mxu0 %vm16_vm0, %v16037_v44  ;;  %v16761_v44 = vld [vmem:[#allocation32_spill] sm:$0xff] }
 0x34b   : > { %10441 = vmatprep.mubr.msk.bf16.mxu0 %vm16_vm0, %v16057_v34  ;;  %v16764_v34 = vld [vmem:[#allocation27_spill] sm:$0xff] }
 0x34f   : > { %10284 = vmatmul.mubr.msk.bf16.gmra.mrb[24].mxu1 %vm16_vm0, %v15833_v42  ;;  %v16759_v42 = vld [vmem:[#allocation7_spill] sm:$0xff] }
 0x350   : > { %10287 = vmatprep.mubr.msk.bf16.mxu1 %vm16_vm0, %v15845_v19  ;;  %v16760_v19 = vld [vmem:[#allocation9_spill] sm:$0xff] }
 0x352   : > { %10442 = vmatmul.mubr.msk.bf16.gmra.mrb[12].mxu0 %vm16_vm0, %v16063_v24  ;;  %v16765_v24 = vld [vmem:[#allocation34_spill] sm:$0xff] }
 0x353   : > { %10445 = vmatprep.mubr.msk.bf16.mxu0 %vm16_vm0, %v16072_v21 }
 0x357   : > { %10288 = vmatmul.mubr.msk.bf16.gmra.mrb[28].mxu1 %vm16_vm0, %v15885_v29  ;;  %v16762_v29 = vld [vmem:[#allocation33_spill] sm:$0xff] }
 0x358   : > { %10293 = vmatprep.mubr.msk.bf16.mxu1 %vm16_vm0, %v15574_v3  ;;  %v16763_v3 = vld [vmem:[#allocation10_spill] sm:$0xff] }
 0x35a   : > { %10446 = vmatmul.mubr.msk.bf16.gmra.mrb[16].mxu0 %vm16_vm0, %v16075_v51 }
 0x35b   : > { %10449 = vmatprep.mubr.msk.bf16.mxu0 %vm16_vm0, %v16757_v59 }
 0x35f   : > { %10294 = vmatmul.mubr.msk.bf16.vlgmr.msra.gmra.mrb[0].mxu1 %vm16_vm0, %v16758_v47 }
 0x360   : > { %10496 = vmatpush3.bf16.msra.mxu1 %v16759_v42  ;;  %10297 = vmatprep.mubr.msk.bf16.mxu1 %vm16_vm0, %v16760_v19 }
 0x362   : > { %10450 = vmatmul.mubr.msk.bf16.gmra.mrb[20].mxu0 %vm16_vm0, %v16761_v44 }
 0x363   : > { %10453 = vmatprep.mubr.msk.bf16.mxu0 %vm16_vm0, %v16762_v29 }
 0x367   : > { %10298 = vmatmul.mubr.msk.bf16.gmra.mrb[4].mxu1 %vm16_vm0, %v16763_v3 }
 0x368   : > { %10301 = vmatprep.mubr.msk.bf16.mxu1 %vm16_vm0, %v16764_v34 }
 0x36a   : > { %10454 = vmatmul.mubr.msk.bf16.gmra.mrb[24].mxu0 %vm16_vm0, %v16765_v24 }
 0x36b   : > { %10457 = vmatprep.mubr.msk.bf16.mxu0 %vm16_vm0, %v16145_v46  ;;  %v16772_v46 = vld [vmem:[#allocation14_spill] sm:$0xff] }
 0x36f   : > { %10302 = vmatmul.mubr.msk.bf16.gmra.mrb[8].mxu1 %vm16_vm0, %v16766_v36 }
 0x370   : > { %10305 = vmatprep.mubr.msk.bf16.mxu1 %vm16_vm0, %v16767_v1 }
 0x372   : > { %10458 = vmatmul.mubr.msk.bf16.gmra.mrb[28].mxu0 %vm16_vm0, %v16148_v52  ;;  %v16775_v52 = vld [vmem:[#allocation17_spill] sm:$0xff] }
 0x373   : > { %10463 = vmatprep.mubr.msk.bf16.mxu0 %vm16_vm0, %v16768_v38 }
 0x377   : > { %10306 = vmatmul.mubr.msk.bf16.gmra.mrb[12].mxu1 %vm16_vm0, %v16769_v32 }
 0x378   : > { %10309 = vmatprep.mubr.msk.bf16.mxu1 %vm16_vm0, %v16770_v33 }
 0x37a   : > { %10464 = vmatmul.mubr.msk.bf16.vlgmr.msra.gmra.mrb[0].mxu0 %vm16_vm0, %v16771_v25 }
 0x37b   : > { %10467 = vmatprep.mubr.msk.bf16.mxu0 %vm16_vm0, %v16772_v46 }
 0x37f   : > { %10310 = vmatmul.mubr.msk.bf16.gmra.mrb[16].mxu1 %vm16_vm0, %v16773_v40 }
 0x380   : > { %10313 = vmatprep.mubr.msk.bf16.mxu1 %vm16_vm0, %v16774_v16 }
 0x382   : > { %10468 = vmatmul.mubr.msk.bf16.gmra.mrb[4].mxu0 %vm16_vm0, %v16775_v52 }
 0x383   : > { %10471 = vmatprep.mubr.msk.bf16.mxu0 %vm16_vm0, %v16232_v8  ;;  %v16779_v8 = vld [vmem:[#allocation21_spill] sm:$0xff] }
 0x387   : > { %10314 = vmatmul.mubr.msk.bf16.gmra.mrb[20].mxu1 %vm16_vm0, %v16776_v7 }
 0x388   : > { %10317 = vmatprep.mubr.msk.bf16.mxu1 %vm16_vm0, %v16161_v26  ;;  %v16780_v26 = vld [vmem:[#allocation19_spill] sm:$0xff] }
 0x38a   : > { %10472 = vmatmul.mubr.msk.bf16.gmra.mrb[8].mxu0 %vm16_vm0, %v16237_v20  ;;  %v16781_v20 = vld [vmem:[#allocation24_spill] sm:$0xff] }
 0x38b   : > { %10475 = vmatprep.mubr.msk.bf16.mxu0 %vm16_vm0, %v16256_v39  ;;  %v16782_v39 = vld [vmem:[#allocation25_spill] sm:$0xff] }
 0x38f   : > { %10318 = vmatmul.mubr.msk.bf16.gmra.mrb[24].mxu1 %vm16_vm0, %v16777_v37 }
 0x390   : > { %10321 = vmatprep.mubr.msk.bf16.mxu1 %vm16_vm0, %v16778_v13 }
 0x392   : > { %10476 = vmatmul.mubr.msk.bf16.gmra.mrb[12].mxu0 %vm16_vm0, %v16261_v55  ;;  %v16785_v55 = vld [vmem:[#allocation26_spill] sm:$0xff] }
 0x393   : > { %10479 = vmatprep.mubr.msk.bf16.mxu0 %vm16_vm0, %v16779_v8 }
 0x397   : > { %10322 = vmatmul.mubr.msk.bf16.gmra.mrb[28].mxu1 %vm16_vm0, %v16224_v18  ;;  %v16786_v18 = vld [vmem:[#allocation23_spill] sm:$0xff] }
 0x398   : > { %10343 = vmatprep.mubr.msk.bf16.mxu1 %vm16_vm0, %v16780_v26 }
 0x39a   : > { %10480 = vmatmul.mubr.msk.bf16.gmra.mrb[16].mxu0 %vm16_vm0, %v16781_v20 }
 0x39b   : > { %10483 = vmatprep.mubr.msk.bf16.mxu0 %vm16_vm0, %v16782_v39 }
 0x39f   : > { %10344 = vmatmul.mubr.msk.bf16.vlgmr.msra.gmra.mrb[16].mxu1 %vm16_vm0, %v16783_v5 }
 0x3a0   : > { %10347 = vmatprep.mubr.msk.bf16.mxu1 %vm16_vm0, %v16784_v62 }
 0x3a2   : > { %10484 = vmatmul.mubr.msk.bf16.gmra.mrb[20].mxu0 %vm16_vm0, %v16785_v55 }
 0x3a3   : > { %10487 = vmatprep.mubr.msk.bf16.mxu0 %vm16_vm0, %v16280_v53 }
 0x3a7   : > { %10348 = vmatmul.mubr.msk.bf16.gmra.mrb[20].mxu1 %vm16_vm0, %v16786_v18 }
 0x3a8   : > { %10351 = vmatprep.mubr.msk.bf16.mxu1 %vm16_vm0, %v16072_v21 }
 0x3aa   : > { %10488 = vmatmul.mubr.msk.bf16.gmra.mrb[24].mxu0 %vm16_vm0, %v16285_v12 }
 0x3ab   : > { %10491 = vmatprep.mubr.msk.bf16.mxu0 %vm16_vm0, %v16305_v0 }
 0x3af   : > { %10352 = vmatmul.mubr.msk.bf16.gmra.mrb[24].mxu1 %vm16_vm0, %v16075_v51 }
 0x3b0   : > { %10355 = vmatprep.mubr.msk.bf16.mxu1 %vm16_vm0, %v16757_v59 }
 0x3b2   : > { %10492 = vmatmul.mubr.msk.bf16.gmra.mrb[28].mxu0 %vm16_vm0, %v16310_v31 }
 0x3b7   : > { %10356 = vmatmul.mubr.msk.bf16.gmra.mrb[28].mxu1 %vm16_vm0, %v16761_v44 }
 0x432   : > { %v10295_v53 = vpop.f32.mrb[0].mxu1 }
 0x433   : > { %v7045_v21 = vpop.f32.mrb[1].mxu1  ;;  %v10497_v31 = vadd.f32 %v10295_v53, %v16787_v43 }
 0x434   : > { %v10296_v35 = vpop.f32.mrb[2].mxu1  ;;  %v10499_v28 = vadd.f32 %v16787_v43, %v7045_v21 }
 0x435   : > { %v7048_v45 = vpop.f32.mrb[3].mxu1  ;;  %v10501_v41 = vadd.f32 %v10296_v35, %v16787_v43 }
 0x436   : > { %v10503_v17 = vadd.f32 %v16787_v43, %v7048_v45 }
 0x43a   : > { %v10299_v12 = vpop.f32.mrb[4].mxu1 }
 0x43b   : > { %v7061_v30 = vpop.f32.mrb[5].mxu1  ;;  %v10505_v47 = vadd.f32 %v10299_v12, %v16787_v43 }
 0x43c   : > { %v10300_v0 = vpop.f32.mrb[6].mxu1  ;;  %v10507_v19 = vadd.f32 %v16787_v43, %v7061_v30 }
 0x43d   : > { %v7064_v22 = vpop.f32.mrb[7].mxu1  ;;  %v10509_v3 = vadd.f32 %v10300_v0, %v16787_v43 }
 0x43e   : > { %v10511_v36 = vadd.f32 %v16787_v43, %v7064_v22 }
 0x442   : > { %v10303_v50 = vpop.f32.mrb[8].mxu1 }
 0x443   : > { %v7077_v51 = vpop.f32.mrb[9].mxu1  ;;  %v10513_v13 = vadd.f32 %v10303_v50, %v16787_v43 }
 0x444   : > { %v10304_v48 = vpop.f32.mrb[10].mxu1  ;;  %v10515_v26 = vadd.f32 %v16787_v43, %v7077_v51 }
 0x445   : > { %v7080_v15 = vpop.f32.mrb[11].mxu1  ;;  %v10517_v5 = vadd.f32 %v10304_v48, %v16787_v43 }
 0x446   : > { %v10519_v18 = vadd.f32 %v16787_v43, %v7080_v15 }
 0x44a   : > { %v16457_v49 = vpop.f32.mrb[12].mxu1 }
 0x44b   : > { %v16460_v58 = vpop.f32.mrb[13].mxu1 }
 0x44c   : > { %v16463_v54 = vpop.f32.mrb[14].mxu1 }
 0x44d   : > { %v10465_v4 = vpop.f32.mrb[0].mxu0  ;;  %v16466_v60 = vpop.f32.mrb[15].mxu1 }
 0x44e   : > { %v10498_v23 = vadd.f32 %v10497_v31, %v10465_v4  ;;  %v8739_v61 = vpop.f32.mrb[1].mxu0  ;;  %v10521_v31 = vadd.f32 %v16457_v49, %v16787_v43  ;;  %v10527_v49 = vadd.f32 %v16787_v43, %v16466_v60 }
 0x44f   : > { %v10500_v6 = vadd.f32 %v10499_v28, %v8739_v61  ;;  %v10466_v57 = vpop.f32.mrb[2].mxu0  ;;  %v10523_v28 = vadd.f32 %v16787_v43, %v16460_v58 }
 0x450   : > { %v8900_v11 = vmax.f32 %v10498_v23, 0.0  ;;  %v10502_v27 = vadd.f32 %v10501_v41, %v10466_v57  ;;  %v8742_v9 = vpop.f32.mrb[3].mxu0  ;;  %v10525_v23 = vadd.f32 %v16463_v54, %v16787_v43 }
 0x451   : > { %v8898_v14 = vmax.f32 %v10500_v6, 0.0  ;;  %v10504_v63 = vadd.f32 %v10503_v17, %v8742_v9 }
 0x452   : > { %v10004_v10 = vpack.c.bf16 %v8900_v11, %v8900_v11  ;;  %v8901_v2 = vmax.f32 %v10502_v27, 0.0 }
 0x453   : > { %v10002_v56 = vpack.c.bf16 %v8898_v14, %v8898_v14  ;;  %v8899_v59 = vmax.f32 %v10504_v63, 0.0 }
 0x454   : > { %9064 = vst.msk [vmem:[%s16471_s28 + $0x8] sm:$0xf] %vm9061_vm7, %v10004_v10  ;;  %v10005_v42 = vpack.c.bf16 %v8901_v2, %v8901_v2 }
 0x455   : > { %9062 = vst.msk [vmem:[%s16471_s28] sm:$0xf] %vm9061_vm7, %v10002_v56  ;;  %v10003_v44 = vpack.c.bf16 %v8899_v59, %v8899_v59  ;;  %v10469_v29 = vpop.f32.mrb[4].mxu0 }
 0x456   : > { %9065 = vst.msk [vmem:[%s16471_s28 + $0xc] sm:$0xf] %vm9061_vm7, %v10005_v42  ;;  %v10506_v34 = vadd.f32 %v10505_v47, %v10469_v29  ;;  %v8755_v24 = vpop.f32.mrb[5].mxu0 }
 0x457   : > { %9063 = vst.msk [vmem:[%s16471_s28 + $0x4] sm:$0xf] %vm9061_vm7, %v10003_v44  ;;  %v10508_v1 = vadd.f32 %v10507_v19, %v8755_v24  ;;  %v10470_v38 = vpop.f32.mrb[6].mxu0 }
 0x458   : > { %v8904_v32 = vmax.f32 %v10506_v34, 0.0  ;;  %v10510_v33 = vadd.f32 %v10509_v3, %v10470_v38  ;;  %v8758_v25 = vpop.f32.mrb[7].mxu0 }
 0x459   : > { %v8902_v46 = vmax.f32 %v10508_v1, 0.0  ;;  %v10512_v40 = vadd.f32 %v10511_v36, %v8758_v25 }
 0x45a   : > { %v10008_v16 = vpack.c.bf16 %v8904_v32, %v8904_v32  ;;  %v8905_v52 = vmax.f32 %v10510_v33, 0.0 }
 0x45b   : > { %v10006_v7 = vpack.c.bf16 %v8902_v46, %v8902_v46  ;;  %v8903_v37 = vmax.f32 %v10512_v40, 0.0 }
 0x45c   : > { %9068 = vst.msk [vmem:[%s16471_s28 + $0x18] sm:$0xf] %vm9061_vm7, %v10008_v16  ;;  %v10009_v8 = vpack.c.bf16 %v8905_v52, %v8905_v52 }
 0x45d   : > { %9066 = vst.msk [vmem:[%s16471_s28 + $0x10] sm:$0xf] %vm9061_vm7, %v10006_v7  ;;  %v10007_v20 = vpack.c.bf16 %v8903_v37, %v8903_v37  ;;  %v10473_v39 = vpop.f32.mrb[8].mxu0 }
 0x45e   : > { %9069 = vst.msk [vmem:[%s16471_s28 + $0x1c] sm:$0xf] %vm9061_vm7, %v10009_v8  ;;  %v10514_v62 = vadd.f32 %v10513_v13, %v10473_v39  ;;  %v8771_v55 = vpop.f32.mrb[9].mxu0 }
 0x45f   : > { %9067 = vst.msk [vmem:[%s16471_s28 + $0x14] sm:$0xf] %vm9061_vm7, %v10007_v20  ;;  %v10516_v53 = vadd.f32 %v10515_v26, %v8771_v55  ;;  %v10474_v21 = vpop.f32.mrb[10].mxu0 }
 0x460   : > { %v8908_v35 = vmax.f32 %v10514_v62, 0.0  ;;  %v10518_v45 = vadd.f32 %v10517_v5, %v10474_v21  ;;  %v8774_v12 = vpop.f32.mrb[11].mxu0 }
 0x461   : > { %v8906_v30 = vmax.f32 %v10516_v53, 0.0  ;;  %v10520_v0 = vadd.f32 %v10519_v18, %v8774_v12 }
 0x462   : > { %v10012_v22 = vpack.c.bf16 %v8908_v35, %v8908_v35  ;;  %v8909_v50 = vmax.f32 %v10518_v45, 0.0 }
 0x463   : > { %v10010_v51 = vpack.c.bf16 %v8906_v30, %v8906_v30  ;;  %v8907_v48 = vmax.f32 %v10520_v0, 0.0 }
 0x464   : > { %9072 = vst.msk [vmem:[%s16471_s28 + $0x28] sm:$0xf] %vm9061_vm7, %v10012_v22  ;;  %v10013_v15 = vpack.c.bf16 %v8909_v50, %v8909_v50 }
 0x465   : > { %9070 = vst.msk [vmem:[%s16471_s28 + $0x20] sm:$0xf] %vm9061_vm7, %v10010_v51  ;;  %v10011_v4 = vpack.c.bf16 %v8907_v48, %v8907_v48  ;;  %v10477_v41 = vpop.f32.mrb[12].mxu0 }
 0x466   : > { %9073 = vst.msk [vmem:[%s16471_s28 + $0x2c] sm:$0xf] %vm9061_vm7, %v10013_v15  ;;  %v10522_v61 = vadd.f32 %v10521_v31, %v10477_v41  ;;  %v8787_v17 = vpop.f32.mrb[13].mxu0 }
 0x467   : > { %9071 = vst.msk [vmem:[%s16471_s28 + $0x24] sm:$0xf] %vm9061_vm7, %v10011_v4  ;;  %v10524_v6 = vadd.f32 %v10523_v28, %v8787_v17  ;;  %v10478_v58 = vpop.f32.mrb[14].mxu0 }
 0x468   : > { %v8912_v57 = vmax.f32 %v10522_v61, 0.0  ;;  %v10526_v11 = vadd.f32 %v10525_v23, %v10478_v58  ;;  %v8790_v27 = vpop.f32.mrb[15].mxu0 }
 0x469   : > { %v8910_v9 = vmax.f32 %v10524_v6, 0.0  ;;  %v10528_v54 = vadd.f32 %v10527_v49, %v8790_v27 }
 0x46a   : > { %v10016_v14 = vpack.c.bf16 %v8912_v57, %v8912_v57  ;;  %v8913_v63 = vmax.f32 %v10526_v11, 0.0 }
 0x46b   : > { %v10014_v10 = vpack.c.bf16 %v8910_v9, %v8910_v9  ;;  %v8911_v2 = vmax.f32 %v10528_v54, 0.0 }
 0x46c   : > { %9076 = vst.msk [vmem:[%s16471_s28 + $0x38] sm:$0xf] %vm9061_vm7, %v10016_v14  ;;  %v10017_v56 = vpack.c.bf16 %v8913_v63, %v8913_v63 }
 0x46d   : > { %9074 = vst.msk [vmem:[%s16471_s28 + $0x30] sm:$0xf] %vm9061_vm7, %v10014_v10  ;;  %v10015_v60 = vpack.c.bf16 %v8911_v2, %v8911_v2  ;;  %v10481_v59 = vpop.f32.mrb[16].mxu0 }
 0x46e   : > { %9077 = vst.msk [vmem:[%s16471_s28 + $0x3c] sm:$0xf] %vm9061_vm7, %v10017_v56  ;;  %v8803_v47 = vpop.f32.mrb[17].mxu0 }
 0x46f   : > { %9075 = vst.msk [vmem:[%s16471_s28 + $0x34] sm:$0xf] %vm9061_vm7, %v10015_v60  ;;  %v10482_v42 = vpop.f32.mrb[18].mxu0 }
 0x470   : > { %v8806_v19 = vpop.f32.mrb[19].mxu0 }
 0x472   : > { %v10345_v44 = vpop.f32.mrb[16].mxu1 }
 0x473   : > { %v10529_v29 = vadd.f32 %v10345_v44, %v16787_v43  ;;  %v7411_v3 = vpop.f32.mrb[17].mxu1 }
 0x474   : > { %v10531_v34 = vadd.f32 %v16787_v43, %v7411_v3  ;;  %v10346_v24 = vpop.f32.mrb[18].mxu1 }
 0x475   : > { %v10485_v36 = vpop.f32.mrb[20].mxu0  ;;  %v10530_v1 = vadd.f32 %v10529_v29, %v10481_v59  ;;  %v10533_v38 = vadd.f32 %v10346_v24, %v16787_v43  ;;  %v7414_v32 = vpop.f32.mrb[19].mxu1 }
 0x476   : > { %v8819_v33 = vpop.f32.mrb[21].mxu0  ;;  %v10532_v25 = vadd.f32 %v10531_v34, %v8803_v47  ;;  %v10535_v46 = vadd.f32 %v16787_v43, %v7414_v32 }
 0x477   : > { %v10486_v40 = vpop.f32.mrb[22].mxu0  ;;  %v8916_v16 = vmax.f32 %v10530_v1, 0.0  ;;  %v10534_v52 = vadd.f32 %v10533_v38, %v10482_v42 }
 0x478   : > { %v8822_v7 = vpop.f32.mrb[23].mxu0  ;;  %v8914_v37 = vmax.f32 %v10532_v25, 0.0  ;;  %v10536_v13 = vadd.f32 %v10535_v46, %v8806_v19 }
 0x479   : > { %v10020_v8 = vpack.c.bf16 %v8916_v16, %v8916_v16  ;;  %v8917_v26 = vmax.f32 %v10534_v52, 0.0 }
 0x47a   : > { %v10018_v20 = vpack.c.bf16 %v8914_v37, %v8914_v37  ;;  %v8915_v39 = vmax.f32 %v10536_v13, 0.0  ;;  %v10349_v5 = vpop.f32.mrb[20].mxu1 }
 0x47b   : > { %9080 = vst.msk [vmem:[%s16471_s28 + $0x808] sm:$0xf] %vm9061_vm7, %v10020_v8  ;;  %v10021_v62 = vpack.c.bf16 %v8917_v26, %v8917_v26  ;;  %v10537_v55 = vadd.f32 %v10349_v5, %v16787_v43  ;;  %v7427_v18 = vpop.f32.mrb[21].mxu1 }
 0x47c   : > { %9078 = vst.msk [vmem:[%s16471_s28 + $0x800] sm:$0xf] %vm9061_vm7, %v10018_v20  ;;  %v10019_v53 = vpack.c.bf16 %v8915_v39, %v8915_v39  ;;  %v10539_v21 = vadd.f32 %v16787_v43, %v7427_v18  ;;  %v10350_v35 = vpop.f32.mrb[22].mxu1 }
 0x47d   : > { %v10489_v45 = vpop.f32.mrb[24].mxu0  ;;  %9081 = vst.msk [vmem:[%s16471_s28 + $0x80c] sm:$0xf] %vm9061_vm7, %v10021_v62  ;;  %v10538_v12 = vadd.f32 %v10537_v55, %v10485_v36  ;;  %v10541_v30 = vadd.f32 %v10350_v35, %v16787_v43  ;;  %v7430_v0 = vpop.f32.mrb[23].mxu1 }
 0x47e   : > { %v8835_v22 = vpop.f32.mrb[25].mxu0  ;;  %9079 = vst.msk [vmem:[%s16471_s28 + $0x804] sm:$0xf] %vm9061_vm7, %v10019_v53  ;;  %v10540_v50 = vadd.f32 %v10539_v21, %v8819_v33  ;;  %v10543_v51 = vadd.f32 %v16787_v43, %v7430_v0 }
 0x47f   : > { %v10490_v48 = vpop.f32.mrb[26].mxu0  ;;  %v8920_v31 = vmax.f32 %v10538_v12, 0.0  ;;  %v10542_v15 = vadd.f32 %v10541_v30, %v10486_v40 }
 0x480   : > { %v8838_v28 = vpop.f32.mrb[27].mxu0  ;;  %v8918_v4 = vmax.f32 %v10540_v50, 0.0  ;;  %v10544_v41 = vadd.f32 %v10543_v51, %v8822_v7 }
 0x481   : > { %v10024_v23 = vpack.c.bf16 %v8920_v31, %v8920_v31  ;;  %v8921_v61 = vmax.f32 %v10542_v15, 0.0 }
 0x482   : > { %v10022_v17 = vpack.c.bf16 %v8918_v4, %v8918_v4  ;;  %v8919_v49 = vmax.f32 %v10544_v41, 0.0  ;;  %v10353_v6 = vpop.f32.mrb[24].mxu1 }
 0x483   : > { %9084 = vst.msk [vmem:[%s16471_s28 + $0x818] sm:$0xf] %vm9061_vm7, %v10024_v23  ;;  %v10025_v58 = vpack.c.bf16 %v8921_v61, %v8921_v61  ;;  %v10545_v57 = vadd.f32 %v10353_v6, %v16787_v43  ;;  %v7443_v11 = vpop.f32.mrb[25].mxu1 }
 0x484   : > { %9082 = vst.msk [vmem:[%s16471_s28 + $0x810] sm:$0xf] %vm9061_vm7, %v10022_v17  ;;  %v10023_v27 = vpack.c.bf16 %v8919_v49, %v8919_v49  ;;  %v10547_v9 = vadd.f32 %v16787_v43, %v7443_v11  ;;  %v10354_v54 = vpop.f32.mrb[26].mxu1 }
 0x485   : > { %v10493_v14 = vpop.f32.mrb[28].mxu0  ;;  %9085 = vst.msk [vmem:[%s16471_s28 + $0x81c] sm:$0xf] %vm9061_vm7, %v10025_v58  ;;  %v10546_v63 = vadd.f32 %v10545_v57, %v10489_v45  ;;  %v10549_v10 = vadd.f32 %v10354_v54, %v16787_v43  ;;  %v7446_v2 = vpop.f32.mrb[27].mxu1 }
 0x486   : > { %v8851_v56 = vpop.f32.mrb[29].mxu0  ;;  %9083 = vst.msk [vmem:[%s16471_s28 + $0x814] sm:$0xf] %vm9061_vm7, %v10023_v27  ;;  %v10548_v60 = vadd.f32 %v10547_v9, %v8835_v22  ;;  %v10551_v59 = vadd.f32 %v16787_v43, %v7446_v2 }
 0x487   : > { %v10494_v47 = vpop.f32.mrb[30].mxu0  ;;  %v8924_v42 = vmax.f32 %v10546_v63, 0.0  ;;  %v10550_v19 = vadd.f32 %v10549_v10, %v10490_v48 }
 0x488   : > { %v8854_v44 = vpop.f32.mrb[31].mxu0  ;;  %v8922_v29 = vmax.f32 %v10548_v60, 0.0  ;;  %v10552_v3 = vadd.f32 %v10551_v59, %v8838_v28 }
 0x489   : > { %v10028_v34 = vpack.c.bf16 %v8924_v42, %v8924_v42  ;;  %v8925_v24 = vmax.f32 %v10550_v19, 0.0 }
 0x48a   : > { %v10026_v36 = vpack.c.bf16 %v8922_v29, %v8922_v29  ;;  %v8923_v1 = vmax.f32 %v10552_v3, 0.0  ;;  %v10357_v38 = vpop.f32.mrb[28].mxu1 }
 0x48b   : > { %9088 = vst.msk [vmem:[%s16471_s28 + $0x828] sm:$0xf] %vm9061_vm7, %v10028_v34  ;;  %v10029_v32 = vpack.c.bf16 %v8925_v24, %v8925_v24  ;;  %v10553_v33 = vadd.f32 %v10357_v38, %v16787_v43  ;;  %v7459_v25 = vpop.f32.mrb[29].mxu1 }
 0x48c   : > { %9086 = vst.msk [vmem:[%s16471_s28 + $0x820] sm:$0xf] %vm9061_vm7, %v10026_v36  ;;  %v10027_v46 = vpack.c.bf16 %v8923_v1, %v8923_v1  ;;  %v10555_v40 = vadd.f32 %v16787_v43, %v7459_v25  ;;  %v10358_v16 = vpop.f32.mrb[30].mxu1 }
 0x48d   : > { %9089 = vst.msk [vmem:[%s16471_s28 + $0x82c] sm:$0xf] %vm9061_vm7, %v10029_v32  ;;  %v10554_v52 = vadd.f32 %v10553_v33, %v10493_v14  ;;  %v10557_v7 = vadd.f32 %v10358_v16, %v16787_v43  ;;  %v7462_v37 = vpop.f32.mrb[31].mxu1 }
 0x48e   : > { %9087 = vst.msk [vmem:[%s16471_s28 + $0x824] sm:$0xf] %vm9061_vm7, %v10027_v46  ;;  %v10556_v13 = vadd.f32 %v10555_v40, %v8851_v56  ;;  %v10559_v8 = vadd.f32 %v16787_v43, %v7462_v37 }
 0x48f   : > { %v8928_v26 = vmax.f32 %v10554_v52, 0.0  ;;  %v10558_v20 = vadd.f32 %v10557_v7, %v10494_v47 }
 0x490   : > { %v8926_v39 = vmax.f32 %v10556_v13, 0.0  ;;  %v10560_v5 = vadd.f32 %v10559_v8, %v8854_v44  ;;  %5677 = sbr.rel (!%p5675_p0) target bundleno = 654 (0x28e), region = 52 }
 0x491   : > { %v10032_v62 = vpack.c.bf16 %v8928_v26, %v8928_v26  ;;  %v8929_v55 = vmax.f32 %v10558_v20, 0.0 }
 0x492   : > { %v10030_v18 = vpack.c.bf16 %v8926_v39, %v8926_v39  ;;  %v8927_v53 = vmax.f32 %v10560_v5, 0.0 }
 0x493   : > { %9092 = vst.msk [vmem:[%s16471_s28 + $0x838] sm:$0xf] %vm9061_vm7, %v10032_v62  ;;  %v10033_v21 = vpack.c.bf16 %v8929_v55, %v8929_v55 }
 0x494   : > { %9090 = vst.msk [vmem:[%s16471_s28 + $0x830] sm:$0xf] %vm9061_vm7, %v10030_v18  ;;  %v10031_v35 = vpack.c.bf16 %v8927_v53, %v8927_v53 }
 0x495   : > { %9093 = vst.msk [vmem:[%s16471_s28 + $0x83c] sm:$0xf] %vm9061_vm7, %v10033_v21 }
 0x496   : > { %9091 = vst.msk [vmem:[%s16471_s28 + $0x834] sm:$0xf] %vm9061_vm7, %v10031_v35 }
 0x497   :  { %11464 = shalt.err (!%p11461_p5)
}
 0x498   :  { %s11465_s8 = scalar_lea.hbm %s16586_s3, 65536 }
 0x499   :  { %p11466_p6 = scmp.ne.s32.totalorder %s16586_s3, %s11465_s8  ;;  %p11469_p7 = scmp.lt.u32.totalorder %s11465_s8, %s16586_s3 }
 0x49b   :  { %p11471_p8 = pnand %p11469_p7, %p11466_p6 }
 0x49d   :  { %11474 = shalt.err (!%p11471_p8)
}
 0x49e   :  { %s11487_s1 = smov 64   ;;  %s11488_s11 = smov 4  }
 0x49f   :  { %9105 = dma.vmem_to_hbm [thread:$0]  %s9100_s30, 65536, %s16586_s3, [#allocation4], %s11487_s1, %s11487_s1, %s11488_s11  }
 0x4a0   :  { %11479 = dma.done.wait [#allocation4], 65536  }
 0x4a1   :  { %11480 = vsyncadd [#allocation4], 4294901760 }
 0x4a2   :  { %9109 = vsyncpa [#allocation4], 1 }

</bundles_post_ra>
